<compile_context>
chip_gen: v5e
topology: v5e:2x2
jax: 0.10.0
libtpu: 0.0.40
codegen_flags: <defaults>
</compile_context>

<pallas_src>
import math

import jax
import jax.numpy as jnp
from jax import lax
from jax.experimental import pallas as pl
from jax.experimental.pallas import tpu as pltpu


def _layernorm(x, gamma, beta, eps=1e-5):
    # x: (rows, C), gamma/beta: (1, C).  PyTorch LayerNorm: biased variance, eps inside sqrt.
    mean = jnp.mean(x, axis=-1, keepdims=True)
    var = jnp.mean((x - mean) ** 2, axis=-1, keepdims=True)
    return (x - mean) * lax.rsqrt(var + eps) * gamma + beta


def _make_block_kernel(*, n_head, q_tile, n_qt, approx_recip, emit_attn):
    def kernel(x_ref,
               ln1g_ref, ln1b_ref,
               wk_ref, bk_ref, wq_ref, bq_ref, wv_ref, bv_ref, wp_ref, bp_ref,
               ln2g_ref, ln2b_ref,
               w1_ref, b1_ref, w2_ref, b2_ref,
               out_ref, *rest):
        if emit_attn:
            attn_ref = rest[0]
            k_scr, v_scr, p_slab, m_scr, l_scr, acc_scr = rest[1:]
        else:
            attn_ref = None
            k_scr, v_scr, p_slab, m_scr, l_scr, acc_scr = rest

        _, TQ, C = x_ref.shape
        hd = C // n_head
        scale = 1.0 / math.sqrt(hd)
        cdt = wk_ref.dtype                       # matmul operand dtype (bf16 or f32)

        qi = pl.program_id(1)
        q0 = pl.multiple_of(qi * q_tile, q_tile)

        # ---- LayerNorm1 + q/k/v projections for this query tile (full (TQ,C)x(C,C) MXU) ----
        x_t = x_ref[0]                                               # (TQ, C) residual input
        xn = _layernorm(x_t, ln1g_ref[...], ln1b_ref[...]).astype(cdt)

        def proj_heads(w_ref, b_ref):
            r = jnp.dot(xn, w_ref[...], preferred_element_type=jnp.float32) + b_ref[...]
            return jnp.transpose(r.reshape(q_tile, n_head, hd), (1, 0, 2))   # (H, TQ, hd)

        qh = proj_heads(wq_ref, bq_ref).astype(cdt)
        # Stage this tile's K/V into the persistent scratch.  Earlier tiles' rows persist
        # (the qi axis is sequential) and causality only needs keys < q0 + TQ.
        k_scr[:, pl.ds(q0, q_tile), :] = proj_heads(wk_ref, bk_ref).astype(cdt)
        v_scr[:, pl.ds(q0, q_tile), :] = proj_heads(wv_ref, bv_ref).astype(cdt)

        # ---- causal attention over key chunks [0 .. qi]; chunks past the diagonal skipped ---
        m_scr[...] = jnp.full(m_scr.shape, -jnp.inf, jnp.float32)
        l_scr[...] = jnp.zeros(l_scr.shape, jnp.float32)
        acc_scr[...] = jnp.zeros(acc_scr.shape, jnp.float32)

        rows = lax.broadcasted_iota(jnp.int32, (q_tile, q_tile), 0)
        cols = lax.broadcasted_iota(jnp.int32, (q_tile, q_tile), 1)

        # pass 1: masked scores + running row max (only chunks j <= qi execute at runtime)
        for j in range(n_qt):
            @pl.when(j <= qi)
            def _(j=j):
                kc = k_scr[:, j * q_tile:(j + 1) * q_tile, :]
                s = jnp.einsum('hqd,hkd->hqk', qh, kc,
                               preferred_element_type=jnp.float32) * scale
                visible = (q0 + rows) >= (j * q_tile + cols)   # exact on the diagonal chunk,
                s = jnp.where(visible[None, :, :], s, -1e30)   # all-True for chunks j < qi
                m_scr[...] = jnp.maximum(m_scr[...], jnp.max(s, axis=-1, keepdims=True))
                p_slab[j] = s

        # pass 2: exp, row sums, P @ V
        for j in range(n_qt):
            @pl.when(j <= qi)
            def _(j=j):
                p = jnp.exp(p_slab[j] - m_scr[...])
                l_scr[...] += jnp.sum(p, axis=-1, keepdims=True)
                vc = v_scr[:, j * q_tile:(j + 1) * q_tile, :]
                acc_scr[...] += jnp.einsum('hqk,hkd->hqd', p.astype(cdt), vc,
                                           preferred_element_type=jnp.float32)
                if emit_attn:
                    p_slab[j] = p

        if approx_recip:
            inv_l = pl.reciprocal(l_scr[...], approx=True)      # EUP reciprocal (fast path)
        else:
            inv_l = 1.0 / l_scr[...]                            # exact (PyTorch parity)

        # pass 3: normalized attention-map writeback; zeros past the causal boundary
        if emit_attn:
            for j in range(n_qt):
                lo = j * q_tile

                @pl.when(j <= qi)
                def _(j=j, lo=lo):
                    attn_ref[0, :, :, lo:lo + q_tile] = (
                        p_slab[j] * inv_l).astype(attn_ref.dtype)

                @pl.when(j > qi)
                def _(lo=lo):
                    attn_ref[0, :, :, lo:lo + q_tile] = jnp.zeros(
                        (n_head, q_tile, q_tile), attn_ref.dtype)

        # ---- attention output projection + residual ----
        yh = acc_scr[...] * inv_l                               # (H, TQ, hd) f32
        y = jnp.transpose(yh, (1, 0, 2)).reshape(q_tile, C)     # == transpose(1,2).view
        y = jnp.dot(y.astype(cdt), wp_ref[...], preferred_element_type=jnp.float32) + bp_ref[...]
        x1 = x_t + y

        # ---- LayerNorm2 + MLP (Linear -> exact GELU -> Linear) + residual ----
        x2 = _layernorm(x1, ln2g_ref[...], ln2b_ref[...]).astype(cdt)
        h = jnp.dot(x2, w1_ref[...], preferred_element_type=jnp.float32) + b1_ref[...]
        h = 0.5 * h * (1.0 + lax.erf(h * (1.0 / math.sqrt(2.0))))   # exact GELU (PyTorch default)
        mlp = jnp.dot(h.astype(cdt), w2_ref[...], preferred_element_type=jnp.float32) + b2_ref[...]

        out_ref[0] = (x1 + mlp).astype(out_ref.dtype)

    return kernel


def _default_q_tile(T, C, n_head, x_itemsize, cdt_itemsize, attn_itemsize,
                    emit_attn, vmem_limit):
    """Largest query tile whose estimated VMEM footprint fits the budget."""
    hd = C // n_head
    hd_pad = max(hd, 128)            # head dim sits in the lane dim of K/V scratch -> padded
    fixed = 12 * C * C * cdt_itemsize                    # single-buffered weights
    fixed += 2 * n_head * T * hd_pad * cdt_itemsize      # persistent K/V scratch
    candidates = [t for t in (512, 256, 128, 64, 32, 16, 8) if T % t == 0]
    if not candidates:
        return T
    for tq in candidates:                                # prefer the biggest tile that fits
        per = 2 * 2 * tq * C * x_itemsize                # x in + out blocks (double-buffered)
        per += n_head * tq * T * 4                       # f32 score/probability slab
        per += n_head * tq * (hd_pad + 256) * 4          # acc + row-max + row-sum scratch
        per += 12 * tq * C * 4                           # transient activations (MLP hidden)
        if emit_attn:
            per += 2 * n_head * tq * T * attn_itemsize   # attn out block (double-buffered)
        if fixed + per <= 0.85 * vmem_limit:
            return tq
    return candidates[-1]


def transformer_block(x, params, n_head, *, compute_dtype=jnp.bfloat16, q_tile=None,
                      attn_dtype=jnp.bfloat16, approx_recip=False, return_attn=True):
    B, T, C = x.shape
    assert C % n_head == 0
    H4 = 4 * C
    hd = C // n_head

    cdt = jnp.dtype(compute_dtype)
    adt = jnp.dtype(attn_dtype)
    f32 = jnp.float32

    # VMEM budget derived from the actual chip (128 MiB on v5e/v6e, 64 MiB per TC on v7x).
    try:
        vmem_cap = int(pltpu.get_tpu_info().vmem_capacity_bytes)
    except Exception:
        vmem_cap = 64 * 1024 * 1024
    vmem_limit = int(min(vmem_cap - 16 * 1024 * 1024, int(vmem_cap * 0.85)))
    vmem_limit = max(vmem_limit, 32 * 1024 * 1024)

    if q_tile is None:
        q_tile = _default_q_tile(T, C, n_head, x.dtype.itemsize, cdt.itemsize,
                                 adt.itemsize, return_attn, vmem_limit)
    assert T % q_tile == 0, "q_tile must divide T"
    n_qt = T // q_tile

    w = lambda name: params[name].astype(cdt)   # matmul weights -> compute dtype
    f = lambda name: params[name].astype(f32)   # small params stay f32

    args = (
        x,
        f("ln1_g"), f("ln1_b"),
        w("wk"), f("bk"), w("wq"), f("bq"), w("wv"), f("bv"), w("wp"), f("bp"),
        f("ln2_g"), f("ln2_b"),
        w("w1"), f("b1"), w("w2"), f("b2"),
    )

    kernel = _make_block_kernel(n_head=n_head, q_tile=q_tile, n_qt=n_qt,
                                approx_recip=approx_recip, emit_attn=return_attn)

    out_shape = [jax.ShapeDtypeStruct((B, T, C), x.dtype)]
    if return_attn:
        out_shape.append(jax.ShapeDtypeStruct((B, n_head, T, T), adt))

    scratch_shapes = [
        pltpu.VMEM((n_head, T, hd), cdt),                            # K (head-major, persistent)
        pltpu.VMEM((n_head, T, hd), cdt),                            # V
        pltpu.VMEM((n_qt, n_head, q_tile, q_tile), jnp.float32),     # score / probability slab
        pltpu.VMEM((n_head, q_tile, 1), jnp.float32),                # row max
        pltpu.VMEM((n_head, q_tile, 1), jnp.float32),                # row sum
        pltpu.VMEM((n_head, q_tile, hd), jnp.float32),               # P @ V accumulator
    ]

    # Advisory cost estimate (causal attention => ~half the score/PV FLOPs and exps).
    flops = int(B * (24 * T * C * C + 2 * T * T * C))
    transcendentals = int(B * (n_head * T * T // 2 + 4 * T * C))
    bytes_accessed = int(2 * B * T * C * x.dtype.itemsize + 12 * C * C * cdt.itemsize)
    if return_attn:
        bytes_accessed += int(B * n_head * T * T * adt.itemsize)

    def build(single_buffer_constants):
        const_kwargs = dict(pipeline_mode=pl.Buffered(1)) if single_buffer_constants else {}

        def rep(shape):
            nd = len(shape)
            return pl.BlockSpec(shape, lambda b, qi: (0,) * nd, **const_kwargs)

        in_specs = [
            pl.BlockSpec((1, q_tile, C), lambda b, qi: (b, qi, 0)),   # x (per query tile)
            rep((1, C)), rep((1, C)),                                 # ln1 gamma, beta
            rep((C, C)), rep((1, C)),                                 # Wk, bk
            rep((C, C)), rep((1, C)),                                 # Wq, bq
            rep((C, C)), rep((1, C)),                                 # Wv, bv
            rep((C, C)), rep((1, C)),                                 # Wproj, bproj
            rep((1, C)), rep((1, C)),                                 # ln2 gamma, beta
            rep((C, H4)), rep((1, H4)),                               # W1, b1
            rep((H4, C)), rep((1, C)),                                # W2, b2
        ]
        out_specs = [pl.BlockSpec((1, q_tile, C), lambda b, qi: (b, qi, 0))]
        if return_attn:
            out_specs.append(pl.BlockSpec((1, n_head, q_tile, T), lambda b, qi: (b, 0, qi, 0)))

        return pl.pallas_call(
            kernel,
            grid=(B, n_qt),
            in_specs=in_specs,
            out_specs=tuple(out_specs) if return_attn else out_specs[0],
            out_shape=tuple(out_shape) if return_attn else out_shape[0],
            scratch_shapes=scratch_shapes,
            compiler_params=pltpu.CompilerParams(
                dimension_semantics=("parallel", "arbitrary"),   # qi must stay sequential
                vmem_limit_bytes=vmem_limit,
            ),
            cost_estimate=pl.CostEstimate(flops=flops, transcendentals=transcendentals,
                                          bytes_accessed=bytes_accessed),
        )(*args)

    try:
        return build(True)
    except Exception:
        # Fallback if this JAX build rejects pl.Buffered(1) single-buffering.
        return build(False)


# ----------------- pure-JAX reference for verification -----------------
def reference_block(x, p, n_head):
    B, T, C = x.shape
    hd = C // n_head

    def ln(z, g, b):
        m = jnp.mean(z, -1, keepdims=True)
        v = jnp.mean((z - m) ** 2, -1, keepdims=True)
        return (z - m) / jnp.sqrt(v + 1e-5) * g + b

    xn = ln(x, p["ln1_g"], p["ln1_b"])
    k = xn @ p["wk"] + p["bk"]
    q = xn @ p["wq"] + p["bq"]
    v = xn @ p["wv"] + p["bv"]
    k = k.reshape(B, T, n_head, hd).transpose(0, 2, 1, 3)
    q = q.reshape(B, T, n_head, hd).transpose(0, 2, 1, 3)
    v = v.reshape(B, T, n_head, hd).transpose(0, 2, 1, 3)
    att = jnp.einsum("bhtd,bhsd->bhts", q, k) / math.sqrt(hd)
    mask = jnp.tril(jnp.ones((T, T), bool))
    att = jnp.where(mask, att, -jnp.inf)
    att = jax.nn.softmax(att, axis=-1)
    y = jnp.einsum("bhts,bhsd->bhtd", att, v)
    y = y.transpose(0, 2, 1, 3).reshape(B, T, C)
    y = y @ p["wp"] + p["bp"]
    x1 = x + y
    x2 = ln(x1, p["ln2_g"], p["ln2_b"])
    h = x2 @ p["w1"] + p["b1"]
    h = 0.5 * h * (1.0 + jax.scipy.special.erf(h / math.sqrt(2.0)))
    out = x1 + h @ p["w2"] + p["b2"]
    return out, att


if __name__ == "__main__":
    B, T, C, n_head = 2, 16, 32, 4
    key = jax.random.PRNGKey(0)
    ks = jax.random.split(key, 12)

    s = 0.02
    params = {
        "ln1_g": jnp.ones((1, C), jnp.float32),
        "ln1_b": jnp.zeros((1, C), jnp.float32),
        "wk": s * jax.random.normal(ks[0], (C, C), jnp.float32),
        "bk": s * jax.random.normal(ks[1], (1, C), jnp.float32),
        "wq": s * jax.random.normal(ks[2], (C, C), jnp.float32),
        "bq": s * jax.random.normal(ks[3], (1, C), jnp.float32),
        "wv": s * jax.random.normal(ks[4], (C, C), jnp.float32),
        "bv": s * jax.random.normal(ks[5], (1, C), jnp.float32),
        "wp": s * jax.random.normal(ks[6], (C, C), jnp.float32),
        "bp": s * jax.random.normal(ks[7], (1, C), jnp.float32),
        "ln2_g": jnp.ones((1, C), jnp.float32),
        "ln2_b": jnp.zeros((1, C), jnp.float32),
        "w1": s * jax.random.normal(ks[8], (C, 4 * C), jnp.float32),
        "b1": s * jax.random.normal(ks[9], (1, 4 * C), jnp.float32),
        "w2": s * jax.random.normal(ks[10], (4 * C, C), jnp.float32),
        "b2": s * jax.random.normal(ks[11], (1, C), jnp.float32),
    }

    x = jax.random.normal(key, (B, T, C), jnp.float32)
    ref_out, ref_attn = reference_block(x, params, n_head)

    # 1) Strict-parity path: f32 matmuls, exact softmax divide, f32 attention map,
    #    q_tile=8 -> two query tiles (exercises cross-tile K/V staging + causal early-exit).
    out, attn = transformer_block(x, params, n_head, compute_dtype=jnp.float32,
                                  q_tile=8, attn_dtype=jnp.float32, approx_recip=False)
    out = jax.block_until_ready(out)
    attn = jax.block_until_ready(attn)
    assert jnp.allclose(out, ref_out, atol=1e-3, rtol=1e-3), "f32 output mismatch"
    assert jnp.allclose(attn, ref_attn, atol=1e-3, rtol=1e-3), "f32 attention mismatch"

    # 2) Fast path (production defaults): bf16 matmul operands + f32 accumulation, bf16
    #    attention map, approximate-reciprocal softmax normalization, auto q_tile / VMEM.
    out16, attn16 = transformer_block(x, params, n_head, approx_recip=True)
    out16 = jax.block_until_ready(out16)
    attn16 = jax.block_until_ready(attn16)
    assert jnp.allclose(out16, ref_out, atol=5e-2, rtol=5e-2), "bf16 output mismatch"
    assert jnp.allclose(attn16, ref_attn, atol=2e-2, rtol=2e-2), "bf16 attention mismatch"

    print("KERNEL_OK")
</pallas_src>

<mosaic_0001>
module attributes {stable_mosaic.version = 11 : i64} {
  func.func @kernel(%arg0: i32, %arg1: i32, %arg2: memref<1x8x32xf32, #tpu.memory_space<vmem>>, %arg3: memref<1x32xf32, #tpu.memory_space<vmem>>, %arg4: memref<1x32xf32, #tpu.memory_space<vmem>>, %arg5: memref<32x32xf32, #tpu.memory_space<vmem>>, %arg6: memref<1x32xf32, #tpu.memory_space<vmem>>, %arg7: memref<32x32xf32, #tpu.memory_space<vmem>>, %arg8: memref<1x32xf32, #tpu.memory_space<vmem>>, %arg9: memref<32x32xf32, #tpu.memory_space<vmem>>, %arg10: memref<1x32xf32, #tpu.memory_space<vmem>>, %arg11: memref<32x32xf32, #tpu.memory_space<vmem>>, %arg12: memref<1x32xf32, #tpu.memory_space<vmem>>, %arg13: memref<1x32xf32, #tpu.memory_space<vmem>>, %arg14: memref<1x32xf32, #tpu.memory_space<vmem>>, %arg15: memref<32x128xf32, #tpu.memory_space<vmem>>, %arg16: memref<1x128xf32, #tpu.memory_space<vmem>>, %arg17: memref<128x32xf32, #tpu.memory_space<vmem>>, %arg18: memref<1x32xf32, #tpu.memory_space<vmem>>, %arg19: memref<1x8x32xf32, #tpu.memory_space<vmem>>, %arg20: memref<1x4x8x16xf32, #tpu.memory_space<vmem>>, %arg21: memref<4x16x8xf32, #tpu.memory_space<vmem>>, %arg22: memref<4x16x8xf32, #tpu.memory_space<vmem>>, %arg23: memref<2x4x8x8xf32, #tpu.memory_space<vmem>>, %arg24: memref<4x8x1xf32, #tpu.memory_space<vmem>>, %arg25: memref<4x8x1xf32, #tpu.memory_space<vmem>>, %arg26: memref<4x8x8xf32, #tpu.memory_space<vmem>>) attributes {dimension_semantics = [#tpu.dimension_semantics<parallel>, #tpu.dimension_semantics<arbitrary>], iteration_bounds = array<i64: 2, 2>, scalar_prefetch = 0 : i64, scratch_operands = 6 : i64, tpu.core_type = #tpu.core_type<tc>, window_params = [{transform_indices = @transform_0, window_bounds = array<i64: 1, 8, 32>}, {pipeline_mode = #tpu.pipeline_mode<synchronous>, transform_indices = @transform_1, window_bounds = array<i64: 1, 32>}, {pipeline_mode = #tpu.pipeline_mode<synchronous>, transform_indices = @transform_2, window_bounds = array<i64: 1, 32>}, {pipeline_mode = #tpu.pipeline_mode<synchronous>, transform_indices = @transform_3, window_bounds = array<i64: 32, 32>}, {pipeline_mode = #tpu.pipeline_mode<synchronous>, transform_indices = @transform_4, window_bounds = array<i64: 1, 32>}, {pipeline_mode = #tpu.pipeline_mode<synchronous>, transform_indices = @transform_5, window_bounds = array<i64: 32, 32>}, {pipeline_mode = #tpu.pipeline_mode<synchronous>, transform_indices = @transform_6, window_bounds = array<i64: 1, 32>}, {pipeline_mode = #tpu.pipeline_mode<synchronous>, transform_indices = @transform_7, window_bounds = array<i64: 32, 32>}, {pipeline_mode = #tpu.pipeline_mode<synchronous>, transform_indices = @transform_8, window_bounds = array<i64: 1, 32>}, {pipeline_mode = #tpu.pipeline_mode<synchronous>, transform_indices = @transform_9, window_bounds = array<i64: 32, 32>}, {pipeline_mode = #tpu.pipeline_mode<synchronous>, transform_indices = @transform_10, window_bounds = array<i64: 1, 32>}, {pipeline_mode = #tpu.pipeline_mode<synchronous>, transform_indices = @transform_11, window_bounds = array<i64: 1, 32>}, {pipeline_mode = #tpu.pipeline_mode<synchronous>, transform_indices = @transform_12, window_bounds = array<i64: 1, 32>}, {pipeline_mode = #tpu.pipeline_mode<synchronous>, transform_indices = @transform_13, window_bounds = array<i64: 32, 128>}, {pipeline_mode = #tpu.pipeline_mode<synchronous>, transform_indices = @transform_14, window_bounds = array<i64: 1, 128>}, {pipeline_mode = #tpu.pipeline_mode<synchronous>, transform_indices = @transform_15, window_bounds = array<i64: 128, 32>}, {pipeline_mode = #tpu.pipeline_mode<synchronous>, transform_indices = @transform_16, window_bounds = array<i64: 1, 32>}, {transform_indices = @transform_17, window_bounds = array<i64: 1, 8, 32>}, {transform_indices = @transform_18, window_bounds = array<i64: 1, 4, 8, 16>}]} {
    %c8_i32 = arith.constant 8 : i32
    %0 = arith.muli %arg1, %c8_i32 : i32
    %1 = tpu.assume_multiple %0, 8 : i32
    %c0 = arith.constant 0 : index
    %c0_0 = arith.constant 0 : index
    %c0_1 = arith.constant 0 : index
    %2 = vector.load %arg2[%c0, %c0_0, %c0_1] : memref<1x8x32xf32, #tpu.memory_space<vmem>>, vector<1x8x32xf32>
    %3 = vector.shape_cast %2 : vector<1x8x32xf32> to vector<8x32xf32>
    %c0_2 = arith.constant 0 : index
    %c0_3 = arith.constant 0 : index
    %4 = vector.load %arg3[%c0_2, %c0_3] : memref<1x32xf32, #tpu.memory_space<vmem>>, vector<1x32xf32>
    %c0_4 = arith.constant 0 : index
    %c0_5 = arith.constant 0 : index
    %5 = vector.load %arg4[%c0_4, %c0_5] : memref<1x32xf32, #tpu.memory_space<vmem>>, vector<1x32xf32>
    %cst = arith.constant dense<0.000000e+00> : vector<8xf32>
    %6 = vector.multi_reduction <add>, %3, %cst [1] : vector<8x32xf32> to vector<8xf32>
    %7 = vector.shape_cast %6 : vector<8xf32> to vector<8x1xf32>
    %cst_6 = arith.constant 3.200000e+01 : f32
    %8 = vector.broadcast %cst_6 : f32 to vector<8x1xf32>
    %9 = arith.divf %7, %8 : vector<8x1xf32>
    %10 = vector.broadcast %9 : vector<8x1xf32> to vector<8x32xf32>
    %11 = arith.subf %3, %10 : vector<8x32xf32>
    %12 = arith.mulf %11, %11 : vector<8x32xf32>
    %cst_7 = arith.constant dense<0.000000e+00> : vector<8xf32>
    %13 = vector.multi_reduction <add>, %12, %cst_7 [1] : vector<8x32xf32> to vector<8xf32>
    %14 = vector.shape_cast %13 : vector<8xf32> to vector<8x1xf32>
    %cst_8 = arith.constant 3.200000e+01 : f32
    %15 = vector.broadcast %cst_8 : f32 to vector<8x1xf32>
    %16 = arith.divf %14, %15 : vector<8x1xf32>
    %17 = vector.broadcast %9 : vector<8x1xf32> to vector<8x32xf32>
    %18 = arith.subf %3, %17 : vector<8x32xf32>
    %cst_9 = arith.constant 9.99999974E-6 : f32
    %19 = vector.broadcast %cst_9 : f32 to vector<8x1xf32>
    %20 = arith.addf %16, %19 : vector<8x1xf32>
    %21 = math.rsqrt %20 : vector<8x1xf32>
    %22 = vector.broadcast %21 : vector<8x1xf32> to vector<8x32xf32>
    %23 = arith.mulf %18, %22 : vector<8x32xf32>
    %24 = vector.broadcast %4 : vector<1x32xf32> to vector<8x32xf32>
    %25 = arith.mulf %23, %24 : vector<8x32xf32>
    %26 = vector.broadcast %5 : vector<1x32xf32> to vector<8x32xf32>
    %27 = arith.addf %25, %26 : vector<8x32xf32>
    %c0_10 = arith.constant 0 : index
    %c0_11 = arith.constant 0 : index
    %28 = vector.load %arg7[%c0_10, %c0_11] : memref<32x32xf32, #tpu.memory_space<vmem>>, vector<32x32xf32>
    %cst_12 = arith.constant dense<0.000000e+00> : vector<8x32xf32>
    %29 = tpu.matmul %27, %28, %cst_12 {dimension_numbers = #tpu.dot_dimension_numbers<[1], [0], [0], [1], [0, 0, 1, 1], [], []>} : vector<8x32xf32>, vector<32x32xf32>, vector<8x32xf32> -> vector<8x32xf32>
    %c0_13 = arith.constant 0 : index
    %c0_14 = arith.constant 0 : index
    %30 = vector.load %arg8[%c0_13, %c0_14] : memref<1x32xf32, #tpu.memory_space<vmem>>, vector<1x32xf32>
    %31 = vector.broadcast %30 : vector<1x32xf32> to vector<8x32xf32>
    %32 = arith.addf %29, %31 : vector<8x32xf32>
    %33 = vector.shape_cast %32 : vector<8x32xf32> to vector<8x4x8xf32>
    %34 = tpu.transpose %33, [1, 0, 2] : vector<8x4x8xf32> -> vector<4x8x8xf32>
    %c0_15 = arith.constant 0 : index
    %c0_16 = arith.constant 0 : index
    %35 = vector.load %arg5[%c0_15, %c0_16] : memref<32x32xf32, #tpu.memory_space<vmem>>, vector<32x32xf32>
    %cst_17 = arith.constant dense<0.000000e+00> : vector<8x32xf32>
    %36 = tpu.matmul %27, %35, %cst_17 {dimension_numbers = #tpu.dot_dimension_numbers<[1], [0], [0], [1], [0, 0, 1, 1], [], []>} : vector<8x32xf32>, vector<32x32xf32>, vector<8x32xf32> -> vector<8x32xf32>
    %c0_18 = arith.constant 0 : index
    %c0_19 = arith.constant 0 : index
    %37 = vector.load %arg6[%c0_18, %c0_19] : memref<1x32xf32, #tpu.memory_space<vmem>>, vector<1x32xf32>
    %38 = vector.broadcast %37 : vector<1x32xf32> to vector<8x32xf32>
    %39 = arith.addf %36, %38 : vector<8x32xf32>
    %40 = vector.shape_cast %39 : vector<8x32xf32> to vector<8x4x8xf32>
    %41 = tpu.transpose %40, [1, 0, 2] : vector<8x4x8xf32> -> vector<4x8x8xf32>
    %c0_20 = arith.constant 0 : index
    %42 = arith.index_cast %1 : i32 to index
    %c0_21 = arith.constant 0 : index
    %43 = vector.load %arg21[%c0_20, %42, %c0_21] : memref<4x16x8xf32, #tpu.memory_space<vmem>>, vector<4x8x8xf32>
    tpu.vector_store %arg21[%c0_20, %42, %c0_21], %41 {strides = array<i32>} : memref<4x16x8xf32, #tpu.memory_space<vmem>>, vector<4x8x8xf32>,
    %c0_22 = arith.constant 0 : index
    %c0_23 = arith.constant 0 : index
    %44 = vector.load %arg9[%c0_22, %c0_23] : memref<32x32xf32, #tpu.memory_space<vmem>>, vector<32x32xf32>
    %cst_24 = arith.constant dense<0.000000e+00> : vector<8x32xf32>
    %45 = tpu.matmul %27, %44, %cst_24 {dimension_numbers = #tpu.dot_dimension_numbers<[1], [0], [0], [1], [0, 0, 1, 1], [], []>} : vector<8x32xf32>, vector<32x32xf32>, vector<8x32xf32> -> vector<8x32xf32>
    %c0_25 = arith.constant 0 : index
    %c0_26 = arith.constant 0 : index
    %46 = vector.load %arg10[%c0_25, %c0_26] : memref<1x32xf32, #tpu.memory_space<vmem>>, vector<1x32xf32>
    %47 = vector.broadcast %46 : vector<1x32xf32> to vector<8x32xf32>
    %48 = arith.addf %45, %47 : vector<8x32xf32>
    %49 = vector.shape_cast %48 : vector<8x32xf32> to vector<8x4x8xf32>
    %50 = tpu.transpose %49, [1, 0, 2] : vector<8x4x8xf32> -> vector<4x8x8xf32>
    %c0_27 = arith.constant 0 : index
    %51 = arith.index_cast %1 : i32 to index
    %c0_28 = arith.constant 0 : index
    %52 = vector.load %arg22[%c0_27, %51, %c0_28] : memref<4x16x8xf32, #tpu.memory_space<vmem>>, vector<4x8x8xf32>
    tpu.vector_store %arg22[%c0_27, %51, %c0_28], %50 {strides = array<i32>} : memref<4x16x8xf32, #tpu.memory_space<vmem>>, vector<4x8x8xf32>,
    %cst_29 = arith.constant 0xFF800000 : f32
    %53 = vector.broadcast %cst_29 : f32 to vector<4x8x1xf32>
    %c0_30 = arith.constant 0 : index
    %c0_31 = arith.constant 0 : index
    %c0_32 = arith.constant 0 : index
    %54 = vector.load %arg24[%c0_30, %c0_31, %c0_32] : memref<4x8x1xf32, #tpu.memory_space<vmem>>, vector<4x8x1xf32>
    tpu.vector_store %arg24[%c0_30, %c0_31, %c0_32], %53 {strides = array<i32>} : memref<4x8x1xf32, #tpu.memory_space<vmem>>, vector<4x8x1xf32>,
    %cst_33 = arith.constant 0.000000e+00 : f32
    %55 = vector.broadcast %cst_33 : f32 to vector<4x8x1xf32>
    %c0_34 = arith.constant 0 : index
    %c0_35 = arith.constant 0 : index
    %c0_36 = arith.constant 0 : index
    %56 = vector.load %arg25[%c0_34, %c0_35, %c0_36] : memref<4x8x1xf32, #tpu.memory_space<vmem>>, vector<4x8x1xf32>
    tpu.vector_store %arg25[%c0_34, %c0_35, %c0_36], %55 {strides = array<i32>} : memref<4x8x1xf32, #tpu.memory_space<vmem>>, vector<4x8x1xf32>,
    %cst_37 = arith.constant 0.000000e+00 : f32
    %57 = vector.broadcast %cst_37 : f32 to vector<4x8x8xf32>
    %c0_38 = arith.constant 0 : index
    %c0_39 = arith.constant 0 : index
    %c0_40 = arith.constant 0 : index
    %58 = vector.load %arg26[%c0_38, %c0_39, %c0_40] : memref<4x8x8xf32, #tpu.memory_space<vmem>>, vector<4x8x8xf32>
    tpu.vector_store %arg26[%c0_38, %c0_39, %c0_40], %57 {strides = array<i32>} : memref<4x8x8xf32, #tpu.memory_space<vmem>>, vector<4x8x8xf32>,
    %59 = tpu.iota {dimensions = array<i32: 0>} : vector<8x8xi32>
    %60 = tpu.iota {dimensions = array<i32: 1>} : vector<8x8xi32>
    %c0_i32 = arith.constant 0 : i32
    %61 = arith.cmpi sge, %arg1, %c0_i32 : i32
    %62 = arith.extui %61 : i1 to i32
    %c0_i32_41 = arith.constant 0 : i32
    %63 = arith.cmpi ne, %62, %c0_i32_41 : i32
    scf.if %63 {
      %c0_92 = arith.constant 0 : index
      %c0_93 = arith.constant 0 : index
      %c0_94 = arith.constant 0 : index
      %145 = vector.load %arg21[%c0_92, %c0_93, %c0_94] : memref<4x16x8xf32, #tpu.memory_space<vmem>>, vector<4x8x8xf32>
      "tpu.trace_start"() <{level = 10 : i32, message = "hqd,hkd->hqk"}> : () -> ()
      %cst_95 = arith.constant dense<0.000000e+00> : vector<4x8x8xf32>
      %146 = tpu.matmul %34, %145, %cst_95 {dimension_numbers = #tpu.dot_dimension_numbers<[2], [2], [1], [1], [0, 0, 0, 1, 1, 1], [0], [0]>} : vector<4x8x8xf32>, vector<4x8x8xf32>, vector<4x8x8xf32> -> vector<4x8x8xf32>
      "tpu.trace_stop"() : () -> ()
      %cst_96 = arith.constant 0.353553385 : f32
      %147 = vector.broadcast %cst_96 : f32 to vector<4x8x8xf32>
      %148 = arith.mulf %146, %147 : vector<4x8x8xf32>
      %149 = vector.broadcast %1 : i32 to vector<8x8xi32>
      %150 = arith.addi %149, %59 : vector<8x8xi32>
      %c0_i32_97 = arith.constant 0 : i32
      %151 = vector.broadcast %c0_i32_97 : i32 to vector<8x8xi32>
      %152 = arith.addi %151, %60 : vector<8x8xi32>
      %153 = arith.cmpi sge, %150, %152 : vector<8x8xi32>
      %154 = vector.shape_cast %153 : vector<8x8xi1> to vector<1x8x8xi1>
      %cst_98 = arith.constant -1.000000e+30 : f32
      %155 = vector.shape_cast %154 : vector<1x8x8xi1> to vector<1x8x8xi1>
      %156 = vector.broadcast %155 : vector<1x8x8xi1> to vector<4x8x8xi1>
      %157 = vector.broadcast %cst_98 : f32 to vector<4x8x8xf32>
      %158 = arith.select %156, %148, %157 : vector<4x8x8xi1>, vector<4x8x8xf32>
      %c0_99 = arith.constant 0 : index
      %c0_100 = arith.constant 0 : index
      %c0_101 = arith.constant 0 : index
      %159 = vector.load %arg24[%c0_99, %c0_100, %c0_101] : memref<4x8x1xf32, #tpu.memory_space<vmem>>, vector<4x8x1xf32>
      %cst_102 = arith.constant dense<0xFF800000> : vector<4x8xf32>
      %160 = vector.multi_reduction <maximumf>, %158, %cst_102 [2] : vector<4x8x8xf32> to vector<4x8xf32>
      %161 = vector.shape_cast %160 : vector<4x8xf32> to vector<4x8x1xf32>
      %162 = arith.maximumf %159, %161 : vector<4x8x1xf32>
      %c0_103 = arith.constant 0 : index
      %c0_104 = arith.constant 0 : index
      %c0_105 = arith.constant 0 : index
      %163 = vector.load %arg24[%c0_103, %c0_104, %c0_105] : memref<4x8x1xf32, #tpu.memory_space<vmem>>, vector<4x8x1xf32>
      tpu.vector_store %arg24[%c0_103, %c0_104, %c0_105], %162 {strides = array<i32>} : memref<4x8x1xf32, #tpu.memory_space<vmem>>, vector<4x8x1xf32>,
      %c0_106 = arith.constant 0 : index
      %c0_107 = arith.constant 0 : index
      %c0_108 = arith.constant 0 : index
      %c0_109 = arith.constant 0 : index
      %164 = vector.load %arg23[%c0_106, %c0_107, %c0_108, %c0_109] : memref<2x4x8x8xf32, #tpu.memory_space<vmem>>, vector<1x4x8x8xf32>
      %165 = vector.shape_cast %164 : vector<1x4x8x8xf32> to vector<4x8x8xf32>
      %166 = vector.shape_cast %158 : vector<4x8x8xf32> to vector<1x4x8x8xf32>
      tpu.vector_store %arg23[%c0_106, %c0_107, %c0_108, %c0_109], %166 {strides = array<i32>} : memref<2x4x8x8xf32, #tpu.memory_space<vmem>>, vector<1x4x8x8xf32>,
    } else {
    }
    %c1_i32 = arith.constant 1 : i32
    %64 = arith.cmpi sge, %arg1, %c1_i32 : i32
    %65 = arith.extui %64 : i1 to i32
    %c0_i32_42 = arith.constant 0 : i32
    %66 = arith.cmpi ne, %65, %c0_i32_42 : i32
    scf.if %66 {
      %c0_92 = arith.constant 0 : index
      %c8 = arith.constant 8 : index
      %c0_93 = arith.constant 0 : index
      %145 = vector.load %arg21[%c0_92, %c8, %c0_93] : memref<4x16x8xf32, #tpu.memory_space<vmem>>, vector<4x8x8xf32>
      "tpu.trace_start"() <{level = 10 : i32, message = "hqd,hkd->hqk"}> : () -> ()
      %cst_94 = arith.constant dense<0.000000e+00> : vector<4x8x8xf32>
      %146 = tpu.matmul %34, %145, %cst_94 {dimension_numbers = #tpu.dot_dimension_numbers<[2], [2], [1], [1], [0, 0, 0, 1, 1, 1], [0], [0]>} : vector<4x8x8xf32>, vector<4x8x8xf32>, vector<4x8x8xf32> -> vector<4x8x8xf32>
      "tpu.trace_stop"() : () -> ()
      %cst_95 = arith.constant 0.353553385 : f32
      %147 = vector.broadcast %cst_95 : f32 to vector<4x8x8xf32>
      %148 = arith.mulf %146, %147 : vector<4x8x8xf32>
      %149 = vector.broadcast %1 : i32 to vector<8x8xi32>
      %150 = arith.addi %149, %59 : vector<8x8xi32>
      %c8_i32_96 = arith.constant 8 : i32
      %151 = vector.broadcast %c8_i32_96 : i32 to vector<8x8xi32>
      %152 = arith.addi %151, %60 : vector<8x8xi32>
      %153 = arith.cmpi sge, %150, %152 : vector<8x8xi32>
      %154 = vector.shape_cast %153 : vector<8x8xi1> to vector<1x8x8xi1>
      %cst_97 = arith.constant -1.000000e+30 : f32
      %155 = vector.shape_cast %154 : vector<1x8x8xi1> to vector<1x8x8xi1>
      %156 = vector.broadcast %155 : vector<1x8x8xi1> to vector<4x8x8xi1>
      %157 = vector.broadcast %cst_97 : f32 to vector<4x8x8xf32>
      %158 = arith.select %156, %148, %157 : vector<4x8x8xi1>, vector<4x8x8xf32>
      %c0_98 = arith.constant 0 : index
      %c0_99 = arith.constant 0 : index
      %c0_100 = arith.constant 0 : index
      %159 = vector.load %arg24[%c0_98, %c0_99, %c0_100] : memref<4x8x1xf32, #tpu.memory_space<vmem>>, vector<4x8x1xf32>
      %cst_101 = arith.constant dense<0xFF800000> : vector<4x8xf32>
      %160 = vector.multi_reduction <maximumf>, %158, %cst_101 [2] : vector<4x8x8xf32> to vector<4x8xf32>
      %161 = vector.shape_cast %160 : vector<4x8xf32> to vector<4x8x1xf32>
      %162 = arith.maximumf %159, %161 : vector<4x8x1xf32>
      %c0_102 = arith.constant 0 : index
      %c0_103 = arith.constant 0 : index
      %c0_104 = arith.constant 0 : index
      %163 = vector.load %arg24[%c0_102, %c0_103, %c0_104] : memref<4x8x1xf32, #tpu.memory_space<vmem>>, vector<4x8x1xf32>
      tpu.vector_store %arg24[%c0_102, %c0_103, %c0_104], %162 {strides = array<i32>} : memref<4x8x1xf32, #tpu.memory_space<vmem>>, vector<4x8x1xf32>,
      %c1 = arith.constant 1 : index
      %c0_105 = arith.constant 0 : index
      %c0_106 = arith.constant 0 : index
      %c0_107 = arith.constant 0 : index
      %164 = vector.load %arg23[%c1, %c0_105, %c0_106, %c0_107] : memref<2x4x8x8xf32, #tpu.memory_space<vmem>>, vector<1x4x8x8xf32>
      %165 = vector.shape_cast %164 : vector<1x4x8x8xf32> to vector<4x8x8xf32>
      %166 = vector.shape_cast %158 : vector<4x8x8xf32> to vector<1x4x8x8xf32>
      tpu.vector_store %arg23[%c1, %c0_105, %c0_106, %c0_107], %166 {strides = array<i32>} : memref<2x4x8x8xf32, #tpu.memory_space<vmem>>, vector<1x4x8x8xf32>,
    } else {
    }
    %c0_i32_43 = arith.constant 0 : i32
    %67 = arith.cmpi sge, %arg1, %c0_i32_43 : i32
    %68 = arith.extui %67 : i1 to i32
    %c0_i32_44 = arith.constant 0 : i32
    %69 = arith.cmpi ne, %68, %c0_i32_44 : i32
    scf.if %69 {
      %c0_92 = arith.constant 0 : index
      %c0_93 = arith.constant 0 : index
      %c0_94 = arith.constant 0 : index
      %c0_95 = arith.constant 0 : index
      %145 = vector.load %arg23[%c0_92, %c0_93, %c0_94, %c0_95] : memref<2x4x8x8xf32, #tpu.memory_space<vmem>>, vector<1x4x8x8xf32>
      %146 = vector.shape_cast %145 : vector<1x4x8x8xf32> to vector<4x8x8xf32>
      %c0_96 = arith.constant 0 : index
      %c0_97 = arith.constant 0 : index
      %c0_98 = arith.constant 0 : index
      %147 = vector.load %arg24[%c0_96, %c0_97, %c0_98] : memref<4x8x1xf32, #tpu.memory_space<vmem>>, vector<4x8x1xf32>
      %148 = vector.broadcast %147 : vector<4x8x1xf32> to vector<4x8x8xf32>
      %149 = arith.subf %146, %148 : vector<4x8x8xf32>
      %150 = math.exp %149 : vector<4x8x8xf32>
      %c0_99 = arith.constant 0 : index
      %c0_100 = arith.constant 0 : index
      %c0_101 = arith.constant 0 : index
      %151 = vector.load %arg25[%c0_99, %c0_100, %c0_101] : memref<4x8x1xf32, #tpu.memory_space<vmem>>, vector<4x8x1xf32>
      %cst_102 = arith.constant dense<0.000000e+00> : vector<4x8xf32>
      %152 = vector.multi_reduction <add>, %150, %cst_102 [2] : vector<4x8x8xf32> to vector<4x8xf32>
      %153 = vector.shape_cast %152 : vector<4x8xf32> to vector<4x8x1xf32>
      %154 = arith.addf %151, %153 : vector<4x8x1xf32>
      %c0_103 = arith.constant 0 : index
      %c0_104 = arith.constant 0 : index
      %c0_105 = arith.constant 0 : index
      %155 = vector.load %arg25[%c0_103, %c0_104, %c0_105] : memref<4x8x1xf32, #tpu.memory_space<vmem>>, vector<4x8x1xf32>
      tpu.vector_store %arg25[%c0_103, %c0_104, %c0_105], %154 {strides = array<i32>} : memref<4x8x1xf32, #tpu.memory_space<vmem>>, vector<4x8x1xf32>,
      %c0_106 = arith.constant 0 : index
      %c0_107 = arith.constant 0 : index
      %c0_108 = arith.constant 0 : index
      %156 = vector.load %arg22[%c0_106, %c0_107, %c0_108] : memref<4x16x8xf32, #tpu.memory_space<vmem>>, vector<4x8x8xf32>
      %c0_109 = arith.constant 0 : index
      %c0_110 = arith.constant 0 : index
      %c0_111 = arith.constant 0 : index
      %157 = vector.load %arg26[%c0_109, %c0_110, %c0_111] : memref<4x8x8xf32, #tpu.memory_space<vmem>>, vector<4x8x8xf32>
      "tpu.trace_start"() <{level = 10 : i32, message = "hqk,hkd->hqd"}> : () -> ()
      %cst_112 = arith.constant dense<0.000000e+00> : vector<4x8x8xf32>
      %158 = tpu.matmul %150, %156, %cst_112 {dimension_numbers = #tpu.dot_dimension_numbers<[2], [1], [1], [2], [0, 0, 0, 1, 1, 2], [0], [0]>} : vector<4x8x8xf32>, vector<4x8x8xf32>, vector<4x8x8xf32> -> vector<4x8x8xf32>
      "tpu.trace_stop"() : () -> ()
      %159 = arith.addf %157, %158 : vector<4x8x8xf32>
      %c0_113 = arith.constant 0 : index
      %c0_114 = arith.constant 0 : index
      %c0_115 = arith.constant 0 : index
      %160 = vector.load %arg26[%c0_113, %c0_114, %c0_115] : memref<4x8x8xf32, #tpu.memory_space<vmem>>, vector<4x8x8xf32>
      tpu.vector_store %arg26[%c0_113, %c0_114, %c0_115], %159 {strides = array<i32>} : memref<4x8x8xf32, #tpu.memory_space<vmem>>, vector<4x8x8xf32>,
      %c0_116 = arith.constant 0 : index
      %c0_117 = arith.constant 0 : index
      %c0_118 = arith.constant 0 : index
      %c0_119 = arith.constant 0 : index
      %161 = vector.load %arg23[%c0_116, %c0_117, %c0_118, %c0_119] : memref<2x4x8x8xf32, #tpu.memory_space<vmem>>, vector<1x4x8x8xf32>
      %162 = vector.shape_cast %161 : vector<1x4x8x8xf32> to vector<4x8x8xf32>
      %163 = vector.shape_cast %150 : vector<4x8x8xf32> to vector<1x4x8x8xf32>
      tpu.vector_store %arg23[%c0_116, %c0_117, %c0_118, %c0_119], %163 {strides = array<i32>} : memref<2x4x8x8xf32, #tpu.memory_space<vmem>>, vector<1x4x8x8xf32>,
    } else {
    }
    %c1_i32_45 = arith.constant 1 : i32
    %70 = arith.cmpi sge, %arg1, %c1_i32_45 : i32
    %71 = arith.extui %70 : i1 to i32
    %c0_i32_46 = arith.constant 0 : i32
    %72 = arith.cmpi ne, %71, %c0_i32_46 : i32
    scf.if %72 {
      %c1 = arith.constant 1 : index
      %c0_92 = arith.constant 0 : index
      %c0_93 = arith.constant 0 : index
      %c0_94 = arith.constant 0 : index
      %145 = vector.load %arg23[%c1, %c0_92, %c0_93, %c0_94] : memref<2x4x8x8xf32, #tpu.memory_space<vmem>>, vector<1x4x8x8xf32>
      %146 = vector.shape_cast %145 : vector<1x4x8x8xf32> to vector<4x8x8xf32>
      %c0_95 = arith.constant 0 : index
      %c0_96 = arith.constant 0 : index
      %c0_97 = arith.constant 0 : index
      %147 = vector.load %arg24[%c0_95, %c0_96, %c0_97] : memref<4x8x1xf32, #tpu.memory_space<vmem>>, vector<4x8x1xf32>
      %148 = vector.broadcast %147 : vector<4x8x1xf32> to vector<4x8x8xf32>
      %149 = arith.subf %146, %148 : vector<4x8x8xf32>
      %150 = math.exp %149 : vector<4x8x8xf32>
      %c0_98 = arith.constant 0 : index
      %c0_99 = arith.constant 0 : index
      %c0_100 = arith.constant 0 : index
      %151 = vector.load %arg25[%c0_98, %c0_99, %c0_100] : memref<4x8x1xf32, #tpu.memory_space<vmem>>, vector<4x8x1xf32>
      %cst_101 = arith.constant dense<0.000000e+00> : vector<4x8xf32>
      %152 = vector.multi_reduction <add>, %150, %cst_101 [2] : vector<4x8x8xf32> to vector<4x8xf32>
      %153 = vector.shape_cast %152 : vector<4x8xf32> to vector<4x8x1xf32>
      %154 = arith.addf %151, %153 : vector<4x8x1xf32>
      %c0_102 = arith.constant 0 : index
      %c0_103 = arith.constant 0 : index
      %c0_104 = arith.constant 0 : index
      %155 = vector.load %arg25[%c0_102, %c0_103, %c0_104] : memref<4x8x1xf32, #tpu.memory_space<vmem>>, vector<4x8x1xf32>
      tpu.vector_store %arg25[%c0_102, %c0_103, %c0_104], %154 {strides = array<i32>} : memref<4x8x1xf32, #tpu.memory_space<vmem>>, vector<4x8x1xf32>,
      %c0_105 = arith.constant 0 : index
      %c8 = arith.constant 8 : index
      %c0_106 = arith.constant 0 : index
      %156 = vector.load %arg22[%c0_105, %c8, %c0_106] : memref<4x16x8xf32, #tpu.memory_space<vmem>>, vector<4x8x8xf32>
      %c0_107 = arith.constant 0 : index
      %c0_108 = arith.constant 0 : index
      %c0_109 = arith.constant 0 : index
      %157 = vector.load %arg26[%c0_107, %c0_108, %c0_109] : memref<4x8x8xf32, #tpu.memory_space<vmem>>, vector<4x8x8xf32>
      "tpu.trace_start"() <{level = 10 : i32, message = "hqk,hkd->hqd"}> : () -> ()
      %cst_110 = arith.constant dense<0.000000e+00> : vector<4x8x8xf32>
      %158 = tpu.matmul %150, %156, %cst_110 {dimension_numbers = #tpu.dot_dimension_numbers<[2], [1], [1], [2], [0, 0, 0, 1, 1, 2], [0], [0]>} : vector<4x8x8xf32>, vector<4x8x8xf32>, vector<4x8x8xf32> -> vector<4x8x8xf32>
      "tpu.trace_stop"() : () -> ()
      %159 = arith.addf %157, %158 : vector<4x8x8xf32>
      %c0_111 = arith.constant 0 : index
      %c0_112 = arith.constant 0 : index
      %c0_113 = arith.constant 0 : index
      %160 = vector.load %arg26[%c0_111, %c0_112, %c0_113] : memref<4x8x8xf32, #tpu.memory_space<vmem>>, vector<4x8x8xf32>
      tpu.vector_store %arg26[%c0_111, %c0_112, %c0_113], %159 {strides = array<i32>} : memref<4x8x8xf32, #tpu.memory_space<vmem>>, vector<4x8x8xf32>,
      %c1_114 = arith.constant 1 : index
      %c0_115 = arith.constant 0 : index
      %c0_116 = arith.constant 0 : index
      %c0_117 = arith.constant 0 : index
      %161 = vector.load %arg23[%c1_114, %c0_115, %c0_116, %c0_117] : memref<2x4x8x8xf32, #tpu.memory_space<vmem>>, vector<1x4x8x8xf32>
      %162 = vector.shape_cast %161 : vector<1x4x8x8xf32> to vector<4x8x8xf32>
      %163 = vector.shape_cast %150 : vector<4x8x8xf32> to vector<1x4x8x8xf32>
      tpu.vector_store %arg23[%c1_114, %c0_115, %c0_116, %c0_117], %163 {strides = array<i32>} : memref<2x4x8x8xf32, #tpu.memory_space<vmem>>, vector<1x4x8x8xf32>,
    } else {
    }
    %c0_47 = arith.constant 0 : index
    %c0_48 = arith.constant 0 : index
    %c0_49 = arith.constant 0 : index
    %73 = vector.load %arg25[%c0_47, %c0_48, %c0_49] : memref<4x8x1xf32, #tpu.memory_space<vmem>>, vector<4x8x1xf32>
    %cst_50 = arith.constant 1.000000e+00 : f32
    %74 = vector.broadcast %cst_50 : f32 to vector<4x8x1xf32>
    %75 = arith.divf %74, %73 : vector<4x8x1xf32>
    %c0_i32_51 = arith.constant 0 : i32
    %76 = arith.cmpi sge, %arg1, %c0_i32_51 : i32
    %77 = arith.extui %76 : i1 to i32
    %c0_i32_52 = arith.constant 0 : i32
    %78 = arith.cmpi ne, %77, %c0_i32_52 : i32
    scf.if %78 {
      %c0_92 = arith.constant 0 : index
      %c0_93 = arith.constant 0 : index
      %c0_94 = arith.constant 0 : index
      %c0_95 = arith.constant 0 : index
      %145 = vector.load %arg23[%c0_92, %c0_93, %c0_94, %c0_95] : memref<2x4x8x8xf32, #tpu.memory_space<vmem>>, vector<1x4x8x8xf32>
      %146 = vector.shape_cast %145 : vector<1x4x8x8xf32> to vector<4x8x8xf32>
      %147 = vector.broadcast %75 : vector<4x8x1xf32> to vector<4x8x8xf32>
      %148 = arith.mulf %146, %147 : vector<4x8x8xf32>
      %c0_96 = arith.constant 0 : index
      %c0_97 = arith.constant 0 : index
      %c0_98 = arith.constant 0 : index
      %c0_99 = arith.constant 0 : index
      %149 = vector.load %arg20[%c0_96, %c0_97, %c0_98, %c0_99] : memref<1x4x8x16xf32, #tpu.memory_space<vmem>>, vector<1x4x8x8xf32>
      %150 = vector.shape_cast %149 : vector<1x4x8x8xf32> to vector<4x8x8xf32>
      %151 = vector.shape_cast %148 : vector<4x8x8xf32> to vector<1x4x8x8xf32>
      tpu.vector_store %arg20[%c0_96, %c0_97, %c0_98, %c0_99], %151 {strides = array<i32>} : memref<1x4x8x16xf32, #tpu.memory_space<vmem>>, vector<1x4x8x8xf32>,
    } else {
    }
    %c0_i32_53 = arith.constant 0 : i32
    %79 = arith.cmpi slt, %arg1, %c0_i32_53 : i32
    %80 = arith.extui %79 : i1 to i32
    %c0_i32_54 = arith.constant 0 : i32
    %81 = arith.cmpi ne, %80, %c0_i32_54 : i32
    scf.if %81 {
      %cst_92 = arith.constant 0.000000e+00 : f32
      %145 = vector.broadcast %cst_92 : f32 to vector<4x8x8xf32>
      %c0_93 = arith.constant 0 : index
      %c0_94 = arith.constant 0 : index
      %c0_95 = arith.constant 0 : index
      %c0_96 = arith.constant 0 : index
      %146 = vector.load %arg20[%c0_93, %c0_94, %c0_95, %c0_96] : memref<1x4x8x16xf32, #tpu.memory_space<vmem>>, vector<1x4x8x8xf32>
      %147 = vector.shape_cast %146 : vector<1x4x8x8xf32> to vector<4x8x8xf32>
      %148 = vector.shape_cast %145 : vector<4x8x8xf32> to vector<1x4x8x8xf32>
      tpu.vector_store %arg20[%c0_93, %c0_94, %c0_95, %c0_96], %148 {strides = array<i32>} : memref<1x4x8x16xf32, #tpu.memory_space<vmem>>, vector<1x4x8x8xf32>,
    } else {
    }
    %c1_i32_55 = arith.constant 1 : i32
    %82 = arith.cmpi sge, %arg1, %c1_i32_55 : i32
    %83 = arith.extui %82 : i1 to i32
    %c0_i32_56 = arith.constant 0 : i32
    %84 = arith.cmpi ne, %83, %c0_i32_56 : i32
    scf.if %84 {
      %c1 = arith.constant 1 : index
      %c0_92 = arith.constant 0 : index
      %c0_93 = arith.constant 0 : index
      %c0_94 = arith.constant 0 : index
      %145 = vector.load %arg23[%c1, %c0_92, %c0_93, %c0_94] : memref<2x4x8x8xf32, #tpu.memory_space<vmem>>, vector<1x4x8x8xf32>
      %146 = vector.shape_cast %145 : vector<1x4x8x8xf32> to vector<4x8x8xf32>
      %147 = vector.broadcast %75 : vector<4x8x1xf32> to vector<4x8x8xf32>
      %148 = arith.mulf %146, %147 : vector<4x8x8xf32>
      %c0_95 = arith.constant 0 : index
      %c0_96 = arith.constant 0 : index
      %c0_97 = arith.constant 0 : index
      %c8 = arith.constant 8 : index
      %149 = vector.load %arg20[%c0_95, %c0_96, %c0_97, %c8] : memref<1x4x8x16xf32, #tpu.memory_space<vmem>>, vector<1x4x8x8xf32>
      %150 = vector.shape_cast %149 : vector<1x4x8x8xf32> to vector<4x8x8xf32>
      %151 = vector.shape_cast %148 : vector<4x8x8xf32> to vector<1x4x8x8xf32>
      tpu.vector_store %arg20[%c0_95, %c0_96, %c0_97, %c8], %151 {strides = array<i32>} : memref<1x4x8x16xf32, #tpu.memory_space<vmem>>, vector<1x4x8x8xf32>,
    } else {
    }
    %c1_i32_57 = arith.constant 1 : i32
    %85 = arith.cmpi slt, %arg1, %c1_i32_57 : i32
    %86 = arith.extui %85 : i1 to i32
    %c0_i32_58 = arith.constant 0 : i32
    %87 = arith.cmpi ne, %86, %c0_i32_58 : i32
    scf.if %87 {
      %cst_92 = arith.constant 0.000000e+00 : f32
      %145 = vector.broadcast %cst_92 : f32 to vector<4x8x8xf32>
      %c0_93 = arith.constant 0 : index
      %c0_94 = arith.constant 0 : index
      %c0_95 = arith.constant 0 : index
      %c8 = arith.constant 8 : index
      %146 = vector.load %arg20[%c0_93, %c0_94, %c0_95, %c8] : memref<1x4x8x16xf32, #tpu.memory_space<vmem>>, vector<1x4x8x8xf32>
      %147 = vector.shape_cast %146 : vector<1x4x8x8xf32> to vector<4x8x8xf32>
      %148 = vector.shape_cast %145 : vector<4x8x8xf32> to vector<1x4x8x8xf32>
      tpu.vector_store %arg20[%c0_93, %c0_94, %c0_95, %c8], %148 {strides = array<i32>} : memref<1x4x8x16xf32, #tpu.memory_space<vmem>>, vector<1x4x8x8xf32>,
    } else {
    }
    %c0_59 = arith.constant 0 : index
    %c0_60 = arith.constant 0 : index
    %c0_61 = arith.constant 0 : index
    %88 = vector.load %arg26[%c0_59, %c0_60, %c0_61] : memref<4x8x8xf32, #tpu.memory_space<vmem>>, vector<4x8x8xf32>
    %89 = vector.broadcast %75 : vector<4x8x1xf32> to vector<4x8x8xf32>
    %90 = arith.mulf %88, %89 : vector<4x8x8xf32>
    %91 = tpu.transpose %90, [1, 0, 2] : vector<4x8x8xf32> -> vector<8x4x8xf32>
    %92 = vector.shape_cast %91 : vector<8x4x8xf32> to vector<8x32xf32>
    %c0_62 = arith.constant 0 : index
    %c0_63 = arith.constant 0 : index
    %93 = vector.load %arg11[%c0_62, %c0_63] : memref<32x32xf32, #tpu.memory_space<vmem>>, vector<32x32xf32>
    %cst_64 = arith.constant dense<0.000000e+00> : vector<8x32xf32>
    %94 = tpu.matmul %92, %93, %cst_64 {dimension_numbers = #tpu.dot_dimension_numbers<[1], [0], [0], [1], [0, 0, 1, 1], [], []>} : vector<8x32xf32>, vector<32x32xf32>, vector<8x32xf32> -> vector<8x32xf32>
    %c0_65 = arith.constant 0 : index
    %c0_66 = arith.constant 0 : index
    %95 = vector.load %arg12[%c0_65, %c0_66] : memref<1x32xf32, #tpu.memory_space<vmem>>, vector<1x32xf32>
    %96 = vector.broadcast %95 : vector<1x32xf32> to vector<8x32xf32>
    %97 = arith.addf %94, %96 : vector<8x32xf32>
    %98 = arith.addf %3, %97 : vector<8x32xf32>
    %c0_67 = arith.constant 0 : index
    %c0_68 = arith.constant 0 : index
    %99 = vector.load %arg13[%c0_67, %c0_68] : memref<1x32xf32, #tpu.memory_space<vmem>>, vector<1x32xf32>
    %c0_69 = arith.constant 0 : index
    %c0_70 = arith.constant 0 : index
    %100 = vector.load %arg14[%c0_69, %c0_70] : memref<1x32xf32, #tpu.memory_space<vmem>>, vector<1x32xf32>
    %cst_71 = arith.constant dense<0.000000e+00> : vector<8xf32>
    %101 = vector.multi_reduction <add>, %98, %cst_71 [1] : vector<8x32xf32> to vector<8xf32>
    %102 = vector.shape_cast %101 : vector<8xf32> to vector<8x1xf32>
    %cst_72 = arith.constant 3.200000e+01 : f32
    %103 = vector.broadcast %cst_72 : f32 to vector<8x1xf32>
    %104 = arith.divf %102, %103 : vector<8x1xf32>
    %105 = vector.broadcast %104 : vector<8x1xf32> to vector<8x32xf32>
    %106 = arith.subf %98, %105 : vector<8x32xf32>
    %107 = arith.mulf %106, %106 : vector<8x32xf32>
    %cst_73 = arith.constant dense<0.000000e+00> : vector<8xf32>
    %108 = vector.multi_reduction <add>, %107, %cst_73 [1] : vector<8x32xf32> to vector<8xf32>
    %109 = vector.shape_cast %108 : vector<8xf32> to vector<8x1xf32>
    %cst_74 = arith.constant 3.200000e+01 : f32
    %110 = vector.broadcast %cst_74 : f32 to vector<8x1xf32>
    %111 = arith.divf %109, %110 : vector<8x1xf32>
    %112 = vector.broadcast %104 : vector<8x1xf32> to vector<8x32xf32>
    %113 = arith.subf %98, %112 : vector<8x32xf32>
    %cst_75 = arith.constant 9.99999974E-6 : f32
    %114 = vector.broadcast %cst_75 : f32 to vector<8x1xf32>
    %115 = arith.addf %111, %114 : vector<8x1xf32>
    %116 = math.rsqrt %115 : vector<8x1xf32>
    %117 = vector.broadcast %116 : vector<8x1xf32> to vector<8x32xf32>
    %118 = arith.mulf %113, %117 : vector<8x32xf32>
    %119 = vector.broadcast %99 : vector<1x32xf32> to vector<8x32xf32>
    %120 = arith.mulf %118, %119 : vector<8x32xf32>
    %121 = vector.broadcast %100 : vector<1x32xf32> to vector<8x32xf32>
    %122 = arith.addf %120, %121 : vector<8x32xf32>
    %c0_76 = arith.constant 0 : index
    %c0_77 = arith.constant 0 : index
    %123 = vector.load %arg15[%c0_76, %c0_77] : memref<32x128xf32, #tpu.memory_space<vmem>>, vector<32x128xf32>
    %cst_78 = arith.constant dense<0.000000e+00> : vector<8x128xf32>
    %124 = tpu.matmul %122, %123, %cst_78 {dimension_numbers = #tpu.dot_dimension_numbers<[1], [0], [0], [1], [0, 0, 1, 1], [], []>} : vector<8x32xf32>, vector<32x128xf32>, vector<8x128xf32> -> vector<8x128xf32>
    %c0_79 = arith.constant 0 : index
    %c0_80 = arith.constant 0 : index
    %125 = vector.load %arg16[%c0_79, %c0_80] : memref<1x128xf32, #tpu.memory_space<vmem>>, vector<1x128xf32>
    %126 = vector.broadcast %125 : vector<1x128xf32> to vector<8x128xf32>
    %127 = arith.addf %124, %126 : vector<8x128xf32>
    %cst_81 = arith.constant 5.000000e-01 : f32
    %128 = vector.broadcast %cst_81 : f32 to vector<8x128xf32>
    %129 = arith.mulf %128, %127 : vector<8x128xf32>
    %cst_82 = arith.constant 0.707106769 : f32
    %130 = vector.broadcast %cst_82 : f32 to vector<8x128xf32>
    %131 = arith.mulf %127, %130 : vector<8x128xf32>
    %132 = math.erf %131 : vector<8x128xf32>
    %cst_83 = arith.constant 1.000000e+00 : f32
    %133 = vector.broadcast %cst_83 : f32 to vector<8x128xf32>
    %134 = arith.addf %133, %132 : vector<8x128xf32>
    %135 = arith.mulf %129, %134 : vector<8x128xf32>
    %c0_84 = arith.constant 0 : index
    %c0_85 = arith.constant 0 : index
    %136 = vector.load %arg17[%c0_84, %c0_85] : memref<128x32xf32, #tpu.memory_space<vmem>>, vector<128x32xf32>
    %cst_86 = arith.constant dense<0.000000e+00> : vector<8x32xf32>
    %137 = tpu.matmul %135, %136, %cst_86 {dimension_numbers = #tpu.dot_dimension_numbers<[1], [0], [0], [1], [0, 0, 1, 1], [], []>} : vector<8x128xf32>, vector<128x32xf32>, vector<8x32xf32> -> vector<8x32xf32>
    %c0_87 = arith.constant 0 : index
    %c0_88 = arith.constant 0 : index
    %138 = vector.load %arg18[%c0_87, %c0_88] : memref<1x32xf32, #tpu.memory_space<vmem>>, vector<1x32xf32>
    %139 = vector.broadcast %138 : vector<1x32xf32> to vector<8x32xf32>
    %140 = arith.addf %137, %139 : vector<8x32xf32>
    %141 = arith.addf %98, %140 : vector<8x32xf32>
    %c0_89 = arith.constant 0 : index
    %c0_90 = arith.constant 0 : index
    %c0_91 = arith.constant 0 : index
    %142 = vector.load %arg19[%c0_89, %c0_90, %c0_91] : memref<1x8x32xf32, #tpu.memory_space<vmem>>, vector<1x8x32xf32>
    %143 = vector.shape_cast %142 : vector<1x8x32xf32> to vector<8x32xf32>
    %144 = vector.shape_cast %141 : vector<8x32xf32> to vector<1x8x32xf32>
    tpu.vector_store %arg19[%c0_89, %c0_90, %c0_91], %144 {strides = array<i32>} : memref<1x8x32xf32, #tpu.memory_space<vmem>>, vector<1x8x32xf32>,
    return
  }
  func.func @transform_0(%arg0: i32, %arg1: i32) -> (i32, i32, i32) {
    %c0_i32 = arith.constant 0 : i32
    %c0_i32_0 = arith.constant 0 : i32
    return %arg0, %arg1, %c0_i32 : i32, i32, i32
  }
  func.func @transform_1(%arg0: i32, %arg1: i32) -> (i32, i32) {
    %c0_i32 = arith.constant 0 : i32
    %c0_i32_0 = arith.constant 0 : i32
    %c0_i32_1 = arith.constant 0 : i32
    return %c0_i32, %c0_i32_0 : i32, i32
  }
  func.func @transform_2(%arg0: i32, %arg1: i32) -> (i32, i32) {
    %c0_i32 = arith.constant 0 : i32
    %c0_i32_0 = arith.constant 0 : i32
    %c0_i32_1 = arith.constant 0 : i32
    return %c0_i32, %c0_i32_0 : i32, i32
  }
  func.func @transform_3(%arg0: i32, %arg1: i32) -> (i32, i32) {
    %c0_i32 = arith.constant 0 : i32
    %c0_i32_0 = arith.constant 0 : i32
    %c0_i32_1 = arith.constant 0 : i32
    return %c0_i32, %c0_i32_0 : i32, i32
  }
  func.func @transform_4(%arg0: i32, %arg1: i32) -> (i32, i32) {
    %c0_i32 = arith.constant 0 : i32
    %c0_i32_0 = arith.constant 0 : i32
    %c0_i32_1 = arith.constant 0 : i32
    return %c0_i32, %c0_i32_0 : i32, i32
  }
  func.func @transform_5(%arg0: i32, %arg1: i32) -> (i32, i32) {
    %c0_i32 = arith.constant 0 : i32
    %c0_i32_0 = arith.constant 0 : i32
    %c0_i32_1 = arith.constant 0 : i32
    return %c0_i32, %c0_i32_0 : i32, i32
  }
  func.func @transform_6(%arg0: i32, %arg1: i32) -> (i32, i32) {
    %c0_i32 = arith.constant 0 : i32
    %c0_i32_0 = arith.constant 0 : i32
    %c0_i32_1 = arith.constant 0 : i32
    return %c0_i32, %c0_i32_0 : i32, i32
  }
  func.func @transform_7(%arg0: i32, %arg1: i32) -> (i32, i32) {
    %c0_i32 = arith.constant 0 : i32
    %c0_i32_0 = arith.constant 0 : i32
    %c0_i32_1 = arith.constant 0 : i32
    return %c0_i32, %c0_i32_0 : i32, i32
  }
  func.func @transform_8(%arg0: i32, %arg1: i32) -> (i32, i32) {
    %c0_i32 = arith.constant 0 : i32
    %c0_i32_0 = arith.constant 0 : i32
    %c0_i32_1 = arith.constant 0 : i32
    return %c0_i32, %c0_i32_0 : i32, i32
  }
  func.func @transform_9(%arg0: i32, %arg1: i32) -> (i32, i32) {
    %c0_i32 = arith.constant 0 : i32
    %c0_i32_0 = arith.constant 0 : i32
    %c0_i32_1 = arith.constant 0 : i32
    return %c0_i32, %c0_i32_0 : i32, i32
  }
  func.func @transform_10(%arg0: i32, %arg1: i32) -> (i32, i32) {
    %c0_i32 = arith.constant 0 : i32
    %c0_i32_0 = arith.constant 0 : i32
    %c0_i32_1 = arith.constant 0 : i32
    return %c0_i32, %c0_i32_0 : i32, i32
  }
  func.func @transform_11(%arg0: i32, %arg1: i32) -> (i32, i32) {
    %c0_i32 = arith.constant 0 : i32
    %c0_i32_0 = arith.constant 0 : i32
    %c0_i32_1 = arith.constant 0 : i32
    return %c0_i32, %c0_i32_0 : i32, i32
  }
  func.func @transform_12(%arg0: i32, %arg1: i32) -> (i32, i32) {
    %c0_i32 = arith.constant 0 : i32
    %c0_i32_0 = arith.constant 0 : i32
    %c0_i32_1 = arith.constant 0 : i32
    return %c0_i32, %c0_i32_0 : i32, i32
  }
  func.func @transform_13(%arg0: i32, %arg1: i32) -> (i32, i32) {
    %c0_i32 = arith.constant 0 : i32
    %c0_i32_0 = arith.constant 0 : i32
    %c0_i32_1 = arith.constant 0 : i32
    return %c0_i32, %c0_i32_0 : i32, i32
  }
  func.func @transform_14(%arg0: i32, %arg1: i32) -> (i32, i32) {
    %c0_i32 = arith.constant 0 : i32
    %c0_i32_0 = arith.constant 0 : i32
    %c0_i32_1 = arith.constant 0 : i32
    return %c0_i32, %c0_i32_0 : i32, i32
  }
  func.func @transform_15(%arg0: i32, %arg1: i32) -> (i32, i32) {
    %c0_i32 = arith.constant 0 : i32
    %c0_i32_0 = arith.constant 0 : i32
    %c0_i32_1 = arith.constant 0 : i32
    return %c0_i32, %c0_i32_0 : i32, i32
  }
  func.func @transform_16(%arg0: i32, %arg1: i32) -> (i32, i32) {
    %c0_i32 = arith.constant 0 : i32
    %c0_i32_0 = arith.constant 0 : i32
    %c0_i32_1 = arith.constant 0 : i32
    return %c0_i32, %c0_i32_0 : i32, i32
  }
  func.func @transform_17(%arg0: i32, %arg1: i32) -> (i32, i32, i32) {
    %c0_i32 = arith.constant 0 : i32
    %c0_i32_0 = arith.constant 0 : i32
    return %arg0, %arg1, %c0_i32 : i32, i32, i32
  }
  func.func @transform_18(%arg0: i32, %arg1: i32) -> (i32, i32, i32, i32) {
    %c0_i32 = arith.constant 0 : i32
    %c0_i32_0 = arith.constant 0 : i32
    %c0_i32_1 = arith.constant 0 : i32
    return %arg0, %c0_i32, %arg1, %c0_i32_0 : i32, i32, i32, i32
  }
}

module attributes {stable_mosaic.version = 11 : i64} {
  func.func @kernel(%arg0: i32, %arg1: i32, %arg2: memref<1x8x32xf32, #tpu.memory_space<vmem>>, %arg3: memref<1x32xf32, #tpu.memory_space<vmem>>, %arg4: memref<1x32xf32, #tpu.memory_space<vmem>>, %arg5: memref<32x32xf32, #tpu.memory_space<vmem>>, %arg6: memref<1x32xf32, #tpu.memory_space<vmem>>, %arg7: memref<32x32xf32, #tpu.memory_space<vmem>>, %arg8: memref<1x32xf32, #tpu.memory_space<vmem>>, %arg9: memref<32x32xf32, #tpu.memory_space<vmem>>, %arg10: memref<1x32xf32, #tpu.memory_space<vmem>>, %arg11: memref<32x32xf32, #tpu.memory_space<vmem>>, %arg12: memref<1x32xf32, #tpu.memory_space<vmem>>, %arg13: memref<1x32xf32, #tpu.memory_space<vmem>>, %arg14: memref<1x32xf32, #tpu.memory_space<vmem>>, %arg15: memref<32x128xf32, #tpu.memory_space<vmem>>, %arg16: memref<1x128xf32, #tpu.memory_space<vmem>>, %arg17: memref<128x32xf32, #tpu.memory_space<vmem>>, %arg18: memref<1x32xf32, #tpu.memory_space<vmem>>, %arg19: memref<1x8x32xf32, #tpu.memory_space<vmem>>, %arg20: memref<1x4x8x16xf32, #tpu.memory_space<vmem>>, %arg21: memref<4x16x8xf32, #tpu.memory_space<vmem>>, %arg22: memref<4x16x8xf32, #tpu.memory_space<vmem>>, %arg23: memref<2x4x8x8xf32, #tpu.memory_space<vmem>>, %arg24: memref<4x8x1xf32, #tpu.memory_space<vmem>>, %arg25: memref<4x8x1xf32, #tpu.memory_space<vmem>>, %arg26: memref<4x8x8xf32, #tpu.memory_space<vmem>>) attributes {dimension_semantics = [#tpu.dimension_semantics<parallel>, #tpu.dimension_semantics<arbitrary>], iteration_bounds = array<i64: 2, 2>, scalar_prefetch = 0 : i64, scratch_operands = 6 : i64, tpu.core_type = #tpu.core_type<tc>, window_params = [{transform_indices = @transform_0, window_bounds = array<i64: 1, 8, 32>}, {pipeline_mode = #tpu.pipeline_mode<synchronous>, transform_indices = @transform_1, window_bounds = array<i64: 1, 32>}, {pipeline_mode = #tpu.pipeline_mode<synchronous>, transform_indices = @transform_2, window_bounds = array<i64: 1, 32>}, {pipeline_mode = #tpu.pipeline_mode<synchronous>, transform_indices = @transform_3, window_bounds = array<i64: 32, 32>}, {pipeline_mode = #tpu.pipeline_mode<synchronous>, transform_indices = @transform_4, window_bounds = array<i64: 1, 32>}, {pipeline_mode = #tpu.pipeline_mode<synchronous>, transform_indices = @transform_5, window_bounds = array<i64: 32, 32>}, {pipeline_mode = #tpu.pipeline_mode<synchronous>, transform_indices = @transform_6, window_bounds = array<i64: 1, 32>}, {pipeline_mode = #tpu.pipeline_mode<synchronous>, transform_indices = @transform_7, window_bounds = array<i64: 32, 32>}, {pipeline_mode = #tpu.pipeline_mode<synchronous>, transform_indices = @transform_8, window_bounds = array<i64: 1, 32>}, {pipeline_mode = #tpu.pipeline_mode<synchronous>, transform_indices = @transform_9, window_bounds = array<i64: 32, 32>}, {pipeline_mode = #tpu.pipeline_mode<synchronous>, transform_indices = @transform_10, window_bounds = array<i64: 1, 32>}, {pipeline_mode = #tpu.pipeline_mode<synchronous>, transform_indices = @transform_11, window_bounds = array<i64: 1, 32>}, {pipeline_mode = #tpu.pipeline_mode<synchronous>, transform_indices = @transform_12, window_bounds = array<i64: 1, 32>}, {pipeline_mode = #tpu.pipeline_mode<synchronous>, transform_indices = @transform_13, window_bounds = array<i64: 32, 128>}, {pipeline_mode = #tpu.pipeline_mode<synchronous>, transform_indices = @transform_14, window_bounds = array<i64: 1, 128>}, {pipeline_mode = #tpu.pipeline_mode<synchronous>, transform_indices = @transform_15, window_bounds = array<i64: 128, 32>}, {pipeline_mode = #tpu.pipeline_mode<synchronous>, transform_indices = @transform_16, window_bounds = array<i64: 1, 32>}, {transform_indices = @transform_17, window_bounds = array<i64: 1, 8, 32>}, {transform_indices = @transform_18, window_bounds = array<i64: 1, 4, 8, 16>}]} {
    %c8_i32 = arith.constant 8 : i32
    %0 = arith.muli %arg1, %c8_i32 : i32
    %1 = tpu.assume_multiple %0, 8 : i32
    %c0 = arith.constant 0 : index
    %c0_0 = arith.constant 0 : index
    %c0_1 = arith.constant 0 : index
    %2 = vector.load %arg2[%c0, %c0_0, %c0_1] : memref<1x8x32xf32, #tpu.memory_space<vmem>>, vector<1x8x32xf32>
    %3 = vector.shape_cast %2 : vector<1x8x32xf32> to vector<8x32xf32>
    %c0_2 = arith.constant 0 : index
    %c0_3 = arith.constant 0 : index
    %4 = vector.load %arg3[%c0_2, %c0_3] : memref<1x32xf32, #tpu.memory_space<vmem>>, vector<1x32xf32>
    %c0_4 = arith.constant 0 : index
    %c0_5 = arith.constant 0 : index
    %5 = vector.load %arg4[%c0_4, %c0_5] : memref<1x32xf32, #tpu.memory_space<vmem>>, vector<1x32xf32>
    %cst = arith.constant dense<0.000000e+00> : vector<8xf32>
    %6 = vector.multi_reduction <add>, %3, %cst [1] : vector<8x32xf32> to vector<8xf32>
    %7 = vector.shape_cast %6 : vector<8xf32> to vector<8x1xf32>
    %cst_6 = arith.constant 3.200000e+01 : f32
    %8 = vector.broadcast %cst_6 : f32 to vector<8x1xf32>
    %9 = arith.divf %7, %8 : vector<8x1xf32>
    %10 = vector.broadcast %9 : vector<8x1xf32> to vector<8x32xf32>
    %11 = arith.subf %3, %10 : vector<8x32xf32>
    %12 = arith.mulf %11, %11 : vector<8x32xf32>
    %cst_7 = arith.constant dense<0.000000e+00> : vector<8xf32>
    %13 = vector.multi_reduction <add>, %12, %cst_7 [1] : vector<8x32xf32> to vector<8xf32>
    %14 = vector.shape_cast %13 : vector<8xf32> to vector<8x1xf32>
    %cst_8 = arith.constant 3.200000e+01 : f32
    %15 = vector.broadcast %cst_8 : f32 to vector<8x1xf32>
    %16 = arith.divf %14, %15 : vector<8x1xf32>
    %17 = vector.broadcast %9 : vector<8x1xf32> to vector<8x32xf32>
    %18 = arith.subf %3, %17 : vector<8x32xf32>
    %cst_9 = arith.constant 9.99999974E-6 : f32
    %19 = vector.broadcast %cst_9 : f32 to vector<8x1xf32>
    %20 = arith.addf %16, %19 : vector<8x1xf32>
    %21 = math.rsqrt %20 : vector<8x1xf32>
    %22 = vector.broadcast %21 : vector<8x1xf32> to vector<8x32xf32>
    %23 = arith.mulf %18, %22 : vector<8x32xf32>
    %24 = vector.broadcast %4 : vector<1x32xf32> to vector<8x32xf32>
    %25 = arith.mulf %23, %24 : vector<8x32xf32>
    %26 = vector.broadcast %5 : vector<1x32xf32> to vector<8x32xf32>
    %27 = arith.addf %25, %26 : vector<8x32xf32>
    %c0_10 = arith.constant 0 : index
    %c0_11 = arith.constant 0 : index
    %28 = vector.load %arg7[%c0_10, %c0_11] : memref<32x32xf32, #tpu.memory_space<vmem>>, vector<32x32xf32>
    %cst_12 = arith.constant dense<0.000000e+00> : vector<8x32xf32>
    %29 = tpu.matmul %27, %28, %cst_12 {dimension_numbers = #tpu.dot_dimension_numbers<[1], [0], [0], [1], [0, 0, 1, 1], [], []>} : vector<8x32xf32>, vector<32x32xf32>, vector<8x32xf32> -> vector<8x32xf32>
    %c0_13 = arith.constant 0 : index
    %c0_14 = arith.constant 0 : index
    %30 = vector.load %arg8[%c0_13, %c0_14] : memref<1x32xf32, #tpu.memory_space<vmem>>, vector<1x32xf32>
    %31 = vector.broadcast %30 : vector<1x32xf32> to vector<8x32xf32>
    %32 = arith.addf %29, %31 : vector<8x32xf32>
    %33 = vector.shape_cast %32 : vector<8x32xf32> to vector<8x4x8xf32>
    %34 = tpu.transpose %33, [1, 0, 2] : vector<8x4x8xf32> -> vector<4x8x8xf32>
    %c0_15 = arith.constant 0 : index
    %c0_16 = arith.constant 0 : index
    %35 = vector.load %arg5[%c0_15, %c0_16] : memref<32x32xf32, #tpu.memory_space<vmem>>, vector<32x32xf32>
    %cst_17 = arith.constant dense<0.000000e+00> : vector<8x32xf32>
    %36 = tpu.matmul %27, %35, %cst_17 {dimension_numbers = #tpu.dot_dimension_numbers<[1], [0], [0], [1], [0, 0, 1, 1], [], []>} : vector<8x32xf32>, vector<32x32xf32>, vector<8x32xf32> -> vector<8x32xf32>
    %c0_18 = arith.constant 0 : index
    %c0_19 = arith.constant 0 : index
    %37 = vector.load %arg6[%c0_18, %c0_19] : memref<1x32xf32, #tpu.memory_space<vmem>>, vector<1x32xf32>
    %38 = vector.broadcast %37 : vector<1x32xf32> to vector<8x32xf32>
    %39 = arith.addf %36, %38 : vector<8x32xf32>
    %40 = vector.shape_cast %39 : vector<8x32xf32> to vector<8x4x8xf32>
    %41 = tpu.transpose %40, [1, 0, 2] : vector<8x4x8xf32> -> vector<4x8x8xf32>
    %c0_20 = arith.constant 0 : index
    %42 = arith.index_cast %1 : i32 to index
    %c0_21 = arith.constant 0 : index
    %43 = vector.load %arg21[%c0_20, %42, %c0_21] : memref<4x16x8xf32, #tpu.memory_space<vmem>>, vector<4x8x8xf32>
    tpu.vector_store %arg21[%c0_20, %42, %c0_21], %41 {strides = array<i32>} : memref<4x16x8xf32, #tpu.memory_space<vmem>>, vector<4x8x8xf32>,
    %c0_22 = arith.constant 0 : index
    %c0_23 = arith.constant 0 : index
    %44 = vector.load %arg9[%c0_22, %c0_23] : memref<32x32xf32, #tpu.memory_space<vmem>>, vector<32x32xf32>
    %cst_24 = arith.constant dense<0.000000e+00> : vector<8x32xf32>
    %45 = tpu.matmul %27, %44, %cst_24 {dimension_numbers = #tpu.dot_dimension_numbers<[1], [0], [0], [1], [0, 0, 1, 1], [], []>} : vector<8x32xf32>, vector<32x32xf32>, vector<8x32xf32> -> vector<8x32xf32>
    %c0_25 = arith.constant 0 : index
    %c0_26 = arith.constant 0 : index
    %46 = vector.load %arg10[%c0_25, %c0_26] : memref<1x32xf32, #tpu.memory_space<vmem>>, vector<1x32xf32>
    %47 = vector.broadcast %46 : vector<1x32xf32> to vector<8x32xf32>
    %48 = arith.addf %45, %47 : vector<8x32xf32>
    %49 = vector.shape_cast %48 : vector<8x32xf32> to vector<8x4x8xf32>
    %50 = tpu.transpose %49, [1, 0, 2] : vector<8x4x8xf32> -> vector<4x8x8xf32>
    %c0_27 = arith.constant 0 : index
    %51 = arith.index_cast %1 : i32 to index
    %c0_28 = arith.constant 0 : index
    %52 = vector.load %arg22[%c0_27, %51, %c0_28] : memref<4x16x8xf32, #tpu.memory_space<vmem>>, vector<4x8x8xf32>
    tpu.vector_store %arg22[%c0_27, %51, %c0_28], %50 {strides = array<i32>} : memref<4x16x8xf32, #tpu.memory_space<vmem>>, vector<4x8x8xf32>,
    %cst_29 = arith.constant 0xFF800000 : f32
    %53 = vector.broadcast %cst_29 : f32 to vector<4x8x1xf32>
    %c0_30 = arith.constant 0 : index
    %c0_31 = arith.constant 0 : index
    %c0_32 = arith.constant 0 : index
    %54 = vector.load %arg24[%c0_30, %c0_31, %c0_32] : memref<4x8x1xf32, #tpu.memory_space<vmem>>, vector<4x8x1xf32>
    tpu.vector_store %arg24[%c0_30, %c0_31, %c0_32], %53 {strides = array<i32>} : memref<4x8x1xf32, #tpu.memory_space<vmem>>, vector<4x8x1xf32>,
    %cst_33 = arith.constant 0.000000e+00 : f32
    %55 = vector.broadcast %cst_33 : f32 to vector<4x8x1xf32>
    %c0_34 = arith.constant 0 : index
    %c0_35 = arith.constant 0 : index
    %c0_36 = arith.constant 0 : index
    %56 = vector.load %arg25[%c0_34, %c0_35, %c0_36] : memref<4x8x1xf32, #tpu.memory_space<vmem>>, vector<4x8x1xf32>
    tpu.vector_store %arg25[%c0_34, %c0_35, %c0_36], %55 {strides = array<i32>} : memref<4x8x1xf32, #tpu.memory_space<vmem>>, vector<4x8x1xf32>,
    %cst_37 = arith.constant 0.000000e+00 : f32
    %57 = vector.broadcast %cst_37 : f32 to vector<4x8x8xf32>
    %c0_38 = arith.constant 0 : index
    %c0_39 = arith.constant 0 : index
    %c0_40 = arith.constant 0 : index
    %58 = vector.load %arg26[%c0_38, %c0_39, %c0_40] : memref<4x8x8xf32, #tpu.memory_space<vmem>>, vector<4x8x8xf32>
    tpu.vector_store %arg26[%c0_38, %c0_39, %c0_40], %57 {strides = array<i32>} : memref<4x8x8xf32, #tpu.memory_space<vmem>>, vector<4x8x8xf32>,
    %59 = tpu.iota {dimensions = array<i32: 0>} : vector<8x8xi32>
    %60 = tpu.iota {dimensions = array<i32: 1>} : vector<8x8xi32>
    %c0_i32 = arith.constant 0 : i32
    %61 = arith.cmpi sge, %arg1, %c0_i32 : i32
    %62 = arith.extui %61 : i1 to i32
    %c0_i32_41 = arith.constant 0 : i32
    %63 = arith.cmpi ne, %62, %c0_i32_41 : i32
    scf.if %63 {
      %c0_92 = arith.constant 0 : index
      %c0_93 = arith.constant 0 : index
      %c0_94 = arith.constant 0 : index
      %145 = vector.load %arg21[%c0_92, %c0_93, %c0_94] : memref<4x16x8xf32, #tpu.memory_space<vmem>>, vector<4x8x8xf32>
      "tpu.trace_start"() <{level = 10 : i32, message = "hqd,hkd->hqk"}> : () -> ()
      %cst_95 = arith.constant dense<0.000000e+00> : vector<4x8x8xf32>
      %146 = tpu.matmul %34, %145, %cst_95 {dimension_numbers = #tpu.dot_dimension_numbers<[2], [2], [1], [1], [0, 0, 0, 1, 1, 1], [0], [0]>} : vector<4x8x8xf32>, vector<4x8x8xf32>, vector<4x8x8xf32> -> vector<4x8x8xf32>
      "tpu.trace_stop"() : () -> ()
      %cst_96 = arith.constant 0.353553385 : f32
      %147 = vector.broadcast %cst_96 : f32 to vector<4x8x8xf32>
      %148 = arith.mulf %146, %147 : vector<4x8x8xf32>
      %149 = vector.broadcast %1 : i32 to vector<8x8xi32>
      %150 = arith.addi %149, %59 : vector<8x8xi32>
      %c0_i32_97 = arith.constant 0 : i32
      %151 = vector.broadcast %c0_i32_97 : i32 to vector<8x8xi32>
      %152 = arith.addi %151, %60 : vector<8x8xi32>
      %153 = arith.cmpi sge, %150, %152 : vector<8x8xi32>
      %154 = vector.shape_cast %153 : vector<8x8xi1> to vector<1x8x8xi1>
      %cst_98 = arith.constant -1.000000e+30 : f32
      %155 = vector.shape_cast %154 : vector<1x8x8xi1> to vector<1x8x8xi1>
      %156 = vector.broadcast %155 : vector<1x8x8xi1> to vector<4x8x8xi1>
      %157 = vector.broadcast %cst_98 : f32 to vector<4x8x8xf32>
      %158 = arith.select %156, %148, %157 : vector<4x8x8xi1>, vector<4x8x8xf32>
      %c0_99 = arith.constant 0 : index
      %c0_100 = arith.constant 0 : index
      %c0_101 = arith.constant 0 : index
      %159 = vector.load %arg24[%c0_99, %c0_100, %c0_101] : memref<4x8x1xf32, #tpu.memory_space<vmem>>, vector<4x8x1xf32>
      %cst_102 = arith.constant dense<0xFF800000> : vector<4x8xf32>
      %160 = vector.multi_reduction <maximumf>, %158, %cst_102 [2] : vector<4x8x8xf32> to vector<4x8xf32>
      %161 = vector.shape_cast %160 : vector<4x8xf32> to vector<4x8x1xf32>
      %162 = arith.maximumf %159, %161 : vector<4x8x1xf32>
      %c0_103 = arith.constant 0 : index
      %c0_104 = arith.constant 0 : index
      %c0_105 = arith.constant 0 : index
      %163 = vector.load %arg24[%c0_103, %c0_104, %c0_105] : memref<4x8x1xf32, #tpu.memory_space<vmem>>, vector<4x8x1xf32>
      tpu.vector_store %arg24[%c0_103, %c0_104, %c0_105], %162 {strides = array<i32>} : memref<4x8x1xf32, #tpu.memory_space<vmem>>, vector<4x8x1xf32>,
      %c0_106 = arith.constant 0 : index
      %c0_107 = arith.constant 0 : index
      %c0_108 = arith.constant 0 : index
      %c0_109 = arith.constant 0 : index
      %164 = vector.load %arg23[%c0_106, %c0_107, %c0_108, %c0_109] : memref<2x4x8x8xf32, #tpu.memory_space<vmem>>, vector<1x4x8x8xf32>
      %165 = vector.shape_cast %164 : vector<1x4x8x8xf32> to vector<4x8x8xf32>
      %166 = vector.shape_cast %158 : vector<4x8x8xf32> to vector<1x4x8x8xf32>
      tpu.vector_store %arg23[%c0_106, %c0_107, %c0_108, %c0_109], %166 {strides = array<i32>} : memref<2x4x8x8xf32, #tpu.memory_space<vmem>>, vector<1x4x8x8xf32>,
    } else {
    }
    %c1_i32 = arith.constant 1 : i32
    %64 = arith.cmpi sge, %arg1, %c1_i32 : i32
    %65 = arith.extui %64 : i1 to i32
    %c0_i32_42 = arith.constant 0 : i32
    %66 = arith.cmpi ne, %65, %c0_i32_42 : i32
    scf.if %66 {
      %c0_92 = arith.constant 0 : index
      %c8 = arith.constant 8 : index
      %c0_93 = arith.constant 0 : index
      %145 = vector.load %arg21[%c0_92, %c8, %c0_93] : memref<4x16x8xf32, #tpu.memory_space<vmem>>, vector<4x8x8xf32>
      "tpu.trace_start"() <{level = 10 : i32, message = "hqd,hkd->hqk"}> : () -> ()
      %cst_94 = arith.constant dense<0.000000e+00> : vector<4x8x8xf32>
      %146 = tpu.matmul %34, %145, %cst_94 {dimension_numbers = #tpu.dot_dimension_numbers<[2], [2], [1], [1], [0, 0, 0, 1, 1, 1], [0], [0]>} : vector<4x8x8xf32>, vector<4x8x8xf32>, vector<4x8x8xf32> -> vector<4x8x8xf32>
      "tpu.trace_stop"() : () -> ()
      %cst_95 = arith.constant 0.353553385 : f32
      %147 = vector.broadcast %cst_95 : f32 to vector<4x8x8xf32>
      %148 = arith.mulf %146, %147 : vector<4x8x8xf32>
      %149 = vector.broadcast %1 : i32 to vector<8x8xi32>
      %150 = arith.addi %149, %59 : vector<8x8xi32>
      %c8_i32_96 = arith.constant 8 : i32
      %151 = vector.broadcast %c8_i32_96 : i32 to vector<8x8xi32>
      %152 = arith.addi %151, %60 : vector<8x8xi32>
      %153 = arith.cmpi sge, %150, %152 : vector<8x8xi32>
      %154 = vector.shape_cast %153 : vector<8x8xi1> to vector<1x8x8xi1>
      %cst_97 = arith.constant -1.000000e+30 : f32
      %155 = vector.shape_cast %154 : vector<1x8x8xi1> to vector<1x8x8xi1>
      %156 = vector.broadcast %155 : vector<1x8x8xi1> to vector<4x8x8xi1>
      %157 = vector.broadcast %cst_97 : f32 to vector<4x8x8xf32>
      %158 = arith.select %156, %148, %157 : vector<4x8x8xi1>, vector<4x8x8xf32>
      %c0_98 = arith.constant 0 : index
      %c0_99 = arith.constant 0 : index
      %c0_100 = arith.constant 0 : index
      %159 = vector.load %arg24[%c0_98, %c0_99, %c0_100] : memref<4x8x1xf32, #tpu.memory_space<vmem>>, vector<4x8x1xf32>
      %cst_101 = arith.constant dense<0xFF800000> : vector<4x8xf32>
      %160 = vector.multi_reduction <maximumf>, %158, %cst_101 [2] : vector<4x8x8xf32> to vector<4x8xf32>
      %161 = vector.shape_cast %160 : vector<4x8xf32> to vector<4x8x1xf32>
      %162 = arith.maximumf %159, %161 : vector<4x8x1xf32>
      %c0_102 = arith.constant 0 : index
      %c0_103 = arith.constant 0 : index
      %c0_104 = arith.constant 0 : index
      %163 = vector.load %arg24[%c0_102, %c0_103, %c0_104] : memref<4x8x1xf32, #tpu.memory_space<vmem>>, vector<4x8x1xf32>
      tpu.vector_store %arg24[%c0_102, %c0_103, %c0_104], %162 {strides = array<i32>} : memref<4x8x1xf32, #tpu.memory_space<vmem>>, vector<4x8x1xf32>,
      %c1 = arith.constant 1 : index
      %c0_105 = arith.constant 0 : index
      %c0_106 = arith.constant 0 : index
      %c0_107 = arith.constant 0 : index
      %164 = vector.load %arg23[%c1, %c0_105, %c0_106, %c0_107] : memref<2x4x8x8xf32, #tpu.memory_space<vmem>>, vector<1x4x8x8xf32>
      %165 = vector.shape_cast %164 : vector<1x4x8x8xf32> to vector<4x8x8xf32>
      %166 = vector.shape_cast %158 : vector<4x8x8xf32> to vector<1x4x8x8xf32>
      tpu.vector_store %arg23[%c1, %c0_105, %c0_106, %c0_107], %166 {strides = array<i32>} : memref<2x4x8x8xf32, #tpu.memory_space<vmem>>, vector<1x4x8x8xf32>,
    } else {
    }
    %c0_i32_43 = arith.constant 0 : i32
    %67 = arith.cmpi sge, %arg1, %c0_i32_43 : i32
    %68 = arith.extui %67 : i1 to i32
    %c0_i32_44 = arith.constant 0 : i32
    %69 = arith.cmpi ne, %68, %c0_i32_44 : i32
    scf.if %69 {
      %c0_92 = arith.constant 0 : index
      %c0_93 = arith.constant 0 : index
      %c0_94 = arith.constant 0 : index
      %c0_95 = arith.constant 0 : index
      %145 = vector.load %arg23[%c0_92, %c0_93, %c0_94, %c0_95] : memref<2x4x8x8xf32, #tpu.memory_space<vmem>>, vector<1x4x8x8xf32>
      %146 = vector.shape_cast %145 : vector<1x4x8x8xf32> to vector<4x8x8xf32>
      %c0_96 = arith.constant 0 : index
      %c0_97 = arith.constant 0 : index
      %c0_98 = arith.constant 0 : index
      %147 = vector.load %arg24[%c0_96, %c0_97, %c0_98] : memref<4x8x1xf32, #tpu.memory_space<vmem>>, vector<4x8x1xf32>
      %148 = vector.broadcast %147 : vector<4x8x1xf32> to vector<4x8x8xf32>
      %149 = arith.subf %146, %148 : vector<4x8x8xf32>
      %150 = math.exp %149 : vector<4x8x8xf32>
      %c0_99 = arith.constant 0 : index
      %c0_100 = arith.constant 0 : index
      %c0_101 = arith.constant 0 : index
      %151 = vector.load %arg25[%c0_99, %c0_100, %c0_101] : memref<4x8x1xf32, #tpu.memory_space<vmem>>, vector<4x8x1xf32>
      %cst_102 = arith.constant dense<0.000000e+00> : vector<4x8xf32>
      %152 = vector.multi_reduction <add>, %150, %cst_102 [2] : vector<4x8x8xf32> to vector<4x8xf32>
      %153 = vector.shape_cast %152 : vector<4x8xf32> to vector<4x8x1xf32>
      %154 = arith.addf %151, %153 : vector<4x8x1xf32>
      %c0_103 = arith.constant 0 : index
      %c0_104 = arith.constant 0 : index
      %c0_105 = arith.constant 0 : index
      %155 = vector.load %arg25[%c0_103, %c0_104, %c0_105] : memref<4x8x1xf32, #tpu.memory_space<vmem>>, vector<4x8x1xf32>
      tpu.vector_store %arg25[%c0_103, %c0_104, %c0_105], %154 {strides = array<i32>} : memref<4x8x1xf32, #tpu.memory_space<vmem>>, vector<4x8x1xf32>,
      %c0_106 = arith.constant 0 : index
      %c0_107 = arith.constant 0 : index
      %c0_108 = arith.constant 0 : index
      %156 = vector.load %arg22[%c0_106, %c0_107, %c0_108] : memref<4x16x8xf32, #tpu.memory_space<vmem>>, vector<4x8x8xf32>
      %c0_109 = arith.constant 0 : index
      %c0_110 = arith.constant 0 : index
      %c0_111 = arith.constant 0 : index
      %157 = vector.load %arg26[%c0_109, %c0_110, %c0_111] : memref<4x8x8xf32, #tpu.memory_space<vmem>>, vector<4x8x8xf32>
      "tpu.trace_start"() <{level = 10 : i32, message = "hqk,hkd->hqd"}> : () -> ()
      %cst_112 = arith.constant dense<0.000000e+00> : vector<4x8x8xf32>
      %158 = tpu.matmul %150, %156, %cst_112 {dimension_numbers = #tpu.dot_dimension_numbers<[2], [1], [1], [2], [0, 0, 0, 1, 1, 2], [0], [0]>} : vector<4x8x8xf32>, vector<4x8x8xf32>, vector<4x8x8xf32> -> vector<4x8x8xf32>
      "tpu.trace_stop"() : () -> ()
      %159 = arith.addf %157, %158 : vector<4x8x8xf32>
      %c0_113 = arith.constant 0 : index
      %c0_114 = arith.constant 0 : index
      %c0_115 = arith.constant 0 : index
      %160 = vector.load %arg26[%c0_113, %c0_114, %c0_115] : memref<4x8x8xf32, #tpu.memory_space<vmem>>, vector<4x8x8xf32>
      tpu.vector_store %arg26[%c0_113, %c0_114, %c0_115], %159 {strides = array<i32>} : memref<4x8x8xf32, #tpu.memory_space<vmem>>, vector<4x8x8xf32>,
      %c0_116 = arith.constant 0 : index
      %c0_117 = arith.constant 0 : index
      %c0_118 = arith.constant 0 : index
      %c0_119 = arith.constant 0 : index
      %161 = vector.load %arg23[%c0_116, %c0_117, %c0_118, %c0_119] : memref<2x4x8x8xf32, #tpu.memory_space<vmem>>, vector<1x4x8x8xf32>
      %162 = vector.shape_cast %161 : vector<1x4x8x8xf32> to vector<4x8x8xf32>
      %163 = vector.shape_cast %150 : vector<4x8x8xf32> to vector<1x4x8x8xf32>
      tpu.vector_store %arg23[%c0_116, %c0_117, %c0_118, %c0_119], %163 {strides = array<i32>} : memref<2x4x8x8xf32, #tpu.memory_space<vmem>>, vector<1x4x8x8xf32>,
    } else {
    }
    %c1_i32_45 = arith.constant 1 : i32
    %70 = arith.cmpi sge, %arg1, %c1_i32_45 : i32
    %71 = arith.extui %70 : i1 to i32
    %c0_i32_46 = arith.constant 0 : i32
    %72 = arith.cmpi ne, %71, %c0_i32_46 : i32
    scf.if %72 {
      %c1 = arith.constant 1 : index
      %c0_92 = arith.constant 0 : index
      %c0_93 = arith.constant 0 : index
      %c0_94 = arith.constant 0 : index
      %145 = vector.load %arg23[%c1, %c0_92, %c0_93, %c0_94] : memref<2x4x8x8xf32, #tpu.memory_space<vmem>>, vector<1x4x8x8xf32>
      %146 = vector.shape_cast %145 : vector<1x4x8x8xf32> to vector<4x8x8xf32>
      %c0_95 = arith.constant 0 : index
      %c0_96 = arith.constant 0 : index
      %c0_97 = arith.constant 0 : index
      %147 = vector.load %arg24[%c0_95, %c0_96, %c0_97] : memref<4x8x1xf32, #tpu.memory_space<vmem>>, vector<4x8x1xf32>
      %148 = vector.broadcast %147 : vector<4x8x1xf32> to vector<4x8x8xf32>
      %149 = arith.subf %146, %148 : vector<4x8x8xf32>
      %150 = math.exp %149 : vector<4x8x8xf32>
      %c0_98 = arith.constant 0 : index
      %c0_99 = arith.constant 0 : index
      %c0_100 = arith.constant 0 : index
      %151 = vector.load %arg25[%c0_98, %c0_99, %c0_100] : memref<4x8x1xf32, #tpu.memory_space<vmem>>, vector<4x8x1xf32>
      %cst_101 = arith.constant dense<0.000000e+00> : vector<4x8xf32>
      %152 = vector.multi_reduction <add>, %150, %cst_101 [2] : vector<4x8x8xf32> to vector<4x8xf32>
      %153 = vector.shape_cast %152 : vector<4x8xf32> to vector<4x8x1xf32>
      %154 = arith.addf %151, %153 : vector<4x8x1xf32>
      %c0_102 = arith.constant 0 : index
      %c0_103 = arith.constant 0 : index
      %c0_104 = arith.constant 0 : index
      %155 = vector.load %arg25[%c0_102, %c0_103, %c0_104] : memref<4x8x1xf32, #tpu.memory_space<vmem>>, vector<4x8x1xf32>
      tpu.vector_store %arg25[%c0_102, %c0_103, %c0_104], %154 {strides = array<i32>} : memref<4x8x1xf32, #tpu.memory_space<vmem>>, vector<4x8x1xf32>,
      %c0_105 = arith.constant 0 : index
      %c8 = arith.constant 8 : index
      %c0_106 = arith.constant 0 : index
      %156 = vector.load %arg22[%c0_105, %c8, %c0_106] : memref<4x16x8xf32, #tpu.memory_space<vmem>>, vector<4x8x8xf32>
      %c0_107 = arith.constant 0 : index
      %c0_108 = arith.constant 0 : index
      %c0_109 = arith.constant 0 : index
      %157 = vector.load %arg26[%c0_107, %c0_108, %c0_109] : memref<4x8x8xf32, #tpu.memory_space<vmem>>, vector<4x8x8xf32>
      "tpu.trace_start"() <{level = 10 : i32, message = "hqk,hkd->hqd"}> : () -> ()
      %cst_110 = arith.constant dense<0.000000e+00> : vector<4x8x8xf32>
      %158 = tpu.matmul %150, %156, %cst_110 {dimension_numbers = #tpu.dot_dimension_numbers<[2], [1], [1], [2], [0, 0, 0, 1, 1, 2], [0], [0]>} : vector<4x8x8xf32>, vector<4x8x8xf32>, vector<4x8x8xf32> -> vector<4x8x8xf32>
      "tpu.trace_stop"() : () -> ()
      %159 = arith.addf %157, %158 : vector<4x8x8xf32>
      %c0_111 = arith.constant 0 : index
      %c0_112 = arith.constant 0 : index
      %c0_113 = arith.constant 0 : index
      %160 = vector.load %arg26[%c0_111, %c0_112, %c0_113] : memref<4x8x8xf32, #tpu.memory_space<vmem>>, vector<4x8x8xf32>
      tpu.vector_store %arg26[%c0_111, %c0_112, %c0_113], %159 {strides = array<i32>} : memref<4x8x8xf32, #tpu.memory_space<vmem>>, vector<4x8x8xf32>,
      %c1_114 = arith.constant 1 : index
      %c0_115 = arith.constant 0 : index
      %c0_116 = arith.constant 0 : index
      %c0_117 = arith.constant 0 : index
      %161 = vector.load %arg23[%c1_114, %c0_115, %c0_116, %c0_117] : memref<2x4x8x8xf32, #tpu.memory_space<vmem>>, vector<1x4x8x8xf32>
      %162 = vector.shape_cast %161 : vector<1x4x8x8xf32> to vector<4x8x8xf32>
      %163 = vector.shape_cast %150 : vector<4x8x8xf32> to vector<1x4x8x8xf32>
      tpu.vector_store %arg23[%c1_114, %c0_115, %c0_116, %c0_117], %163 {strides = array<i32>} : memref<2x4x8x8xf32, #tpu.memory_space<vmem>>, vector<1x4x8x8xf32>,
    } else {
    }
    %c0_47 = arith.constant 0 : index
    %c0_48 = arith.constant 0 : index
    %c0_49 = arith.constant 0 : index
    %73 = vector.load %arg25[%c0_47, %c0_48, %c0_49] : memref<4x8x1xf32, #tpu.memory_space<vmem>>, vector<4x8x1xf32>
    %cst_50 = arith.constant 1.000000e+00 : f32
    %74 = vector.broadcast %cst_50 : f32 to vector<4x8x1xf32>
    %75 = arith.divf %74, %73 : vector<4x8x1xf32>
    %c0_i32_51 = arith.constant 0 : i32
    %76 = arith.cmpi sge, %arg1, %c0_i32_51 : i32
    %77 = arith.extui %76 : i1 to i32
    %c0_i32_52 = arith.constant 0 : i32
    %78 = arith.cmpi ne, %77, %c0_i32_52 : i32
    scf.if %78 {
      %c0_92 = arith.constant 0 : index
      %c0_93 = arith.constant 0 : index
      %c0_94 = arith.constant 0 : index
      %c0_95 = arith.constant 0 : index
      %145 = vector.load %arg23[%c0_92, %c0_93, %c0_94, %c0_95] : memref<2x4x8x8xf32, #tpu.memory_space<vmem>>, vector<1x4x8x8xf32>
      %146 = vector.shape_cast %145 : vector<1x4x8x8xf32> to vector<4x8x8xf32>
      %147 = vector.broadcast %75 : vector<4x8x1xf32> to vector<4x8x8xf32>
      %148 = arith.mulf %146, %147 : vector<4x8x8xf32>
      %c0_96 = arith.constant 0 : index
      %c0_97 = arith.constant 0 : index
      %c0_98 = arith.constant 0 : index
      %c0_99 = arith.constant 0 : index
      %149 = vector.load %arg20[%c0_96, %c0_97, %c0_98, %c0_99] : memref<1x4x8x16xf32, #tpu.memory_space<vmem>>, vector<1x4x8x8xf32>
      %150 = vector.shape_cast %149 : vector<1x4x8x8xf32> to vector<4x8x8xf32>
      %151 = vector.shape_cast %148 : vector<4x8x8xf32> to vector<1x4x8x8xf32>
      tpu.vector_store %arg20[%c0_96, %c0_97, %c0_98, %c0_99], %151 {strides = array<i32>} : memref<1x4x8x16xf32, #tpu.memory_space<vmem>>, vector<1x4x8x8xf32>,
    } else {
    }
    %c0_i32_53 = arith.constant 0 : i32
    %79 = arith.cmpi slt, %arg1, %c0_i32_53 : i32
    %80 = arith.extui %79 : i1 to i32
    %c0_i32_54 = arith.constant 0 : i32
    %81 = arith.cmpi ne, %80, %c0_i32_54 : i32
    scf.if %81 {
      %cst_92 = arith.constant 0.000000e+00 : f32
      %145 = vector.broadcast %cst_92 : f32 to vector<4x8x8xf32>
      %c0_93 = arith.constant 0 : index
      %c0_94 = arith.constant 0 : index
      %c0_95 = arith.constant 0 : index
      %c0_96 = arith.constant 0 : index
      %146 = vector.load %arg20[%c0_93, %c0_94, %c0_95, %c0_96] : memref<1x4x8x16xf32, #tpu.memory_space<vmem>>, vector<1x4x8x8xf32>
      %147 = vector.shape_cast %146 : vector<1x4x8x8xf32> to vector<4x8x8xf32>
      %148 = vector.shape_cast %145 : vector<4x8x8xf32> to vector<1x4x8x8xf32>
      tpu.vector_store %arg20[%c0_93, %c0_94, %c0_95, %c0_96], %148 {strides = array<i32>} : memref<1x4x8x16xf32, #tpu.memory_space<vmem>>, vector<1x4x8x8xf32>,
    } else {
    }
    %c1_i32_55 = arith.constant 1 : i32
    %82 = arith.cmpi sge, %arg1, %c1_i32_55 : i32
    %83 = arith.extui %82 : i1 to i32
    %c0_i32_56 = arith.constant 0 : i32
    %84 = arith.cmpi ne, %83, %c0_i32_56 : i32
    scf.if %84 {
      %c1 = arith.constant 1 : index
      %c0_92 = arith.constant 0 : index
      %c0_93 = arith.constant 0 : index
      %c0_94 = arith.constant 0 : index
      %145 = vector.load %arg23[%c1, %c0_92, %c0_93, %c0_94] : memref<2x4x8x8xf32, #tpu.memory_space<vmem>>, vector<1x4x8x8xf32>
      %146 = vector.shape_cast %145 : vector<1x4x8x8xf32> to vector<4x8x8xf32>
      %147 = vector.broadcast %75 : vector<4x8x1xf32> to vector<4x8x8xf32>
      %148 = arith.mulf %146, %147 : vector<4x8x8xf32>
      %c0_95 = arith.constant 0 : index
      %c0_96 = arith.constant 0 : index
      %c0_97 = arith.constant 0 : index
      %c8 = arith.constant 8 : index
      %149 = vector.load %arg20[%c0_95, %c0_96, %c0_97, %c8] : memref<1x4x8x16xf32, #tpu.memory_space<vmem>>, vector<1x4x8x8xf32>
      %150 = vector.shape_cast %149 : vector<1x4x8x8xf32> to vector<4x8x8xf32>
      %151 = vector.shape_cast %148 : vector<4x8x8xf32> to vector<1x4x8x8xf32>
      tpu.vector_store %arg20[%c0_95, %c0_96, %c0_97, %c8], %151 {strides = array<i32>} : memref<1x4x8x16xf32, #tpu.memory_space<vmem>>, vector<1x4x8x8xf32>,
    } else {
    }
    %c1_i32_57 = arith.constant 1 : i32
    %85 = arith.cmpi slt, %arg1, %c1_i32_57 : i32
    %86 = arith.extui %85 : i1 to i32
    %c0_i32_58 = arith.constant 0 : i32
    %87 = arith.cmpi ne, %86, %c0_i32_58 : i32
    scf.if %87 {
      %cst_92 = arith.constant 0.000000e+00 : f32
      %145 = vector.broadcast %cst_92 : f32 to vector<4x8x8xf32>
      %c0_93 = arith.constant 0 : index
      %c0_94 = arith.constant 0 : index
      %c0_95 = arith.constant 0 : index
      %c8 = arith.constant 8 : index
      %146 = vector.load %arg20[%c0_93, %c0_94, %c0_95, %c8] : memref<1x4x8x16xf32, #tpu.memory_space<vmem>>, vector<1x4x8x8xf32>
      %147 = vector.shape_cast %146 : vector<1x4x8x8xf32> to vector<4x8x8xf32>
      %148 = vector.shape_cast %145 : vector<4x8x8xf32> to vector<1x4x8x8xf32>
      tpu.vector_store %arg20[%c0_93, %c0_94, %c0_95, %c8], %148 {strides = array<i32>} : memref<1x4x8x16xf32, #tpu.memory_space<vmem>>, vector<1x4x8x8xf32>,
    } else {
    }
    %c0_59 = arith.constant 0 : index
    %c0_60 = arith.constant 0 : index
    %c0_61 = arith.constant 0 : index
    %88 = vector.load %arg26[%c0_59, %c0_60, %c0_61] : memref<4x8x8xf32, #tpu.memory_space<vmem>>, vector<4x8x8xf32>
    %89 = vector.broadcast %75 : vector<4x8x1xf32> to vector<4x8x8xf32>
    %90 = arith.mulf %88, %89 : vector<4x8x8xf32>
    %91 = tpu.transpose %90, [1, 0, 2] : vector<4x8x8xf32> -> vector<8x4x8xf32>
    %92 = vector.shape_cast %91 : vector<8x4x8xf32> to vector<8x32xf32>
    %c0_62 = arith.constant 0 : index
    %c0_63 = arith.constant 0 : index
    %93 = vector.load %arg11[%c0_62, %c0_63] : memref<32x32xf32, #tpu.memory_space<vmem>>, vector<32x32xf32>
    %cst_64 = arith.constant dense<0.000000e+00> : vector<8x32xf32>
    %94 = tpu.matmul %92, %93, %cst_64 {dimension_numbers = #tpu.dot_dimension_numbers<[1], [0], [0], [1], [0, 0, 1, 1], [], []>} : vector<8x32xf32>, vector<32x32xf32>, vector<8x32xf32> -> vector<8x32xf32>
    %c0_65 = arith.constant 0 : index
    %c0_66 = arith.constant 0 : index
    %95 = vector.load %arg12[%c0_65, %c0_66] : memref<1x32xf32, #tpu.memory_space<vmem>>, vector<1x32xf32>
    %96 = vector.broadcast %95 : vector<1x32xf32> to vector<8x32xf32>
    %97 = arith.addf %94, %96 : vector<8x32xf32>
    %98 = arith.addf %3, %97 : vector<8x32xf32>
    %c0_67 = arith.constant 0 : index
    %c0_68 = arith.constant 0 : index
    %99 = vector.load %arg13[%c0_67, %c0_68] : memref<1x32xf32, #tpu.memory_space<vmem>>, vector<1x32xf32>
    %c0_69 = arith.constant 0 : index
    %c0_70 = arith.constant 0 : index
    %100 = vector.load %arg14[%c0_69, %c0_70] : memref<1x32xf32, #tpu.memory_space<vmem>>, vector<1x32xf32>
    %cst_71 = arith.constant dense<0.000000e+00> : vector<8xf32>
    %101 = vector.multi_reduction <add>, %98, %cst_71 [1] : vector<8x32xf32> to vector<8xf32>
    %102 = vector.shape_cast %101 : vector<8xf32> to vector<8x1xf32>
    %cst_72 = arith.constant 3.200000e+01 : f32
    %103 = vector.broadcast %cst_72 : f32 to vector<8x1xf32>
    %104 = arith.divf %102, %103 : vector<8x1xf32>
    %105 = vector.broadcast %104 : vector<8x1xf32> to vector<8x32xf32>
    %106 = arith.subf %98, %105 : vector<8x32xf32>
    %107 = arith.mulf %106, %106 : vector<8x32xf32>
    %cst_73 = arith.constant dense<0.000000e+00> : vector<8xf32>
    %108 = vector.multi_reduction <add>, %107, %cst_73 [1] : vector<8x32xf32> to vector<8xf32>
    %109 = vector.shape_cast %108 : vector<8xf32> to vector<8x1xf32>
    %cst_74 = arith.constant 3.200000e+01 : f32
    %110 = vector.broadcast %cst_74 : f32 to vector<8x1xf32>
    %111 = arith.divf %109, %110 : vector<8x1xf32>
    %112 = vector.broadcast %104 : vector<8x1xf32> to vector<8x32xf32>
    %113 = arith.subf %98, %112 : vector<8x32xf32>
    %cst_75 = arith.constant 9.99999974E-6 : f32
    %114 = vector.broadcast %cst_75 : f32 to vector<8x1xf32>
    %115 = arith.addf %111, %114 : vector<8x1xf32>
    %116 = math.rsqrt %115 : vector<8x1xf32>
    %117 = vector.broadcast %116 : vector<8x1xf32> to vector<8x32xf32>
    %118 = arith.mulf %113, %117 : vector<8x32xf32>
    %119 = vector.broadcast %99 : vector<1x32xf32> to vector<8x32xf32>
    %120 = arith.mulf %118, %119 : vector<8x32xf32>
    %121 = vector.broadcast %100 : vector<1x32xf32> to vector<8x32xf32>
    %122 = arith.addf %120, %121 : vector<8x32xf32>
    %c0_76 = arith.constant 0 : index
    %c0_77 = arith.constant 0 : index
    %123 = vector.load %arg15[%c0_76, %c0_77] : memref<32x128xf32, #tpu.memory_space<vmem>>, vector<32x128xf32>
    %cst_78 = arith.constant dense<0.000000e+00> : vector<8x128xf32>
    %124 = tpu.matmul %122, %123, %cst_78 {dimension_numbers = #tpu.dot_dimension_numbers<[1], [0], [0], [1], [0, 0, 1, 1], [], []>} : vector<8x32xf32>, vector<32x128xf32>, vector<8x128xf32> -> vector<8x128xf32>
    %c0_79 = arith.constant 0 : index
    %c0_80 = arith.constant 0 : index
    %125 = vector.load %arg16[%c0_79, %c0_80] : memref<1x128xf32, #tpu.memory_space<vmem>>, vector<1x128xf32>
    %126 = vector.broadcast %125 : vector<1x128xf32> to vector<8x128xf32>
    %127 = arith.addf %124, %126 : vector<8x128xf32>
    %cst_81 = arith.constant 5.000000e-01 : f32
    %128 = vector.broadcast %cst_81 : f32 to vector<8x128xf32>
    %129 = arith.mulf %128, %127 : vector<8x128xf32>
    %cst_82 = arith.constant 0.707106769 : f32
    %130 = vector.broadcast %cst_82 : f32 to vector<8x128xf32>
    %131 = arith.mulf %127, %130 : vector<8x128xf32>
    %132 = math.erf %131 : vector<8x128xf32>
    %cst_83 = arith.constant 1.000000e+00 : f32
    %133 = vector.broadcast %cst_83 : f32 to vector<8x128xf32>
    %134 = arith.addf %133, %132 : vector<8x128xf32>
    %135 = arith.mulf %129, %134 : vector<8x128xf32>
    %c0_84 = arith.constant 0 : index
    %c0_85 = arith.constant 0 : index
    %136 = vector.load %arg17[%c0_84, %c0_85] : memref<128x32xf32, #tpu.memory_space<vmem>>, vector<128x32xf32>
    %cst_86 = arith.constant dense<0.000000e+00> : vector<8x32xf32>
    %137 = tpu.matmul %135, %136, %cst_86 {dimension_numbers = #tpu.dot_dimension_numbers<[1], [0], [0], [1], [0, 0, 1, 1], [], []>} : vector<8x128xf32>, vector<128x32xf32>, vector<8x32xf32> -> vector<8x32xf32>
    %c0_87 = arith.constant 0 : index
    %c0_88 = arith.constant 0 : index
    %138 = vector.load %arg18[%c0_87, %c0_88] : memref<1x32xf32, #tpu.memory_space<vmem>>, vector<1x32xf32>
    %139 = vector.broadcast %138 : vector<1x32xf32> to vector<8x32xf32>
    %140 = arith.addf %137, %139 : vector<8x32xf32>
    %141 = arith.addf %98, %140 : vector<8x32xf32>
    %c0_89 = arith.constant 0 : index
    %c0_90 = arith.constant 0 : index
    %c0_91 = arith.constant 0 : index
    %142 = vector.load %arg19[%c0_89, %c0_90, %c0_91] : memref<1x8x32xf32, #tpu.memory_space<vmem>>, vector<1x8x32xf32>
    %143 = vector.shape_cast %142 : vector<1x8x32xf32> to vector<8x32xf32>
    %144 = vector.shape_cast %141 : vector<8x32xf32> to vector<1x8x32xf32>
    tpu.vector_store %arg19[%c0_89, %c0_90, %c0_91], %144 {strides = array<i32>} : memref<1x8x32xf32, #tpu.memory_space<vmem>>, vector<1x8x32xf32>,
    return
  }
  func.func @transform_0(%arg0: i32, %arg1: i32) -> (i32, i32, i32) {
    %c0_i32 = arith.constant 0 : i32
    %c0_i32_0 = arith.constant 0 : i32
    return %arg0, %arg1, %c0_i32 : i32, i32, i32
  }
  func.func @transform_1(%arg0: i32, %arg1: i32) -> (i32, i32) {
    %c0_i32 = arith.constant 0 : i32
    %c0_i32_0 = arith.constant 0 : i32
    %c0_i32_1 = arith.constant 0 : i32
    return %c0_i32, %c0_i32_0 : i32, i32
  }
  func.func @transform_2(%arg0: i32, %arg1: i32) -> (i32, i32) {
    %c0_i32 = arith.constant 0 : i32
    %c0_i32_0 = arith.constant 0 : i32
    %c0_i32_1 = arith.constant 0 : i32
    return %c0_i32, %c0_i32_0 : i32, i32
  }
  func.func @transform_3(%arg0: i32, %arg1: i32) -> (i32, i32) {
    %c0_i32 = arith.constant 0 : i32
    %c0_i32_0 = arith.constant 0 : i32
    %c0_i32_1 = arith.constant 0 : i32
    return %c0_i32, %c0_i32_0 : i32, i32
  }
  func.func @transform_4(%arg0: i32, %arg1: i32) -> (i32, i32) {
    %c0_i32 = arith.constant 0 : i32
    %c0_i32_0 = arith.constant 0 : i32
    %c0_i32_1 = arith.constant 0 : i32
    return %c0_i32, %c0_i32_0 : i32, i32
  }
  func.func @transform_5(%arg0: i32, %arg1: i32) -> (i32, i32) {
    %c0_i32 = arith.constant 0 : i32
    %c0_i32_0 = arith.constant 0 : i32
    %c0_i32_1 = arith.constant 0 : i32
    return %c0_i32, %c0_i32_0 : i32, i32
  }
  func.func @transform_6(%arg0: i32, %arg1: i32) -> (i32, i32) {
    %c0_i32 = arith.constant 0 : i32
    %c0_i32_0 = arith.constant 0 : i32
    %c0_i32_1 = arith.constant 0 : i32
    return %c0_i32, %c0_i32_0 : i32, i32
  }
  func.func @transform_7(%arg0: i32, %arg1: i32) -> (i32, i32) {
    %c0_i32 = arith.constant 0 : i32
    %c0_i32_0 = arith.constant 0 : i32
    %c0_i32_1 = arith.constant 0 : i32
    return %c0_i32, %c0_i32_0 : i32, i32
  }
  func.func @transform_8(%arg0: i32, %arg1: i32) -> (i32, i32) {
    %c0_i32 = arith.constant 0 : i32
    %c0_i32_0 = arith.constant 0 : i32
    %c0_i32_1 = arith.constant 0 : i32
    return %c0_i32, %c0_i32_0 : i32, i32
  }
  func.func @transform_9(%arg0: i32, %arg1: i32) -> (i32, i32) {
    %c0_i32 = arith.constant 0 : i32
    %c0_i32_0 = arith.constant 0 : i32
    %c0_i32_1 = arith.constant 0 : i32
    return %c0_i32, %c0_i32_0 : i32, i32
  }
  func.func @transform_10(%arg0: i32, %arg1: i32) -> (i32, i32) {
    %c0_i32 = arith.constant 0 : i32
    %c0_i32_0 = arith.constant 0 : i32
    %c0_i32_1 = arith.constant 0 : i32
    return %c0_i32, %c0_i32_0 : i32, i32
  }
  func.func @transform_11(%arg0: i32, %arg1: i32) -> (i32, i32) {
    %c0_i32 = arith.constant 0 : i32
    %c0_i32_0 = arith.constant 0 : i32
    %c0_i32_1 = arith.constant 0 : i32
    return %c0_i32, %c0_i32_0 : i32, i32
  }
  func.func @transform_12(%arg0: i32, %arg1: i32) -> (i32, i32) {
    %c0_i32 = arith.constant 0 : i32
    %c0_i32_0 = arith.constant 0 : i32
    %c0_i32_1 = arith.constant 0 : i32
    return %c0_i32, %c0_i32_0 : i32, i32
  }
  func.func @transform_13(%arg0: i32, %arg1: i32) -> (i32, i32) {
    %c0_i32 = arith.constant 0 : i32
    %c0_i32_0 = arith.constant 0 : i32
    %c0_i32_1 = arith.constant 0 : i32
    return %c0_i32, %c0_i32_0 : i32, i32
  }
  func.func @transform_14(%arg0: i32, %arg1: i32) -> (i32, i32) {
    %c0_i32 = arith.constant 0 : i32
    %c0_i32_0 = arith.constant 0 : i32
    %c0_i32_1 = arith.constant 0 : i32
    return %c0_i32, %c0_i32_0 : i32, i32
  }
  func.func @transform_15(%arg0: i32, %arg1: i32) -> (i32, i32) {
    %c0_i32 = arith.constant 0 : i32
    %c0_i32_0 = arith.constant 0 : i32
    %c0_i32_1 = arith.constant 0 : i32
    return %c0_i32, %c0_i32_0 : i32, i32
  }
  func.func @transform_16(%arg0: i32, %arg1: i32) -> (i32, i32) {
    %c0_i32 = arith.constant 0 : i32
    %c0_i32_0 = arith.constant 0 : i32
    %c0_i32_1 = arith.constant 0 : i32
    return %c0_i32, %c0_i32_0 : i32, i32
  }
  func.func @transform_17(%arg0: i32, %arg1: i32) -> (i32, i32, i32) {
    %c0_i32 = arith.constant 0 : i32
    %c0_i32_0 = arith.constant 0 : i32
    return %arg0, %arg1, %c0_i32 : i32, i32, i32
  }
  func.func @transform_18(%arg0: i32, %arg1: i32) -> (i32, i32, i32, i32) {
    %c0_i32 = arith.constant 0 : i32
    %c0_i32_0 = arith.constant 0 : i32
    %c0_i32_1 = arith.constant 0 : i32
    return %arg0, %c0_i32, %arg1, %c0_i32_0 : i32, i32, i32, i32
  }
}

</mosaic_0001>

<bundles_post_ra>
// kernel: tpu_custom_call.1
= control target key start
LH: loop header
LB: loop body
LE: loop exit
PB: predicated region body
PF: predicated region fallthrough
CT: control target
= control target key end

     0   :  { %s3820_s0 = inlined_call_operand.vmem [shape: f32[2,16,32], index: 0, kind: input, shape index: {}]   ;;  %s3821_s1 = inlined_call_operand.hbm [shape: f32[1,32], index: 1, kind: input, shape index: {}]   ;;  %s3822_s2 = inlined_call_operand.vmem [shape: f32[1,32], index: 2, kind: input, shape index: {}]   ;;  %s3823_s3 = inlined_call_operand.vmem [shape: f32[32,32], index: 3, kind: input, shape index: {}]   ;;  %s3824_s4 = inlined_call_operand.vmem [shape: f32[1,32], index: 4, kind: input, shape index: {}]   ;;  %s3825_s5 = inlined_call_operand.vmem [shape: f32[32,32], index: 5, kind: input, shape index: {}]   ;;  %s3826_s6 = inlined_call_operand.vmem [shape: f32[1,32], index: 6, kind: input, shape index: {}]   ;;  %s3827_s7 = inlined_call_operand.vmem [shape: f32[32,32], index: 7, kind: input, shape index: {}]   ;;  %s3828_s8 = inlined_call_operand.vmem [shape: f32[1,32], index: 8, kind: input, shape index: {}]   ;;  %s3829_s9 = inlined_call_operand.vmem [shape: f32[32,32], index: 9, kind: input, shape index: {}]   ;;  %s3830_s10 = inlined_call_operand.vmem [shape: f32[1,32], index: 10, kind: input, shape index: {}]   ;;  %s3831_s11 = inlined_call_operand.vmem [shape: f32[1,32], index: 11, kind: input, shape index: {}]   ;;  %s3832_s12 = inlined_call_operand.vmem [shape: f32[1,32], index: 12, kind: input, shape index: {}]   ;;  %s3833_s13 = inlined_call_operand.hbm [shape: f32[32,128], index: 13, kind: input, shape index: {}]   ;;  %s3834_s14 = inlined_call_operand.vmem [shape: f32[1,128], index: 14, kind: input, shape index: {}]   ;;  %s3835_s15 = inlined_call_operand.vmem [shape: f32[128,32], index: 15, kind: input, shape index: {}]   ;;  %s3836_s16 = inlined_call_operand.vmem [shape: f32[1,32], index: 16, kind: input, shape index: {}]   ;;  %s3837_s17 = inlined_call_operand.hbm [shape: f32[2,16,32], index: 17, kind: output, shape index: {0}]   ;;  %s3838_s18 = inlined_call_operand.hbm [shape: f32[2,4,16,16], index: 18, kind: output, shape index: {1}]  }
   0x1   :  { %3854 = sst [smem:[#allocation28_spill]] %s3820_s0 }
   0x2   :  { %3855 = sst [smem:[#allocation29_spill]] %s3821_s1 }
   0x3   :  { %3856 = sst [smem:[#allocation30_spill]] %s3822_s2 }
   0x4   :  { %3857 = sst [smem:[#allocation31_spill]] %s3823_s3 }
   0x5   :  { %3858 = sst [smem:[#allocation32_spill]] %s3824_s4 }
   0x6   :  { %3859 = sst [smem:[#allocation33_spill]] %s3825_s5 }
   0x7   :  { %3860 = sst [smem:[#allocation34_spill]] %s3826_s6 }
   0x8   :  { %3861 = sst [smem:[#allocation35_spill]] %s3827_s7 }
   0x9   :  { %3862 = sst [smem:[#allocation36_spill]] %s3828_s8 }
   0xa   :  { %3863 = sst [smem:[#allocation37_spill]] %s3829_s9 }
   0xb   :  { %3864 = sst [smem:[#allocation38_spill]] %s3834_s14 }
   0xc   :  { %3865 = sst [smem:[#allocation39_spill]] %s3835_s15 }
   0xd   :  { %3866 = sst [smem:[#allocation40_spill]] %s3836_s16 }
   0xe   :  { %3867 = sst [smem:[#allocation41_spill]] %s3837_s17 }
   0xf   :  { %3868 = sst [smem:[#allocation42_spill]] %s3838_s18 }
  0x10   :  { %24 = vsyncpa [#allocation9], 0 }
  0x11   :  { %25 = vsyncpa [#allocation12], 0 }
  0x12   :  { %26 = vsyncpa [#allocation10], 0 }
  0x13   :  { %28 = vsyncpa [#allocation10 + $0x1], 0 }
  0x14   :  { %29 = vsyncpa [#allocation15], 0 }
  0x15   :  { %31 = vsyncpa [#allocation15 + $0x1], 0  ;;  %s3062_s27 = smov 0   ;;  %s3064_s28 = smov 0  }
  0x16   :  { %s3066_s29 = smov 0   ;;  %s3068_s30 = smov 0  }
  0x17   :  { %s3070_s0 = smov 0   ;;  %s3072_s19 = smov 0  }
  0x18   :  { %s3074_s1 = smov 0   ;;  %s3076_s20 = smov 0  }
  0x19 LB: > { %3869 = sst [smem:[#allocation20_spill]] %s2912_s27  ;;  %s2514_s21 = sadd.s32 4294967295, %s2940_s20   ;;  %s2940_s20 = sphi %s3076_s20, %s3914_s20   ;;  %s2936_s1 = sphi %s3074_s1, %s3910_s1   ;;  %s2932_s19 = sphi %s3072_s19, %s3909_s19   ;;  %s2928_s0 = sphi %s3070_s0, %s3908_s0   ;;  %s2924_s30 = sphi %s3068_s30, %s3907_s30   ;;  %s2920_s29 = sphi %s3066_s29, %s3913_s29   ;;  %s2916_s28 = sphi %s3064_s28, %s3912_s28   ;;  %s2912_s27 = sphi %s3062_s27, %s3911_s27  }
  0x1a   : > { %3870 = sst [smem:[#allocation21_spill]] %s2932_s19  ;;  %s2515_s22 = sadd.s32 4294967294, %s2940_s20  }
  0x1b   : > { %3871 = sst [smem:[#allocation22_spill]] %s2936_s1  ;;  %s46_s2 = sadd.s32 1, %s2932_s19 }
  0x1c   : > { %3872 = sst [smem:[#allocation23_spill]] %s2940_s20  ;;  %s49_s23 = sadd.s32 1, %s2936_s1 }
  0x1d   : > { %p47_p0 = scmp.ge.s32.totalorder %s46_s2, 2  ;;  %s422_s24 = sadd.s32 1, %s2920_s29 }
  0x1e   : > { %p432_p1 = scmp.ne.s32.totalorder %s2920_s29, %s2916_s28  ;;  %p433_p2 = scmp.eq.s32.totalorder %s2514_s21, 3 }
  0x1f   : > { %s3916_s2 = smov (%p47_p0, %s46_s2), 0  ;;  %s3918_s23 = smov (!%p47_p0, %s49_s23), %s2936_s1 }
  0x20   : > { %3873 = sst [smem:[#allocation24_spill]] %s3916_s2  ;;  %s418_s25 = ssub.s32 %s2932_s19, %s3916_s2 }
  0x21   : > { %p3114_p3 = por %p433_p2, %p432_p1  ;;  %p51_p4 = scmp.ge.s32.totalorder %s3918_s23, 2 }
  0x22   : > { %p438_p5 = scmp.ne.s32.totalorder %s2916_s28, %s2912_s27  ;;  %p439_p6 = scmp.eq.s32.totalorder %s2515_s22, 3 }
  0x23   : > { %s3874_s26 = scalar_select %p3114_p3, 1, 0 }
  0x24   : > { %p2516_p7 = scmp.ge.s32.totalorder %s2940_s20, 1  ;;  %s3920_s23 = smov (%p51_p4, %s3918_s23), 0 }
  0x25   : > { %3875 = sst [smem:[#allocation25_spill]] %s3874_s26  ;;  %p3123_p8 = por %p439_p6, %p438_p5 }
  0x26   : > { %3876 = sst [smem:[#allocation26_spill]] %s3920_s23  ;;  %p474_p9 = scmp.lt.s32.totalorder %s2940_s20, 5 }
  0x27   : > { %s3877_s17 = scalar_select %p3123_p8, 1, 0 }
  0x28   : > { %s417_s16 = ssub.s32 %s2936_s1, %s3920_s23  ;;  %p3130_p10 = pnand %p2516_p7, %p474_p9 }
  0x29   : > { %3878 = sst [smem:[#allocation27_spill]] %s3877_s17  ;;  %s419_s18 = sor.u32 %s418_s25, %s417_s16 }
  0x2a   : > { %p420_p11 = scmp.eq.s32.totalorder %s419_s18, 0  ;;  %p3134_p12 = scmp.eq.s32.totalorder %s2514_s21, 0 }
  0x2b   : > { %p2586_p13 = pneg %p3130_p10  ;;  %s3881_s26 = sld [smem:[#allocation29_spill]] }
  0x2c   : > { %s3144_s20 = scalar_select %p420_p11, %s2920_s29, %s422_s24  }
  0x2d   : > { %s2942_s16 = smov [#allocation8]   ;;  %p2587_p0 = pnand %p3134_p12, %p2586_p13 }
  0x2e   : > { %s488_s25 = sshll.u32 %s2942_s16, 4  ;;  %s530_s23 = sshll.u32 %s3833_s13, 4  ;;  %s489_s25 = int_to_ptr.vmem [resolvable:$true] %s488_s25  ;;  %s531_s23 = int_to_ptr.hbm [resolvable:$true] %s530_s23 }
  0x2f   : > { %s2943_s1 = smov [#allocation11]   ;;  %s2944_s15 = smov 128  }
  0x30   : > { %s532_s14 = sshll.u32 %s2943_s1, 4  ;;  %s2945_s27 = smov 8   ;;  %s533_s14 = int_to_ptr.vmem [resolvable:$true] %s532_s14 }
  0x31   : > { %s486_s17 = sshll.u32 %s3881_s26, 4  ;;  %568 = sbr.rel (%p3130_p10) target bundleno = 3125 (0xc35), region = 88  ;;  %s487_s17 = int_to_ptr.hbm [resolvable:$true] %s486_s17 }
  0x32   : > { %2589 = dma.hbm_to_vmem [thread:$0]  (!%p2587_p0), %s487_s17, 16, %s489_s25, [#allocation9]  }
  0x33   : > { %2592 = dma.hbm_to_vmem [thread:$0]  (!%p2587_p0), %s531_s23, 512, %s533_s14, [#allocation12], %s2944_s15, %s2944_s15, %s2945_s27  }
  0x36   : > { %2895 = dma.done.wait (%p3134_p12), [#allocation9], 16  }
  0x37   : > { %2897 = vsyncadd (%p3134_p12), [#allocation9], 4294967280 }
  0x38   : > { %2899 = dma.done.wait (%p3134_p12), [#allocation12], 512  }
  0x39   : > { %2901 = vsyncadd (%p3134_p12), [#allocation12], 4294966784  ;;  %p636_p1 = scmp.lt.s32.totalorder %s2928_s0, 1  ;;  %p638_p2 = scmp.lt.s32.totalorder %s2924_s30, 1  ;;  %vm648_vm0 = vcmask 261120   ;;  %v2946_v2 = vmov 32.0  }
  0x3a   : > { %s3882_s26 = sld [smem:[#allocation28_spill]]  ;;  %2699 = vrcp.f32 %v2946_v2  ;;  %s3180_s19 = sand.u32 1, %s2916_s28   ;;  %v2694_v35 = vld [vmem:[#allocation8] ss:$0 sm:$0xff]  ;;  %vm1145_vm5 = vcmask 7168   ;;  %v2950_v50 = vmov -inf  }
  0x3b   : > { %s637_s14 = scalar_select %p636_p1, %s2928_s0, 1  ;;  %1146 = vst.msk [vmem:[#allocation5] sm:$0xff] %vm1145_vm5, %v2950_v50  ;;  %v2951_v51 = vmov 0.0   ;;  %vm987_vm6 = vcmask 64512   ;;  %v2952_v54 = vmov 1983009808  }
  0x3c   : > { %s639_s15 = scalar_select %p638_p2, %s2924_s30, 1  ;;  %1147 = vst.msk [vmem:[#allocation5 + $0x8] sm:$0xff] %vm1145_vm5, %v2950_v50  ;;  %v733_v55 = vunpack.c.l.s4 %v2952_v54  ;;  %vm728_vm7 = vcmask 1047556   ;;  %v2953_v57 = vmov 1934713408  }
  0x3d   : > { %s2525_s17 = sshll.u32 %s637_s14, 1  ;;  %s2523_s16 = sshll.u32 %s3180_s19, 3  ;;  %1148 = vst.msk [vmem:[#allocation5 + $0x10] sm:$0xff] %vm1145_vm5, %v2950_v50  ;;  %v757_v58 = vunpack.c.l.s4 %v2953_v57 }
  0x3e   : > { %s641_s1 = sadd.s32 %s2525_s17, %s639_s15  ;;  %s2524_s25 = sshll.u32 %s3180_s19, 5  ;;  %1149 = vst.msk [vmem:[#allocation5 + $0x18] sm:$0xff] %vm1145_vm5, %v2950_v50  ;;  %v3258_v60 = vunpack.c.0.s8 %v733_v55 }
  0x3f   : > { %s2526_s2 = sshll.u32 %s641_s1, 3  ;;  %s3883_s5 = sld [smem:[#allocation33_spill]]  ;;  %1150 = vst.msk [vmem:[#allocation6] sm:$0xff] %vm1145_vm5, %v2951_v51 }
  0x40   : > { %s643_s22 = scalar_lea.vmem %s3882_s26, %s2526_s2  ;;  %v2700_v3 = vpop.eup %2699  ;;  %s3884_s3 = sld [smem:[#allocation31_spill]]  ;;  %1151 = vst.msk [vmem:[#allocation6 + $0x8] sm:$0xff] %vm1145_vm5, %v2951_v51 }
  0x41   : > { %v3170_v0 = vld [vmem:[%s643_s22] sm:$0xff]  ;;  %v653_v4 = vmul.f32 32.0, %v2700_v3  ;;  %vm657_vm1 = vweird.f32 %v2700_v3  ;;  %s3885_s7 = sld [smem:[#allocation35_spill]]  ;;  %s2947_s2 = smov 104   ;;  %1152 = vst.msk [vmem:[#allocation6 + $0x10] sm:$0xff] %vm1145_vm5, %v2951_v51 }
  0x42   : > { %v649_v1 = vsel %vm648_vm0, %v3170_v0, 0.0  ;;  %s3886_s27 = sld [smem:[#allocation30_spill]]  ;;  %s2948_s23 = smov 112   ;;  %1153 = vst.msk [vmem:[#allocation6 + $0x18] sm:$0xff] %vm1145_vm5, %v2951_v51 }
  0x43   : > { %650 = vadd.xlane.f32.xlu0 %v649_v1  ;;  %v654_v5 = vsub.f32 1.0, %v653_v4  ;;  %s3887_s6 = sld [smem:[#allocation34_spill]]  ;;  %s2949_s22 = smov 120   ;;  %1154 = vst.msk [vmem:[#allocation7] sm:$0xff] %vm987_vm6, %v2951_v51 }
  0x44   : > { %s3888_s4 = sld [smem:[#allocation32_spill]]  ;;  %1155 = vst.msk [vmem:[#allocation7 + $0x8] sm:$0xff] %vm987_vm6, %v2951_v51  ;;  %s3314_s18 = sshll.u32 %s2924_s30, 3 }
  0x45   : > { %v655_v6 = vmul.f32 %v2700_v3, %v654_v5  ;;  %v689_v14 = vld [vmem:[%s3883_s5 + $0x18] sm:$0xff]  ;;  %v688_v17 = vld [vmem:[%s3883_s5 + $0x10] sm:$0xff]  ;;  %v687_v20 = vld [vmem:[%s3883_s5 + $0x8] sm:$0xff]  ;;  %s3889_s8 = sld [smem:[#allocation36_spill]]  ;;  %1156 = vst.msk [vmem:[#allocation7 + $0x10] sm:$0xff] %vm987_vm6, %v2951_v51  ;;  %s986_s21 = scalar_lea.vmem [#allocation2], %s3314_s18 }
  0x46   : > { %v841_v15 = vld [vmem:[%s3884_s3 + $0x18] sm:$0xff]  ;;  %709 = vmatpush.msra.mxu0 %v689_v14  ;;  %v840_v18 = vld [vmem:[%s3884_s3 + $0x10] sm:$0xff]  ;;  %v839_v21 = vld [vmem:[%s3884_s3 + $0x8] sm:$0xff]  ;;  %1157 = vst.msk [vmem:[#allocation7 + $0x18] sm:$0xff] %vm987_vm6, %v2951_v51  ;;  %s3433_s14 = scalar_lea.vmem [#allocation13], %s2523_s16  ;;  %s3437_s15 = scalar_lea.vmem [#allocation14], %s2524_s25 }
  0x47   : > { %v656_v7 = vadd.f32 %v2700_v3, %v655_v6  ;;  %v995_v16 = vld [vmem:[%s3885_s7 + $0x18] sm:$0xff]  ;;  %858 = vmatpush.msra.mxu1 %v841_v15  ;;  %v994_v19 = vld [vmem:[%s3885_s7 + $0x10] sm:$0xff]  ;;  %v993_v22 = vld [vmem:[%s3885_s7 + $0x8] sm:$0xff]  ;;  %p2531_p4 = scmp.lt.s32.totalorder %s2924_s30, 0 }
  0x48   : > { %1012 = vmatpush.msra.mxu2 %v995_v16  ;;  %710 = vmatpush.msra.mxu0 %v688_v17  ;;  %v686_v23 = vld [vmem:[%s3883_s5] sm:$0xff] }
  0x49   : > { %v3174_v8 = vsel %vm657_vm1, %v2700_v3, %v656_v7  ;;  %859 = vmatpush.msra.mxu1 %v840_v18  ;;  %v838_v24 = vld [vmem:[%s3884_s3] sm:$0xff] }
  0x4a   : > { %1013 = vmatpush.msra.mxu2 %v994_v19  ;;  %711 = vmatpush.msra.mxu0 %v687_v20  ;;  %v992_v25 = vld [vmem:[%s3885_s7] sm:$0xff] }
  0x4b   : > { %860 = vmatpush.msra.mxu1 %v839_v21  ;;  %v2695_v38 = vld [vmem:[%s3886_s27] ss:$0 sm:$0xff]  ;;  %s1140_s27 = scalar_lea.vmem [#allocation3], %s3314_s18 }
  0x4c   : > { %1014 = vmatpush.msra.mxu2 %v993_v22  ;;  %712 = vmatpush.msra.mxu0 %v686_v23  ;;  %v2696_v41 = vld [vmem:[%s3887_s6] ss:$0 sm:$0xff] }
  0x4d   : > { %861 = vmatpush.msra.mxu1 %v838_v24  ;;  %v2697_v42 = vld [vmem:[%s3888_s4] ss:$0 sm:$0xff] }
  0x4e   : > { %1015 = vmatpush.msra.mxu2 %v992_v25  ;;  %v2698_v47 = vld [vmem:[%s3889_s8] ss:$0 sm:$0xff] }
  0xb6   : > { %v651_v9 = vpop.xlane.xlu0 %650 }
  0xb7   : > { %v659_v10 = vmul.f32 %v3174_v8, %v651_v9 }
  0xb9   : > { %v660_v11 = vsub.f32 %v3170_v0, %v659_v10 }
  0xbb   : > { %v661_v12 = vmul.f32 %v660_v11, %v660_v11 }
  0xbd   : > { %v662_v13 = vsel %vm648_vm0, %v661_v12, 0.0  ;;  %v3269_v12 = vunpack.c.0.s8 %v757_v58 }
  0xbe   : > { %663 = vadd.xlane.f32.xlu0 %v662_v13 }
 0x131   : > { %v664_v26 = vpop.xlane.xlu0 %663 }
 0x132   : > { %v665_v27 = vmul.f32 %v664_v26, %v3174_v8 }
 0x134   : > { %v666_v28 = vadd.f32 1e-05, %v665_v27 }
 0x136   : > { %2701 = vrsqrt.f32 %v666_v28  ;;  %vm673_vm3 = vweird.f32 %v666_v28 }
 0x13c   : > { %v2702_v29 = vpop.eup %2701 }
 0x13d   : > { %v668_v30 = vmul.f32 %v2702_v29, %v666_v28  ;;  %vm674_vm2 = vweird.f32 %v2702_v29 }
 0x13e   : > { %vm675_vm4 = vmor %vm673_vm3, %vm674_vm2 }
 0x13f   : > { %v669_v31 = vmul.f32 %v2702_v29, %v668_v30 }
 0x141   : > { %v670_v32 = vmul.f32 0.5, %v669_v31 }
 0x143   : > { %v671_v33 = vsub.f32 1.5, %v670_v32 }
 0x145   : > { %v672_v34 = vmul.f32 %v2702_v29, %v671_v33 }
 0x147   : > { %v676_v36 = vsel %vm675_vm4, %v2702_v29, %v672_v34 }
 0x148   : > { %v677_v37 = vmul.f32 %v676_v36, %v660_v11 }
 0x14a   : > { %v681_v39 = vmul.f32 %v2694_v35, %v677_v37 }
 0x14c   : > { %v685_v40 = vadd.f32 %v2695_v38, %v681_v39 }
 0x14e   : > { %2528 = vmatmul.msk.f32.vlgmr.msra.gmra.mxu0 %vm648_vm0, %v685_v40  ;;  %2529 = vmatmul.msk.f32.vlgmr.msra.gmra.mxu1 %vm648_vm0, %v685_v40 }
 0x14f   : > { %2530 = vmatmul.msk.f32.vlgmr.msra.gmra.mxu2 %vm648_vm0, %v685_v40 }
 0x1cb   : > { %v714_v43 = vpop.f32.mrf.mxu0  ;;  %v863_v44 = vpop.f32.mrf.mxu1 }
 0x1cc   : > { %v3233_v45 = vadd.f32 %v2696_v41, %v714_v43  ;;  %v864_v46 = vadd.f32 %v2697_v42, %v863_v44 }
 0x1ce   : > { %873 = vrot.lane.b32.xlu0 %v864_v46, %s2947_s2  ;;  %870 = vrot.lane.b32.xlu1 %v864_v46, %s2948_s23  ;;  %v878_v59 = vrot.slane %v864_v46, 4  ;;  %v730_v61 = vrot.slane %v3233_v45, 4 }
 0x1cf   : > { %721 = vrot.lane.b32.xlu2 %v3233_v45, %s2948_s23 }
 0x1d2   : > { %v1017_v48 = vpop.f32.mrf.mxu2 }
 0x1d3   : > { %v3239_v49 = vadd.f32 %v2698_v47, %v1017_v48 }
 0x1d5   : > { %v1032_v28 = vrot.slane %v3239_v49, 4 }
 0x1d6   : > { %1024 = vrot.lane.b32.xlu1 %v3239_v49, %s2948_s23 }
 0x1d7   : > { %867 = vrot.lane.b32.xlu2 %v864_v46, %s2949_s22 }
 0x1de   : > { %1021 = vrot.lane.b32.xlu1 %v3239_v49, %s2949_s22 }
 0x1df   : > { %1027 = vrot.lane.b32.xlu2 %v3239_v49, %s2947_s2 }
 0x1e6   : > { %718 = vrot.lane.b32.xlu1 %v3233_v45, %s2949_s22 }
 0x1e7   : > { %724 = vrot.lane.b32.xlu2 %v3233_v45, %s2947_s2 }
 0x229   : > { %v722_v52 = vpop.permute.xlu2 %721 }
 0x22a   : > { %v731_v5 = vsel %vm728_vm7, %v722_v52, %v730_v61  ;;  %v727_v9 = vrot.slane %v722_v52, 4 }
 0x22b   : > { %v3275_v18 = vperm.slane %v731_v5, %v3258_v60 }
 0x22c   : > { %v729_v23 = vsel %vm728_vm7, %v727_v9, %v3233_v45 }
 0x22d   : > { %v3289_v34 = vperm.slane %v729_v23, %v3258_v60  ;;  %v766_v35 = vrot.slane %v3275_v18, 4 }
 0x22f   : > { %v754_v58 = vrot.slane %v3289_v34, 4 }
 0x231   : > { %v868_v53 = vpop.permute.xlu2 %867 }
 0x232   : > { %v890_v56 = vrot.slane %v868_v53, 4 }
 0x239   : > { %v3266_v10 = vpop.permute.xlu2 %1027 }
 0x23a   : > { %v1042_v41 = vrot.slane %v3266_v10, 4 }
 0x240   : > { %v874_v62 = vpop.permute.xlu0 %873  ;;  %v871_v63 = vpop.permute.xlu1 %870 }
 0x241   : > { %v888_v1 = vrot.slane %v874_v62, 4  ;;  %v891_v2 = vsel %vm728_vm7, %v874_v62, %v890_v56  ;;  %v876_v3 = vrot.slane %v871_v63, 4  ;;  %v879_v4 = vsel %vm728_vm7, %v871_v63, %v878_v59  ;;  %v3302_v50 = vpop.permute.xlu2 %724 }
 0x242   : > { %v899_v6 = vperm.slane %v891_v2, %v3258_v60  ;;  %v887_v7 = vperm.slane %v879_v4, %v3258_v60  ;;  %v740_v62 = vrot.slane %v3302_v50, 4 }
 0x243   : > { %v889_v11 = vsel %vm728_vm7, %v888_v1, %v868_v53  ;;  %v877_v13 = vsel %vm728_vm7, %v876_v3, %v864_v46 }
 0x244   : > { %v895_v14 = vperm.slane %v889_v11, %v3258_v60  ;;  %v912_v15 = vrot.slane %v899_v6, 4  ;;  %v883_v16 = vperm.slane %v877_v13, %v3258_v60  ;;  %v914_v17 = vrot.slane %v887_v7, 4 }
 0x246   : > { %v900_v19 = vrot.slane %v895_v14, 4  ;;  %v902_v20 = vrot.slane %v883_v16, 4  ;;  %v913_v21 = vsel %vm728_vm7, %v912_v15, %v887_v7  ;;  %v915_v22 = vsel %vm728_vm7, %v899_v6, %v914_v17 }
 0x247   : > { %v919_v24 = vperm.slane %v913_v21, %v3269_v12  ;;  %v923_v25 = vperm.slane %v915_v22, %v3269_v12 }
 0x248   : > { %v901_v26 = vsel %vm728_vm7, %v900_v19, %v883_v16  ;;  %v903_v27 = vsel %vm728_vm7, %v895_v14, %v902_v20  ;;  %v1025_v29 = vpop.permute.xlu1 %1024 }
 0x249   : > { %v907_v30 = vperm.slane %v901_v26, %v3269_v12  ;;  %v911_v31 = vperm.slane %v903_v27, %v3269_v12  ;;  %v928_v32 = vrot.slane %v919_v24, 4  ;;  %v930_v33 = vrot.slane %v923_v25, 4 }
 0x24a   : > { %v1030_v36 = vrot.slane %v1025_v29, 4  ;;  %v1033_v40 = vsel %vm728_vm7, %v1025_v29, %v1032_v28 }
 0x24b   : > { %v924_v37 = vrot.slane %v907_v30, 4  ;;  %v926_v38 = vrot.slane %v911_v31, 4  ;;  %v931_v39 = vsel %vm728_vm7, 0.0, %v930_v33  ;;  %v943_v42 = vsel %vm728_vm7, %v930_v33, %v919_v24 }
 0x24c   : > { %v948_v43 = vrot.slane %v931_v39, 4  ;;  %v1031_v44 = vsel %vm728_vm7, %v1030_v36, %v3239_v49  ;;  %v929_v46 = vsel %vm728_vm7, 0.0, %v928_v32  ;;  %v947_v48 = vperm.slane %v943_v42, %v3258_v60 }
 0x24d   : > { %v927_v45 = vsel %vm728_vm7, 0.0, %v926_v38  ;;  %v932_v47 = vsel %vm728_vm7, %v926_v38, %v907_v30  ;;  %v1041_v54 = vperm.slane %v1033_v40, %v3258_v60  ;;  %v925_v49 = vsel %vm728_vm7, 0.0, %v924_v37 }
 0x24e   : > { %v936_v51 = vperm.slane %v932_v47, %v3258_v60  ;;  %v937_v52 = vrot.slane %v927_v45, 4  ;;  %v949_v53 = vsel %vm728_vm7, %v948_v43, %v929_v46  ;;  %v968_v56 = vrot.slane %v947_v48, 4 }
 0x24f   : > { %v953_v55 = vperm.slane %v949_v53, %v3258_v60  ;;  %v1037_v57 = vperm.slane %v1031_v44, %v3258_v60  ;;  %v1068_v6 = vrot.slane %v1041_v54, 4 }
 0x250   : > { %v938_v59 = vsel %vm728_vm7, %v937_v52, %v925_v49  ;;  %v956_v61 = vrot.slane %v936_v51, 4  ;;  %v1022_v63 = vpop.permute.xlu1 %1021 }
 0x251   : > { %v942_v1 = vperm.slane %v938_v59, %v3258_v60  ;;  %v966_v2 = vrot.slane %v953_v55, 4  ;;  %v969_v3 = vsel %vm728_vm7, %v953_v55, %v968_v56  ;;  %v1043_v4 = vsel %vm728_vm7, %v1042_v41, %v1022_v63 }
 0x252   : > { %v977_v5 = vperm.slane %v969_v3, %v3269_v12  ;;  %v1044_v7 = vrot.slane %v1022_v63, 4  ;;  %v1049_v9 = vperm.slane %v1043_v4, %v3258_v60  ;;  %v1056_v15 = vrot.slane %v1037_v57, 4 }
 0x253   : > { %v954_v11 = vrot.slane %v942_v1, 4  ;;  %v957_v13 = vsel %vm728_vm7, %v942_v1, %v956_v61  ;;  %v967_v14 = vsel %vm728_vm7, %v966_v2, %v947_v48 }
 0x254   : > { %v965_v16 = vperm.slane %v957_v13, %v3269_v12  ;;  %v973_v17 = vperm.slane %v967_v14, %v3269_v12  ;;  %v982_v19 = vrot.slane %v977_v5, 4  ;;  %v1045_v20 = vsel %vm728_vm7, %v3266_v10, %v1044_v7 }
 0x255   : > { %v955_v21 = vsel %vm728_vm7, %v954_v11, %v936_v51  ;;  %v1053_v22 = vperm.slane %v1045_v20, %v3258_v60  ;;  %v1054_v23 = vrot.slane %v1049_v9, 4  ;;  %v1057_v24 = vsel %vm728_vm7, %v1049_v9, %v1056_v15 }
 0x256   : > { %v961_v25 = vperm.slane %v955_v21, %v3269_v12  ;;  %v978_v26 = vrot.slane %v973_v17, 4  ;;  %v983_v27 = vsel %vm728_vm7, %v982_v19, %v965_v16  ;;  %v984_v28 = vrot.slane %v965_v16, 4 }
 0x257   : > { %990 = vst.msk [vmem:[%s986_s21 + $0x20] sm:$0xff] %vm987_vm6, %v983_v27  ;;  %v1055_v29 = vsel %vm728_vm7, %v1054_v23, %v1037_v57  ;;  %v1065_v10 = vperm.slane %v1057_v24, %v3269_v12  ;;  %v1066_v30 = vrot.slane %v1053_v22, 4  ;;  %v1069_v31 = vsel %vm728_vm7, %v1053_v22, %v1068_v6 }
 0x258   : > { %v979_v32 = vsel %vm728_vm7, %v978_v26, %v961_v25  ;;  %v980_v33 = vrot.slane %v961_v25, 4  ;;  %v985_v36 = vsel %vm728_vm7, %v977_v5, %v984_v28  ;;  %v1061_v37 = vperm.slane %v1055_v29, %v3269_v12  ;;  %v719_v38 = vpop.permute.xlu1 %718 }
 0x259   : > { %988 = vst.msk [vmem:[%s986_s21] sm:$0xff] %vm987_vm6, %v979_v32  ;;  %v1067_v39 = vsel %vm728_vm7, %v1066_v30, %v1041_v54  ;;  %v1077_v40 = vperm.slane %v1069_v31, %v3269_v12  ;;  %v1080_v41 = vrot.slane %v1065_v10, 4  ;;  %v741_v42 = vsel %vm728_vm7, %v740_v62, %v719_v38 }
 0x25a   : > { %v981_v43 = vsel %vm728_vm7, %v973_v17, %v980_v33  ;;  %991 = vst.msk [vmem:[%s986_s21 + $0x30] sm:$0xff] %vm987_vm6, %v985_v36  ;;  %v1073_v44 = vperm.slane %v1067_v39, %v3269_v12  ;;  %v1078_v45 = vrot.slane %v1061_v37, 4  ;;  %v742_v46 = vrot.slane %v719_v38, 4 }
 0x25b   : > { %989 = vst.msk [vmem:[%s986_s21 + $0x10] sm:$0xff] %vm987_vm6, %v981_v43  ;;  %v1081_v47 = vsel %vm728_vm7, 0.0, %v1080_v41  ;;  %v1084_v48 = vrot.slane %v1077_v40, 4  ;;  %v1086_v51 = vsel %vm728_vm7, %v1080_v41, %v1061_v37  ;;  %v747_v52 = vperm.slane %v741_v42, %v3258_v60 }
 0x25c   : > { %v1079_v53 = vsel %vm728_vm7, 0.0, %v1078_v45  ;;  %v1082_v54 = vrot.slane %v1073_v44, 4  ;;  %v1090_v49 = vperm.slane %v1086_v51, %v3258_v60  ;;  %v1091_v55 = vrot.slane %v1081_v47, 4 }
 0x25d   : > { %v1085_v56 = vsel %vm728_vm7, 0.0, %v1084_v48  ;;  %v1097_v57 = vsel %vm728_vm7, %v1084_v48, %v1073_v44  ;;  %v743_v59 = vsel %vm728_vm7, %v3302_v50, %v742_v46  ;;  %v752_v61 = vrot.slane %v747_v52, 4 }
 0x25e   : > { %v1083_v62 = vsel %vm728_vm7, 0.0, %v1082_v54  ;;  %v1092_v63 = vsel %vm728_vm7, %v1091_v55, %v1079_v53  ;;  %v1101_v1 = vperm.slane %v1097_v57, %v3258_v60  ;;  %v1102_v2 = vrot.slane %v1085_v56, 4 }
 0x25f   : > { %v1096_v3 = vperm.slane %v1092_v63, %v3258_v60  ;;  %v1110_v4 = vrot.slane %v1090_v49, 4  ;;  %v751_v5 = vperm.slane %v743_v59, %v3258_v60  ;;  %v753_v6 = vsel %vm728_vm7, %v752_v61, %v3289_v34 }
 0x260   : > { %v1103_v7 = vsel %vm728_vm7, %v1102_v2, %v1083_v62  ;;  %v1122_v9 = vrot.slane %v1101_v1, 4  ;;  %v755_v50 = vsel %vm728_vm7, %v747_v52, %v754_v58  ;;  %v759_v11 = vperm.slane %v753_v6, %v3269_v12 }
 0x261   : > { %v1107_v13 = vperm.slane %v1103_v7, %v3258_v60  ;;  %v1108_v14 = vrot.slane %v1096_v3, 4  ;;  %v1111_v15 = vsel %vm728_vm7, %v1096_v3, %v1110_v4  ;;  %v763_v16 = vperm.slane %v755_v50, %v3269_v12 }
 0x262   : > { %v1119_v17 = vperm.slane %v1111_v15, %v3269_v12  ;;  %v764_v19 = vrot.slane %v751_v5, 4  ;;  %v767_v20 = vsel %vm728_vm7, %v751_v5, %v766_v35  ;;  %v776_v21 = vrot.slane %v759_v11, 4 }
 0x263   : > { %v1109_v34 = vsel %vm728_vm7, %v1108_v14, %v1090_v49  ;;  %v1120_v58 = vrot.slane %v1107_v13, 4  ;;  %v1123_v22 = vsel %vm728_vm7, %v1107_v13, %v1122_v9  ;;  %v775_v23 = vperm.slane %v767_v20, %v3269_v12 }
 0x264   : > { %v1115_v24 = vperm.slane %v1109_v34, %v3269_v12  ;;  %v1131_v25 = vperm.slane %v1123_v22, %v3269_v12  ;;  %v1138_v26 = vrot.slane %v1119_v17, 4  ;;  %v765_v27 = vsel %vm728_vm7, %v764_v19, %v3275_v18 }
 0x265   : > { %v1121_v28 = vsel %vm728_vm7, %v1120_v58, %v1101_v1  ;;  %v771_v35 = vperm.slane %v765_v27, %v3269_v12  ;;  %v777_v29 = vsel %vm728_vm7, 0.0, %v776_v21  ;;  %v778_v10 = vrot.slane %v763_v16, 4 }
 0x266   : > { %v1127_v30 = vperm.slane %v1121_v28, %v3269_v12  ;;  %v1134_v31 = vrot.slane %v1115_v24, 4  ;;  %v1136_v32 = vrot.slane %v1131_v25, 4  ;;  %v1139_v33 = vsel %vm728_vm7, %v1131_v25, %v1138_v26 }
 0x267   : > { %1144 = vst.msk [vmem:[%s1140_s27 + $0x30] sm:$0xff] %vm987_vm6, %v1139_v33  ;;  %v779_v36 = vsel %vm728_vm7, 0.0, %v778_v10  ;;  %v780_v37 = vrot.slane %v771_v35, 4  ;;  %v782_v18 = vrot.slane %v775_v23, 4  ;;  %v784_v38 = vsel %vm728_vm7, %v778_v10, %v759_v11 }
 0x268   : > { %v1132_v39 = vrot.slane %v1127_v30, 4  ;;  %v1135_v40 = vsel %vm728_vm7, %v1127_v30, %v1134_v31  ;;  %v1137_v41 = vsel %vm728_vm7, %v1136_v32, %v1119_v17  ;;  %v788_v42 = vperm.slane %v784_v38, %v3258_v60 }
 0x269   : > { %1142 = vst.msk [vmem:[%s1140_s27 + $0x10] sm:$0xff] %vm987_vm6, %v1135_v40  ;;  %v781_v43 = vsel %vm728_vm7, 0.0, %v780_v37  ;;  %v783_v44 = vsel %vm728_vm7, 0.0, %v782_v18  ;;  %v789_v45 = vrot.slane %v779_v36, 4  ;;  %v795_v46 = vsel %vm728_vm7, %v782_v18, %v771_v35 }
 0x26a   : > { %v1133_v47 = vsel %vm728_vm7, %v1132_v39, %v1115_v24  ;;  %1143 = vst.msk [vmem:[%s1140_s27 + $0x20] sm:$0xff] %vm987_vm6, %v1137_v41  ;;  %v799_v48 = vperm.slane %v795_v46, %v3258_v60  ;;  %v800_v51 = vrot.slane %v783_v44, 4  ;;  %v808_v52 = vrot.slane %v788_v42, 4 }
 0x26b   : > { %1141 = vst.msk [vmem:[%s1140_s27] sm:$0xff] %vm987_vm6, %v1133_v47  ;;  %v790_v53 = vsel %vm728_vm7, %v789_v45, %v777_v29  ;;  %v1158_v54 = vlaneseq }
 0x26c   : > { %v794_v49 = vperm.slane %v790_v53, %v3258_v60  ;;  %v801_v55 = vsel %vm728_vm7, %v800_v51, %v781_v43  ;;  %v820_v56 = vrot.slane %v799_v48, 4 }
 0x26d   : > { %v805_v57 = vperm.slane %v801_v55, %v3258_v60  ;;  %v3407_v59 = vshrl.u32 %v1158_v54, 7  ;;  %v3409_v61 = vand.u32 127, %v1158_v54 }
 0x26e   : > { %v806_v62 = vrot.slane %v794_v49, 4  ;;  %v809_v63 = vsel %vm728_vm7, %v794_v49, %v808_v52 }
 0x26f   : > { %v817_v1 = vperm.slane %v809_v63, %v3269_v12  ;;  %v818_v2 = vrot.slane %v805_v57, 4  ;;  %v821_v3 = vsel %vm728_vm7, %v805_v57, %v820_v56 }
 0x270   : > { %v807_v4 = vsel %vm728_vm7, %v806_v62, %v788_v42  ;;  %v829_v5 = vperm.slane %v821_v3, %v3269_v12 }
 0x271   : > { %v813_v6 = vperm.slane %v807_v4, %v3269_v12  ;;  %v819_v7 = vsel %vm728_vm7, %v818_v2, %v799_v48  ;;  %v836_v9 = vrot.slane %v817_v1, 4 }
 0x272   : > { %v825_v50 = vperm.slane %v819_v7, %v3269_v12  ;;  %v834_v11 = vrot.slane %v829_v5, 4  ;;  %1165 = sbr.rel (%p2531_p4) target bundleno = 898 (0x382), region = 100 }
 0x273   : > { %v832_v13 = vrot.slane %v813_v6, 4  ;;  %v3420_v14 = vsel %vm728_vm7, %v829_v5, %v836_v9 }
 0x274   : > { %v830_v15 = vrot.slane %v825_v50, 4  ;;  %v3423_v16 = vsel %vm728_vm7, %v834_v11, %v817_v1 }
 0x275   : > { %v3426_v17 = vsel %vm728_vm7, %v825_v50, %v832_v13 }
 0x276   : > { %v3429_v19 = vsel %vm728_vm7, %v830_v15, %v813_v6 }
 0x277   : > { %v1168_v20 = vld [vmem:[#allocation2 + $0x20] sm:$0xff]  ;;  %v1169_v34 = vld [vmem:[#allocation2 + $0x30] sm:$0xff]  ;;  %v1278_v22 = vstv %s3314_s18  ;;  %v1288_v44 = vld [vmem:[#allocation5 + $0x8] sm:$0xff] }
 0x278   : > { %v1166_v21 = vld [vmem:[#allocation2] sm:$0xff]  ;;  %2536 = vmatpush.xpose.msk.msra.mxu2 %vm987_vm6, %v1168_v20  ;;  %v1167_v58 = vld [vmem:[#allocation2 + $0x10] sm:$0xff]  ;;  %2538 = vmatpush.xpose.msk.msra.mxu3 %vm987_vm6, %v1169_v34  ;;  %v1279_v23 = vadd.s32 %v1278_v22, %v3407_v59  ;;  %v1290_v48 = vld [vmem:[#allocation5 + $0x18] sm:$0xff] }
 0x279   : > { %2532 = vmatpush.xpose.msk.msra.mxu0 %vm987_vm6, %v1166_v21  ;;  %2534 = vmatpush.xpose.msk.msra.mxu1 %vm987_vm6, %v1167_v58  ;;  %v1287_v39 = vld [vmem:[#allocation5] sm:$0xff]  ;;  %v1289_v42 = vld [vmem:[#allocation5 + $0x10] sm:$0xff] }
 0x27a   : > { %vm1280_vm8 = vcmp.ge.s32.totalorder %v1279_v23, %v3409_v61 }
 0x27b   : > { %2537 = vmatmul.msk.f32.vlgmr.msra.gmra.mxu2 %vm987_vm6, %v3423_v16  ;;  %2539 = vmatmul.msk.f32.vlgmr.msra.gmra.mxu3 %vm987_vm6, %v3420_v14 }
 0x27c   : > { %2533 = vmatmul.msk.f32.vlgmr.msra.gmra.mxu0 %vm987_vm6, %v3429_v19  ;;  %2535 = vmatmul.msk.f32.vlgmr.msra.gmra.mxu1 %vm987_vm6, %v3426_v17 }
 0x2f9   : > { %v1193_v24 = vpop.f32.mrf.mxu0  ;;  %v1219_v26 = vpop.f32.mrf.mxu1 }
 0x2fa   : > { %v1274_v25 = vmul.f32 0.35355338, %v1193_v24  ;;  %v1275_v27 = vmul.f32 0.35355338, %v1219_v26 }
 0x2fc   : > { %v1283_v28 = vsel %vm1280_vm8, %v1274_v25, -1e+30  ;;  %v1284_v29 = vsel %vm1280_vm8, %v1275_v27, -1e+30 }
 0x2fd   : > { %v1291_v35 = vsel %vm987_vm6, %v1283_v28, -inf  ;;  %1311 = vst.msk [vmem:[#allocation4] sm:$0xff] %vm987_vm6, %v1283_v28  ;;  %v1294_v18 = vsel %vm987_vm6, %v1284_v29, -inf }
 0x2fe   : > { %1292 = vmax.xlane.f32.xlu0 %v1291_v35  ;;  %1312 = vst.msk [vmem:[#allocation4 + $0x8] sm:$0xff] %vm987_vm6, %v1284_v29  ;;  %v1245_v10 = vpop.f32.mrf.mxu2  ;;  %v1271_v31 = vpop.f32.mrf.mxu3 }
 0x2ff   : > { %v1276_v30 = vmul.f32 0.35355338, %v1245_v10  ;;  %v1277_v32 = vmul.f32 0.35355338, %v1271_v31 }
 0x301   : > { %v1285_v33 = vsel %vm1280_vm8, %v1276_v30, -1e+30  ;;  %v1286_v37 = vsel %vm1280_vm8, %v1277_v32, -1e+30 }
 0x302   : > { %v1297_v36 = vsel %vm987_vm6, %v1285_v33, -inf  ;;  %1313 = vst.msk [vmem:[#allocation4 + $0x10] sm:$0xff] %vm987_vm6, %v1285_v33  ;;  %v1300_v38 = vsel %vm987_vm6, %v1286_v37, -inf }
 0x303   : > { %1298 = vmax.xlane.f32.xlu1 %v1297_v36  ;;  %1314 = vst.msk [vmem:[#allocation4 + $0x18] sm:$0xff] %vm987_vm6, %v1286_v37 }
 0x306   : > { %1295 = vmax.xlane.f32.xlu0 %v1294_v18 }
 0x30b   : > { %1301 = vmax.xlane.f32.xlu1 %v1300_v38 }
 0x371   : > { %v1293_v40 = vpop.xlane.xlu0 %1292 }
 0x372   : > { %v1303_v41 = vmax.f32 %v1287_v39, %v1293_v40 }
 0x374   : > { %1307 = vst.msk [vmem:[#allocation5] sm:$0xff] %vm1145_vm5, %v1303_v41 }
 0x376   : > { %v1299_v43 = vpop.xlane.xlu1 %1298 }
 0x377   : > { %v1305_v45 = vmax.f32 %v1289_v42, %v1299_v43 }
 0x379   : > { %v1296_v46 = vpop.xlane.xlu0 %1295  ;;  %1309 = vst.msk [vmem:[#allocation5 + $0x10] sm:$0xff] %vm1145_vm5, %v1305_v45 }
 0x37a   : > { %v1304_v47 = vmax.f32 %v1288_v44, %v1296_v46 }
 0x37c   : > { %1308 = vst.msk [vmem:[#allocation5 + $0x8] sm:$0xff] %vm1145_vm5, %v1304_v47 }
 0x37e   : > { %v1302_v51 = vpop.xlane.xlu1 %1301 }
 0x37f   : > { %v1306_v52 = vmax.f32 %v1290_v48, %v1302_v51 }
 0x381   : > { %1310 = vst.msk [vmem:[#allocation5 + $0x18] sm:$0xff] %vm1145_vm5, %v1306_v52 }
 0x382 PF: > { %1318 = sbr.rel (%p638_p2) target bundleno = 1170 (0x492), region = 104 }
 0x387   : > { %v1321_v53 = vld [vmem:[#allocation2 + $0x28] sm:$0xff]  ;;  %v1322_v49 = vld [vmem:[#allocation2 + $0x38] sm:$0xff]  ;;  %v1431_v56 = vstv %s3314_s18  ;;  %v1433_v62 = vadd.s32 8, %v3409_v61  ;;  %v1443_v20 = vld [vmem:[#allocation5 + $0x10] sm:$0xff] }
 0x388   : > { %v1319_v54 = vld [vmem:[#allocation2 + $0x8] sm:$0xff]  ;;  %2545 = vmatpush.xpose.msk.msra.mxu2 %vm987_vm6, %v1321_v53  ;;  %v1320_v55 = vld [vmem:[#allocation2 + $0x18] sm:$0xff]  ;;  %2547 = vmatpush.xpose.msk.msra.mxu3 %vm987_vm6, %v1322_v49  ;;  %v1432_v57 = vadd.s32 %v1431_v56, %v3407_v59 }
 0x389   : > { %2541 = vmatpush.xpose.msk.msra.mxu0 %vm987_vm6, %v1319_v54  ;;  %2543 = vmatpush.xpose.msk.msra.mxu1 %vm987_vm6, %v1320_v55  ;;  %v1442_v34 = vld [vmem:[#allocation5 + $0x8] sm:$0xff]  ;;  %v1444_v24 = vld [vmem:[#allocation5 + $0x18] sm:$0xff] }
 0x38a   : > { %vm1434_vm9 = vcmp.ge.s32.totalorder %v1432_v57, %v1433_v62 }
 0x38b   : > { %2546 = vmatmul.msk.f32.vlgmr.msra.gmra.mxu2 %vm987_vm6, %v3423_v16  ;;  %2548 = vmatmul.msk.f32.vlgmr.msra.gmra.mxu3 %vm987_vm6, %v3420_v14  ;;  %v1441_v16 = vld [vmem:[#allocation5] sm:$0xff] }
 0x38c   : > { %2542 = vmatmul.msk.f32.vlgmr.msra.gmra.mxu0 %vm987_vm6, %v3429_v19  ;;  %2544 = vmatmul.msk.f32.vlgmr.msra.gmra.mxu1 %vm987_vm6, %v3426_v17 }
 0x409   : > { %v1346_v63 = vpop.f32.mrf.mxu0  ;;  %v1372_v2 = vpop.f32.mrf.mxu1 }
 0x40a   : > { %v1427_v1 = vmul.f32 0.35355338, %v1346_v63  ;;  %v1428_v3 = vmul.f32 0.35355338, %v1372_v2 }
 0x40c   : > { %v1437_v4 = vsel %vm1434_vm9, %v1427_v1, -1e+30  ;;  %v1438_v6 = vsel %vm1434_vm9, %v1428_v3, -1e+30 }
 0x40d   : > { %v1445_v5 = vsel %vm987_vm6, %v1437_v4, -inf  ;;  %1466 = vst.msk [vmem:[#allocation4 + $0x20] sm:$0xff] %vm987_vm6, %v1437_v4  ;;  %v1448_v14 = vsel %vm987_vm6, %v1438_v6, -inf }
 0x40e   : > { %1446 = vmax.xlane.f32.xlu0 %v1445_v5  ;;  %1467 = vst.msk [vmem:[#allocation4 + $0x28] sm:$0xff] %vm987_vm6, %v1438_v6  ;;  %v1398_v7 = vpop.f32.mrf.mxu2  ;;  %v1424_v9 = vpop.f32.mrf.mxu3 }
 0x40f   : > { %v1429_v59 = vmul.f32 0.35355338, %v1398_v7  ;;  %v1430_v61 = vmul.f32 0.35355338, %v1424_v9 }
 0x411   : > { %v1439_v50 = vsel %vm1434_vm9, %v1429_v59, -1e+30  ;;  %v1440_v13 = vsel %vm1434_vm9, %v1430_v61, -1e+30 }
 0x412   : > { %v1451_v11 = vsel %vm987_vm6, %v1439_v50, -inf  ;;  %1468 = vst.msk [vmem:[#allocation4 + $0x30] sm:$0xff] %vm987_vm6, %v1439_v50  ;;  %v1454_v15 = vsel %vm987_vm6, %v1440_v13, -inf }
 0x413   : > { %1452 = vmax.xlane.f32.xlu1 %v1451_v11  ;;  %1469 = vst.msk [vmem:[#allocation4 + $0x38] sm:$0xff] %vm987_vm6, %v1440_v13 }
 0x416   : > { %1449 = vmax.xlane.f32.xlu0 %v1448_v14 }
 0x41b   : > { %1455 = vmax.xlane.f32.xlu1 %v1454_v15 }
 0x481   : > { %v1447_v17 = vpop.xlane.xlu0 %1446 }
 0x482   : > { %v1457_v19 = vmax.f32 %v1441_v16, %v1447_v17 }
 0x484   : > { %1461 = vst.msk [vmem:[#allocation5] sm:$0xff] %vm1145_vm5, %v1457_v19 }
 0x486   : > { %v1453_v21 = vpop.xlane.xlu1 %1452 }
 0x487   : > { %v1459_v58 = vmax.f32 %v1443_v20, %v1453_v21 }
 0x489   : > { %v1450_v22 = vpop.xlane.xlu0 %1449  ;;  %1463 = vst.msk [vmem:[#allocation5 + $0x10] sm:$0xff] %vm1145_vm5, %v1459_v58 }
 0x48a   : > { %v1458_v23 = vmax.f32 %v1442_v34, %v1450_v22 }
 0x48c   : > { %1462 = vst.msk [vmem:[#allocation5 + $0x8] sm:$0xff] %vm1145_vm5, %v1458_v23 }
 0x48e   : > { %v1456_v25 = vpop.xlane.xlu1 %1455 }
 0x48f   : > { %v1460_v26 = vmax.f32 %v1444_v24, %v1456_v25 }
 0x491   : > { %1464 = vst.msk [vmem:[#allocation5 + $0x18] sm:$0xff] %vm1145_vm5, %v1460_v26 }
 0x492 PF: > { %1472 = sbr.rel (%p2531_p4) target bundleno = 1446 (0x5a6), region = 108 }
 0x497   : > { %v1479_v27 = vld [vmem:[#allocation5 + $0x10] sm:$0xff]  ;;  %v1477_v28 = vld [vmem:[#allocation5] sm:$0xff]  ;;  %v2954_v35 = vmov 0   ;;  %v1478_v10 = vld [vmem:[#allocation5 + $0x8] sm:$0xff] }
 0x498   : > { %2704 = vset.pattern.permute.xlu1 %v2954_v35  ;;  %2703 = vset.pattern.permute.xlu0 %v2954_v35  ;;  %v1480_v29 = vld [vmem:[#allocation5 + $0x18] sm:$0xff]  ;;  %v1539_v30 = vld [vmem:[#allocation3 + $0x20] sm:$0xff]  ;;  %v1538_v32 = vld [vmem:[#allocation3 + $0x10] sm:$0xff] }
 0x499   : > { %1493 = vperm.xlu0 %2703, %v1479_v27   ;;  %1483 = vperm.xlu1 %2704, %v1477_v28   ;;  %v1537_v31 = vld [vmem:[#allocation3] sm:$0xff]  ;;  %v1540_v33 = vld [vmem:[#allocation3 + $0x30] sm:$0xff]  ;;  %v1476_v43 = vld [vmem:[#allocation4 + $0x18] sm:$0xff] }
 0x49a   : > { %1609 = vmatpush.msra.mxu2 %v1539_v30  ;;  %1563 = vmatpush.msra.mxu0 %v1537_v31  ;;  %v1475_v36 = vld [vmem:[#allocation4 + $0x10] sm:$0xff]  ;;  %v1473_v37 = vld [vmem:[#allocation4] sm:$0xff]  ;;  %v1474_v44 = vld [vmem:[#allocation4 + $0x8] sm:$0xff] }
 0x49b   : > { %1586 = vmatpush.msra.mxu1 %v1538_v32  ;;  %1632 = vmatpush.msra.mxu3 %v1540_v33  ;;  %v1515_v1 = vld [vmem:[#allocation6 + $0x10] sm:$0xff]  ;;  %v1513_v2 = vld [vmem:[#allocation6] sm:$0xff]  ;;  %v1516_v7 = vld [vmem:[#allocation6 + $0x18] sm:$0xff] }
 0x49c   : > { %v1514_v59 = vld [vmem:[#allocation6 + $0x8] sm:$0xff]  ;;  %v1541_v61 = vld [vmem:[#allocation7] sm:$0xff]  ;;  %v1543_v16 = vld [vmem:[#allocation7 + $0x10] sm:$0xff] }
 0x49d   : > { %v1542_v20 = vld [vmem:[#allocation7 + $0x8] sm:$0xff]  ;;  %v1544_v58 = vld [vmem:[#allocation7 + $0x18] sm:$0xff] }
 0x4a1   : > { %1498 = vperm.xlu0 %2703, %v1480_v29   ;;  %1488 = vperm.xlu1 %2704, %v1478_v10  }
 0x50b   : > { %v1494_v18 = vpop.permute.xlu0 %1493  ;;  %v1484_v38 = vpop.permute.xlu1 %1483 }
 0x50c   : > { %v1503_v39 = vsub.f32 %v1475_v36, %v1494_v18  ;;  %v1501_v40 = vsub.f32 %v1473_v37, %v1484_v38 }
 0x50e   : > { %v1509_v41 = vmul.f32 1.442695, %v1503_v39  ;;  %v1505_v42 = vmul.f32 1.442695, %v1501_v40 }
 0x510   : > { %2705 = vpow2.f32 %v1509_v41 }
 0x511   : > { %2707 = vpow2.f32 %v1505_v42 }
 0x513   : > { %v1499_v45 = vpop.permute.xlu0 %1498  ;;  %v1489_v46 = vpop.permute.xlu1 %1488 }
 0x514   : > { %v1504_v47 = vsub.f32 %v1476_v43, %v1499_v45  ;;  %v1502_v48 = vsub.f32 %v1474_v44, %v1489_v46 }
 0x516   : > { %v2706_v51 = vpop.eup %2705  ;;  %v1511_v52 = vmul.f32 1.442695, %v1504_v47  ;;  %v1507_v53 = vmul.f32 1.442695, %v1502_v48 }
 0x517   : > { %v2708_v54 = vpop.eup %2707  ;;  %1647 = vst.msk [vmem:[#allocation4 + $0x10] sm:$0xff] %vm987_vm6, %v2706_v51  ;;  %2552 = vmatmul.msk.f32.vlgmr.msra.gmra.mxu2 %vm987_vm6, %v2706_v51  ;;  %v1523_v49 = vsel %vm987_vm6, %v2706_v51, 0.0 }
 0x518   : > { %1645 = vst.msk [vmem:[#allocation4] sm:$0xff] %vm987_vm6, %v2708_v54  ;;  %2709 = vpow2.f32 %v1511_v52  ;;  %1524 = vadd.xlane.f32.xlu0 %v1523_v49  ;;  %v1517_v55 = vsel %vm987_vm6, %v2708_v54, 0.0  ;;  %2550 = vmatmul.msk.f32.vlgmr.msra.gmra.mxu0 %vm987_vm6, %v2708_v54 }
 0x519   : > { %2711 = vpow2.f32 %v1507_v53  ;;  %1518 = vadd.xlane.f32.xlu2 %v1517_v55 }
 0x51e   : > { %v2710_v56 = vpop.eup %2709 }
 0x51f   : > { %v2712_v57 = vpop.eup %2711  ;;  %1648 = vst.msk [vmem:[#allocation4 + $0x18] sm:$0xff] %vm987_vm6, %v2710_v56  ;;  %2553 = vmatmul.msk.f32.vlgmr.msra.gmra.mxu3 %vm987_vm6, %v2710_v56  ;;  %v1526_v62 = vsel %vm987_vm6, %v2710_v56, 0.0 }
 0x520   : > { %1646 = vst.msk [vmem:[#allocation4 + $0x8] sm:$0xff] %vm987_vm6, %v2712_v57  ;;  %2551 = vmatmul.msk.f32.vlgmr.msra.gmra.mxu1 %vm987_vm6, %v2712_v57  ;;  %1527 = vadd.xlane.f32.xlu1 %v1526_v62  ;;  %v1520_v63 = vsel %vm987_vm6, %v2712_v57, 0.0 }
 0x521   : > { %1521 = vadd.xlane.f32.xlu2 %v1520_v63 }
 0x58b   : > { %v1525_v3 = vpop.xlane.xlu0 %1524 }
 0x58c   : > { %v1531_v4 = vadd.f32 %v1525_v3, %v1515_v1  ;;  %v1519_v5 = vpop.xlane.xlu2 %1518 }
 0x58d   : > { %v1529_v6 = vadd.f32 %v1519_v5, %v1513_v2 }
 0x58e   : > { %1535 = vst.msk [vmem:[#allocation6 + $0x10] sm:$0xff] %vm1145_vm5, %v1531_v4 }
 0x58f   : > { %1533 = vst.msk [vmem:[#allocation6] sm:$0xff] %vm1145_vm5, %v1529_v6 }
 0x593   : > { %v1528_v9 = vpop.xlane.xlu1 %1527 }
 0x594   : > { %v1532_v50 = vadd.f32 %v1528_v9, %v1516_v7  ;;  %v1522_v11 = vpop.xlane.xlu2 %1521 }
 0x595   : > { %v1530_v13 = vadd.f32 %v1522_v11, %v1514_v59  ;;  %v1565_v14 = vpop.f32.mrf.mxu0 }
 0x596   : > { %1536 = vst.msk [vmem:[#allocation6 + $0x18] sm:$0xff] %vm1145_vm5, %v1532_v50  ;;  %v1637_v15 = vadd.f32 %v1565_v14, %v1541_v61 }
 0x597   : > { %1534 = vst.msk [vmem:[#allocation6 + $0x8] sm:$0xff] %vm1145_vm5, %v1530_v13 }
 0x598   : > { %1641 = vst.msk [vmem:[#allocation7] sm:$0xff] %vm987_vm6, %v1637_v15 }
 0x59a   : > { %v1611_v17 = vpop.f32.mrf.mxu2 }
 0x59b   : > { %v1639_v19 = vadd.f32 %v1611_v17, %v1543_v16 }
 0x59d   : > { %1643 = vst.msk [vmem:[#allocation7 + $0x10] sm:$0xff] %vm987_vm6, %v1639_v19  ;;  %v1588_v21 = vpop.f32.mrf.mxu1 }
 0x59e   : > { %v1638_v34 = vadd.f32 %v1588_v21, %v1542_v20 }
 0x5a0   : > { %1642 = vst.msk [vmem:[#allocation7 + $0x8] sm:$0xff] %vm987_vm6, %v1638_v34 }
 0x5a2   : > { %v1634_v22 = vpop.f32.mrf.mxu3 }
 0x5a3   : > { %v1640_v23 = vadd.f32 %v1634_v22, %v1544_v58 }
 0x5a5   : > { %1644 = vst.msk [vmem:[#allocation7 + $0x18] sm:$0xff] %vm987_vm6, %v1640_v23 }
 0x5a6 PF: > { %1651 = sbr.rel (%p638_p2) target bundleno = 1722 (0x6ba), region = 112 }
 0x5ab   : > { %v1659_v24 = vld [vmem:[#allocation5 + $0x10] sm:$0xff]  ;;  %v1657_v25 = vld [vmem:[#allocation5] sm:$0xff]  ;;  %v2955_v26 = vmov 0   ;;  %v1660_v27 = vld [vmem:[#allocation5 + $0x18] sm:$0xff] }
 0x5ac   : > { %2714 = vset.pattern.permute.xlu1 %v2955_v26  ;;  %2713 = vset.pattern.permute.xlu0 %v2955_v26  ;;  %v1658_v28 = vld [vmem:[#allocation5 + $0x8] sm:$0xff]  ;;  %v1718_v10 = vld [vmem:[#allocation3 + $0x18] sm:$0xff]  ;;  %v1655_v31 = vld [vmem:[#allocation4 + $0x30] sm:$0xff] }
 0x5ad   : > { %1673 = vperm.xlu0 %2713, %v1659_v24   ;;  %1663 = vperm.xlu1 %2714, %v1657_v25   ;;  %v1719_v35 = vld [vmem:[#allocation3 + $0x28] sm:$0xff]  ;;  %v1720_v30 = vld [vmem:[#allocation3 + $0x38] sm:$0xff]  ;;  %v1653_v32 = vld [vmem:[#allocation4 + $0x20] sm:$0xff] }
 0x5ae   : > { %1789 = vmatpush.msra.mxu2 %v1719_v35  ;;  %v1717_v29 = vld [vmem:[#allocation3 + $0x8] sm:$0xff]  ;;  %1766 = vmatpush.msra.mxu1 %v1718_v10  ;;  %v1656_v40 = vld [vmem:[#allocation4 + $0x38] sm:$0xff]  ;;  %v1695_v57 = vld [vmem:[#allocation6 + $0x10] sm:$0xff] }
 0x5af   : > { %1743 = vmatpush.msra.mxu0 %v1717_v29  ;;  %1812 = vmatpush.msra.mxu3 %v1720_v30  ;;  %v1654_v41 = vld [vmem:[#allocation4 + $0x28] sm:$0xff]  ;;  %v1693_v62 = vld [vmem:[#allocation6] sm:$0xff]  ;;  %v1696_v4 = vld [vmem:[#allocation6 + $0x18] sm:$0xff] }
 0x5b0   : > { %v1694_v5 = vld [vmem:[#allocation6 + $0x8] sm:$0xff]  ;;  %v1721_v7 = vld [vmem:[#allocation7] sm:$0xff]  ;;  %v1723_v13 = vld [vmem:[#allocation7 + $0x10] sm:$0xff] }
 0x5b1   : > { %v1722_v16 = vld [vmem:[#allocation7 + $0x8] sm:$0xff]  ;;  %v1724_v20 = vld [vmem:[#allocation7 + $0x18] sm:$0xff] }
 0x5b5   : > { %1678 = vperm.xlu0 %2713, %v1660_v27   ;;  %1668 = vperm.xlu1 %2714, %v1658_v28  }
 0x61f   : > { %v1674_v33 = vpop.permute.xlu0 %1673  ;;  %v1664_v36 = vpop.permute.xlu1 %1663 }
 0x620   : > { %v1683_v37 = vsub.f32 %v1655_v31, %v1674_v33  ;;  %v1681_v18 = vsub.f32 %v1653_v32, %v1664_v36 }
 0x622   : > { %v1689_v38 = vmul.f32 1.442695, %v1683_v37  ;;  %v1685_v39 = vmul.f32 1.442695, %v1681_v18 }
 0x624   : > { %2715 = vpow2.f32 %v1689_v38 }
 0x625   : > { %2717 = vpow2.f32 %v1685_v39 }
 0x627   : > { %v1679_v42 = vpop.permute.xlu0 %1678  ;;  %v1669_v43 = vpop.permute.xlu1 %1668 }
 0x628   : > { %v1684_v44 = vsub.f32 %v1656_v40, %v1679_v42  ;;  %v1682_v45 = vsub.f32 %v1654_v41, %v1669_v43 }
 0x62a   : > { %v2716_v46 = vpop.eup %2715  ;;  %v1691_v47 = vmul.f32 1.442695, %v1684_v44  ;;  %v1687_v48 = vmul.f32 1.442695, %v1682_v45 }
 0x62b   : > { %v2718_v51 = vpop.eup %2717  ;;  %1827 = vst.msk [vmem:[#allocation4 + $0x30] sm:$0xff] %vm987_vm6, %v2716_v46  ;;  %2557 = vmatmul.msk.f32.vlgmr.msra.gmra.mxu2 %vm987_vm6, %v2716_v46  ;;  %v1703_v52 = vsel %vm987_vm6, %v2716_v46, 0.0 }
 0x62c   : > { %1825 = vst.msk [vmem:[#allocation4 + $0x20] sm:$0xff] %vm987_vm6, %v2718_v51  ;;  %2719 = vpow2.f32 %v1691_v47  ;;  %1704 = vadd.xlane.f32.xlu0 %v1703_v52  ;;  %v1697_v53 = vsel %vm987_vm6, %v2718_v51, 0.0  ;;  %2555 = vmatmul.msk.f32.vlgmr.msra.gmra.mxu0 %vm987_vm6, %v2718_v51 }
 0x62d   : > { %2721 = vpow2.f32 %v1687_v48  ;;  %1698 = vadd.xlane.f32.xlu2 %v1697_v53 }
 0x632   : > { %v2720_v54 = vpop.eup %2719 }
 0x633   : > { %v2722_v49 = vpop.eup %2721  ;;  %1828 = vst.msk [vmem:[#allocation4 + $0x38] sm:$0xff] %vm987_vm6, %v2720_v54  ;;  %2558 = vmatmul.msk.f32.vlgmr.msra.gmra.mxu3 %vm987_vm6, %v2720_v54  ;;  %v1706_v55 = vsel %vm987_vm6, %v2720_v54, 0.0 }
 0x634   : > { %1826 = vst.msk [vmem:[#allocation4 + $0x28] sm:$0xff] %vm987_vm6, %v2722_v49  ;;  %2556 = vmatmul.msk.f32.vlgmr.msra.gmra.mxu1 %vm987_vm6, %v2722_v49  ;;  %1707 = vadd.xlane.f32.xlu1 %v1706_v55  ;;  %v1700_v56 = vsel %vm987_vm6, %v2722_v49, 0.0 }
 0x635   : > { %1701 = vadd.xlane.f32.xlu2 %v1700_v56 }
 0x69f   : > { %v1705_v63 = vpop.xlane.xlu0 %1704 }
 0x6a0   : > { %v1711_v1 = vadd.f32 %v1705_v63, %v1695_v57  ;;  %v1699_v2 = vpop.xlane.xlu2 %1698 }
 0x6a1   : > { %v1709_v3 = vadd.f32 %v1699_v2, %v1693_v62 }
 0x6a2   : > { %1715 = vst.msk [vmem:[#allocation6 + $0x10] sm:$0xff] %vm1145_vm5, %v1711_v1 }
 0x6a3   : > { %1713 = vst.msk [vmem:[#allocation6] sm:$0xff] %vm1145_vm5, %v1709_v3 }
 0x6a7   : > { %v1708_v6 = vpop.xlane.xlu1 %1707 }
 0x6a8   : > { %v1712_v59 = vadd.f32 %v1708_v6, %v1696_v4  ;;  %v1702_v9 = vpop.xlane.xlu2 %1701 }
 0x6a9   : > { %v1710_v61 = vadd.f32 %v1702_v9, %v1694_v5  ;;  %v1745_v50 = vpop.f32.mrf.mxu0 }
 0x6aa   : > { %1716 = vst.msk [vmem:[#allocation6 + $0x18] sm:$0xff] %vm1145_vm5, %v1712_v59  ;;  %v1817_v11 = vadd.f32 %v1745_v50, %v1721_v7 }
 0x6ab   : > { %1714 = vst.msk [vmem:[#allocation6 + $0x8] sm:$0xff] %vm1145_vm5, %v1710_v61 }
 0x6ac   : > { %1821 = vst.msk [vmem:[#allocation7] sm:$0xff] %vm987_vm6, %v1817_v11 }
 0x6ae   : > { %v1791_v14 = vpop.f32.mrf.mxu2 }
 0x6af   : > { %v1819_v15 = vadd.f32 %v1791_v14, %v1723_v13 }
 0x6b1   : > { %1823 = vst.msk [vmem:[#allocation7 + $0x10] sm:$0xff] %vm987_vm6, %v1819_v15  ;;  %v1768_v17 = vpop.f32.mrf.mxu1 }
 0x6b2   : > { %v1818_v19 = vadd.f32 %v1768_v17, %v1722_v16 }
 0x6b4   : > { %1822 = vst.msk [vmem:[#allocation7 + $0x8] sm:$0xff] %vm987_vm6, %v1818_v19 }
 0x6b6   : > { %v1814_v21 = vpop.f32.mrf.mxu3 }
 0x6b7   : > { %v1820_v34 = vadd.f32 %v1814_v21, %v1724_v20 }
 0x6b9   : > { %1824 = vst.msk [vmem:[#allocation7 + $0x18] sm:$0xff] %vm987_vm6, %v1820_v34 }
 0x6ba PF: > { %v1829_v58 = vld [vmem:[#allocation6] sm:$0xff]  ;;  %v1830_v22 = vld [vmem:[#allocation6 + $0x8] sm:$0xff]  ;;  %v1831_v23 = vld [vmem:[#allocation6 + $0x10] sm:$0xff] }
 0x6bb   : > { %2723 = vrcp.f32 %v1829_v58  ;;  %v1832_v24 = vld [vmem:[#allocation6 + $0x18] sm:$0xff]  ;;  %v1842_v25 = vand.u32 2147483647, %v1829_v58  ;;  %v1844_v26 = vand.u32 2147483648, %v1829_v58  ;;  %v1859_v27 = vand.u32 2147483648, %v1830_v22 }
 0x6bc   : > { %2725 = vrcp.f32 %v1830_v22  ;;  %vm1838_vm10 = vweird.f32 %v1829_v58  ;;  %vm1853_vm11 = vweird.f32 %v1830_v22  ;;  %v1857_v10 = vand.u32 2147483647, %v1830_v22 }
 0x6bd   : > { %2727 = vrcp.f32 %v1831_v23  ;;  %vm3554_vm12 = vcmp.eq.f32.partialorder %v1842_v25, 8.507059e+37  ;;  %v1845_v32 = vor.u32 1.1754944e-38, %v1844_v26  ;;  %vm1868_vm13 = vweird.f32 %v1831_v23 }
 0x6be   : > { %2729 = vrcp.f32 %v1832_v24  ;;  %v1860_v37 = vor.u32 1.1754944e-38, %v1859_v27  ;;  %v1872_v40 = vand.u32 2147483647, %v1831_v23  ;;  %v1874_v41 = vand.u32 2147483648, %v1831_v23 }
 0x6bf   : > { %vm1883_vm3 = vweird.f32 %v1832_v24  ;;  %v1887_v47 = vand.u32 2147483647, %v1832_v24  ;;  %v1889_v48 = vand.u32 2147483648, %v1832_v24  ;;  %vm1858_vm8 = vcmp.eq.f32.partialorder %v1857_v10, 8.507059e+37 }
 0x6c0   : > { %v1875_v55 = vor.u32 1.1754944e-38, %v1874_v41 }
 0x6c1   : > { %v2724_v28 = vpop.eup %2723  ;;  %v1890_v2 = vor.u32 1.1754944e-38, %v1889_v48 }
 0x6c2   : > { %v2726_v35 = vpop.eup %2725  ;;  %v1834_v29 = vmul.f32 %v2724_v28, %v1829_v58  ;;  %vm1839_vm14 = vweird.f32 %v2724_v28 }
 0x6c3   : > { %v2728_v30 = vpop.eup %2727  ;;  %v1849_v33 = vmul.f32 %v2726_v35, %v1830_v22  ;;  %vm1854_vm15 = vweird.f32 %v2726_v35  ;;  %vm3559_vm2 = vmor %vm1838_vm10, %vm1839_vm14  ;;  %vm1873_vm10 = vcmp.eq.f32.partialorder %v1872_v40, 8.507059e+37 }
 0x6c4   : > { %v1835_v36 = vsub.f32 1.0, %v1834_v29  ;;  %v1864_v18 = vmul.f32 %v2728_v30, %v1831_v23  ;;  %v2730_v38 = vpop.eup %2729  ;;  %vm1869_vm1 = vweird.f32 %v2728_v30  ;;  %vm3564_vm4 = vmor %vm1853_vm11, %vm1854_vm15 }
 0x6c5   : > { %v1850_v39 = vsub.f32 1.0, %v1849_v33  ;;  %v1879_v44 = vmul.f32 %v2730_v38, %v1832_v24  ;;  %vm1884_vm5 = vweird.f32 %v2730_v38  ;;  %vm1870_vm9 = vmor %vm1868_vm13, %vm1869_vm1  ;;  %vm1888_vm13 = vcmp.eq.f32.partialorder %v1887_v47, 8.507059e+37 }
 0x6c6   : > { %v1836_v42 = vmul.f32 %v2724_v28, %v1835_v36  ;;  %v1865_v43 = vsub.f32 1.0, %v1864_v18  ;;  %vm1885_vm11 = vmor %vm1883_vm3, %vm1884_vm5 }
 0x6c7   : > { %v1851_v46 = vmul.f32 %v2726_v35, %v1850_v39  ;;  %v1880_v54 = vsub.f32 1.0, %v1879_v44 }
 0x6c8   : > { %v1837_v51 = vadd.f32 %v2724_v28, %v1836_v42  ;;  %v1866_v53 = vmul.f32 %v2728_v30, %v1865_v43 }
 0x6c9   : > { %v1852_v49 = vadd.f32 %v2726_v35, %v1851_v46  ;;  %v1881_v62 = vmul.f32 %v2730_v38, %v1880_v54 }
 0x6ca   : > { %v1841_v56 = vsel %vm3559_vm2, %v2724_v28, %v1837_v51  ;;  %v1867_v57 = vadd.f32 %v2728_v30, %v1866_v53  ;;  %1895 = sbr.rel (%p2531_p4) target bundleno = 1872 (0x750), region = 116 }
 0x6cb   : > { %v3573_v63 = vsel %vm3554_vm12, %v1845_v32, %v1841_v56  ;;  %v1856_v1 = vsel %vm3564_vm4, %v2726_v35, %v1852_v49  ;;  %v1882_v5 = vadd.f32 %v2730_v38, %v1881_v62 }
 0x6cc   : > { %v3578_v3 = vsel %vm1858_vm8, %v1860_v37, %v1856_v1  ;;  %v1871_v4 = vsel %vm1870_vm9, %v2728_v30, %v1867_v57 }
 0x6cd   : > { %v3580_v6 = vsel %vm1873_vm10, %v1875_v55, %v1871_v4  ;;  %v1886_v7 = vsel %vm1885_vm11, %v2730_v38, %v1882_v5 }
 0x6ce   : > { %v3582_v59 = vsel %vm1888_vm13, %v1890_v2, %v1886_v7 }
 0x6cf   : > { %v2956_v9 = vmov 0   ;;  %v1898_v61 = vld [vmem:[#allocation4 + $0x10] sm:$0xff]  ;;  %v1896_v50 = vld [vmem:[#allocation4] sm:$0xff]  ;;  %v1899_v16 = vld [vmem:[#allocation4 + $0x18] sm:$0xff] }
 0x6d0   : > { %2732 = vset.pattern.permute.xlu1 %v2956_v9  ;;  %2731 = vset.pattern.permute.xlu0 %v2956_v9  ;;  %v1897_v17 = vld [vmem:[#allocation4 + $0x8] sm:$0xff] }
 0x6d1   : > { %1912 = vperm.xlu1 %2732, %v3580_v6   ;;  %1902 = vperm.xlu0 %2731, %v3573_v63  }
 0x6d9   : > { %1917 = vperm.xlu1 %2732, %v3582_v59   ;;  %1907 = vperm.xlu0 %2731, %v3578_v3  }
 0x743   : > { %v1913_v11 = vpop.permute.xlu1 %1912  ;;  %v1903_v13 = vpop.permute.xlu0 %1902 }
 0x744   : > { %v1922_v14 = vmul.f32 %v1913_v11, %v1898_v61  ;;  %v1920_v15 = vmul.f32 %v1903_v13, %v1896_v50 }
 0x746   : > { %1926 = vst.msk [vmem:[%s3437_s15 + $0x10] sm:$0xff] %vm987_vm6, %v1922_v14 }
 0x747   : > { %1924 = vst.msk [vmem:[%s3437_s15] sm:$0xff] %vm987_vm6, %v1920_v15 }
 0x74b   : > { %v1918_v19 = vpop.permute.xlu1 %1917  ;;  %v1908_v20 = vpop.permute.xlu0 %1907 }
 0x74c   : > { %v1923_v21 = vmul.f32 %v1918_v19, %v1899_v16  ;;  %v1921_v34 = vmul.f32 %v1908_v20, %v1897_v17 }
 0x74e   : > { %1927 = vst.msk [vmem:[%s3437_s15 + $0x18] sm:$0xff] %vm987_vm6, %v1923_v21 }
 0x74f   : > { %1925 = vst.msk [vmem:[%s3437_s15 + $0x8] sm:$0xff] %vm987_vm6, %v1921_v34 }
 0x750 PF: > { %p2560_p5 = scmp.ge.s32.totalorder %s2924_s30, 0 }
 0x752   : > { %1931 = sbr.rel (%p2560_p5) target bundleno = 1884 (0x75c), region = 120 }
 0x757   : > { %v2957_v58 = vmov 0.0  }
 0x758   : > { %1932 = vst.msk [vmem:[%s3437_s15] sm:$0xff] %vm987_vm6, %v2957_v58 }
 0x759   : > { %1933 = vst.msk [vmem:[%s3437_s15 + $0x8] sm:$0xff] %vm987_vm6, %v2957_v58 }
 0x75a   : > { %1934 = vst.msk [vmem:[%s3437_s15 + $0x10] sm:$0xff] %vm987_vm6, %v2957_v58 }
 0x75b   : > { %1935 = vst.msk [vmem:[%s3437_s15 + $0x18] sm:$0xff] %vm987_vm6, %v2957_v58 }
 0x75c PF: > { %1938 = sbr.rel (%p638_p2) target bundleno = 2132 (0x854), region = 124  ;;  %s2959_s16 = smov (!%p638_p2), 8  }
 0x761   : > { %v2958_v22 = vmov 0   ;;  %v1942_v23 = vld [vmem:[#allocation4 + $0x30] sm:$0xff]  ;;  %v1940_v24 = vld [vmem:[#allocation4 + $0x20] sm:$0xff]  ;;  %v1943_v35 = vld [vmem:[#allocation4 + $0x38] sm:$0xff]  ;;  %vm1984_vm12 = vcmask 130112  }
 0x762   : > { %2734 = vset.pattern.permute.xlu1 %v2958_v22  ;;  %2733 = vset.pattern.permute.xlu0 %v2958_v22  ;;  %v1941_v29 = vld [vmem:[#allocation4 + $0x28] sm:$0xff] }
 0x763   : > { %1956 = vperm.xlu1 %2734, %v3580_v6   ;;  %1946 = vperm.xlu0 %2733, %v3573_v63  }
 0x76b   : > { %1961 = vperm.xlu1 %2734, %v3582_v59   ;;  %1951 = vperm.xlu0 %2733, %v3578_v3  }
 0x7d5   : > { %v1957_v25 = vpop.permute.xlu1 %1956  ;;  %v1947_v26 = vpop.permute.xlu0 %1946 }
 0x7d6   : > { %v1966_v27 = vmul.f32 %v1957_v25, %v1942_v23  ;;  %v1964_v28 = vmul.f32 %v1947_v26, %v1940_v24 }
 0x7d8   : > { %1976 = vrot.lane.b32.xlu0 %v1966_v27, %s2959_s16  ;;  %1972 = vrot.lane.b32.xlu2 %v1964_v28, %s2959_s16 }
 0x7dd   : > { %v1962_v10 = vpop.permute.xlu1 %1961  ;;  %v1952_v30 = vpop.permute.xlu0 %1951 }
 0x7de   : > { %v1967_v31 = vmul.f32 %v1962_v10, %v1943_v35  ;;  %v1965_v32 = vmul.f32 %v1952_v30, %v1941_v29 }
 0x7e0   : > { %1978 = vrot.lane.b32.xlu1 %v1967_v31, %s2959_s16  ;;  %1974 = vrot.lane.b32.xlu2 %v1965_v32, %s2959_s16 }
 0x832   : > { %v1973_v33 = vpop.permute.xlu2 %1972 }
 0x833   : > { %1985 = vst.msk [vmem:[%s3437_s15] sm:$0xff] %vm1984_vm12, %v1973_v33 }
 0x83a   : > { %v1975_v36 = vpop.permute.xlu2 %1974 }
 0x83b   : > { %1986 = vst.msk [vmem:[%s3437_s15 + $0x8] sm:$0xff] %vm1984_vm12, %v1975_v36 }
 0x84a   : > { %v1977_v37 = vpop.permute.xlu0 %1976 }
 0x84b   : > { %1987 = vst.msk [vmem:[%s3437_s15 + $0x10] sm:$0xff] %vm1984_vm12, %v1977_v37 }
 0x852   : > { %v1979_v18 = vpop.permute.xlu1 %1978 }
 0x853   : > { %1988 = vst.msk [vmem:[%s3437_s15 + $0x18] sm:$0xff] %vm1984_vm12, %v1979_v18 }
 0x854 PF: > { %p2562_p6 = scmp.ge.s32.totalorder %s2924_s30, 1 }
 0x856   : > { %1992 = sbr.rel (%p2562_p6) target bundleno = 2144 (0x860), region = 128 }
 0x85b   : > { %vm1993_vm14 = vcmask 130112   ;;  %v2960_v38 = vmov 0.0  }
 0x85c   : > { %1994 = vst.msk [vmem:[%s3437_s15] sm:$0xff] %vm1993_vm14, %v2960_v38 }
 0x85d   : > { %1995 = vst.msk [vmem:[%s3437_s15 + $0x8] sm:$0xff] %vm1993_vm14, %v2960_v38 }
 0x85e   : > { %1996 = vst.msk [vmem:[%s3437_s15 + $0x10] sm:$0xff] %vm1993_vm14, %v2960_v38 }
 0x85f   : > { %1997 = vst.msk [vmem:[%s3437_s15 + $0x18] sm:$0xff] %vm1993_vm14, %v2960_v38 }
 0x860 PF: > { %v2961_v39 = vmov 0   ;;  %v2001_v42 = vld [vmem:[#allocation7 + $0x18] sm:$0xff]  ;;  %v2000_v43 = vld [vmem:[#allocation7 + $0x10] sm:$0xff]  ;;  %v1999_v46 = vld [vmem:[#allocation7 + $0x8] sm:$0xff]  ;;  %s2962_s25 = smov 24   ;;  %s3852_s17 = smov 8  }
 0x861   : > { %2736 = vset.pattern.permute.xlu1 %v2961_v39  ;;  %2735 = vset.pattern.permute.xlu0 %v2961_v39  ;;  %v1998_v47 = vld [vmem:[#allocation7] sm:$0xff]  ;;  %s2964_s1 = smov 16   ;;  %s3896_s9 = sld [smem:[#allocation37_spill]]  ;;  %vm2151_vm15 = vcmask 195584  }
 0x862   : > { %2019 = vperm.xlu1 %2736, %v3582_v59   ;;  %2014 = vperm.xlu0 %2735, %v3580_v6   ;;  %s3897_s18 = sld [smem:[#allocation39_spill]]  ;;  %s2570_s27 = sshll.u32 %s2928_s0, 3 }
 0x863   : > { %s3898_s23 = sld [smem:[#allocation38_spill]]  ;;  %s2366_s16 = sadd.s32 %s2924_s30, %s2570_s27 }
 0x864   : > { %s3900_s2 = sld [smem:[#allocation42_spill]]  ;;  %s2369_s24 = sshll.u32 %s3437_s15, 4  ;;  %s2370_s24 = int_to_ptr.vmem [resolvable:$true] %s2369_s24 }
 0x865   : > { %s2340_s22 = scalar_lea.sflag [#allocation15], %s3180_s19 }
 0x86a   : > { %2009 = vperm.xlu1 %2736, %v3578_v3   ;;  %2004 = vperm.xlu0 %2735, %v3573_v63   ;;  %s2826_s27 = scalar_lea.hbm %s3900_s2, 128 }
 0x8d4   : > { %v2020_v40 = vpop.permute.xlu1 %2019  ;;  %v2015_v41 = vpop.permute.xlu0 %2014 }
 0x8d5   : > { %v2025_v44 = vmul.f32 %v2020_v40, %v2001_v42  ;;  %v2024_v45 = vmul.f32 %v2015_v41, %v2000_v43 }
 0x8d7   : > { %v2038_v52 = vrot.slane %v2025_v44, 4  ;;  %v2026_v53 = vrot.slane %v2024_v45, 4 }
 0x8dc   : > { %v2010_v48 = vpop.permute.xlu1 %2009  ;;  %v2005_v51 = vpop.permute.xlu0 %2004 }
 0x8dd   : > { %v2023_v54 = vmul.f32 %v2010_v48, %v1999_v46  ;;  %v2022_v49 = vmul.f32 %v2005_v51, %v1998_v47 }
 0x8df   : > { %v2039_v55 = vsel %vm728_vm7, %v2038_v52, %v2023_v54  ;;  %v2040_v56 = vrot.slane %v2023_v54, 4  ;;  %v2027_v57 = vsel %vm728_vm7, %v2026_v53, %v2022_v49  ;;  %v2028_v62 = vrot.slane %v2022_v49, 4  ;;  %v2155_v49 = vld [vmem:[%s3896_s9 + $0x10] sm:$0xff] }
 0x8e0   : > { %v2045_v63 = vperm.slane %v2039_v55, %v3258_v60  ;;  %v2033_v1 = vperm.slane %v2027_v57, %v3258_v60  ;;  %v2154_v55 = vld [vmem:[%s3896_s9 + $0x8] sm:$0xff] }
 0x8e1   : > { %v2041_v2 = vsel %vm728_vm7, %v2025_v44, %v2040_v56  ;;  %v2029_v3 = vsel %vm728_vm7, %v2024_v45, %v2028_v62  ;;  %v2153_v56 = vld [vmem:[%s3896_s9] sm:$0xff] }
 0x8e2   : > { %v2049_v4 = vperm.slane %v2041_v2, %v3258_v60  ;;  %v2050_v5 = vrot.slane %v2045_v63, 4  ;;  %v2037_v6 = vperm.slane %v2029_v3, %v3258_v60  ;;  %v2052_v7 = vrot.slane %v2033_v1, 4 }
 0x8e4   : > { %v2062_v59 = vrot.slane %v2049_v4, 4  ;;  %v2051_v9 = vsel %vm728_vm7, %v2050_v5, %v2033_v1  ;;  %v2053_v61 = vsel %vm728_vm7, %v2045_v63, %v2052_v7  ;;  %v2064_v50 = vrot.slane %v2037_v6, 4 }
 0x8e5   : > { %v2057_v11 = vperm.slane %v2051_v9, %v3269_v12  ;;  %v2061_v13 = vperm.slane %v2053_v61, %v3269_v12 }
 0x8e6   : > { %v2063_v14 = vsel %vm728_vm7, %v2062_v59, %v2037_v6  ;;  %v2065_v15 = vsel %vm728_vm7, %v2049_v4, %v2064_v50  ;;  %v2737_v4 = vld [vmem:[%s3830_s10] ss:$0 sm:$0xff] }
 0x8e7   : > { %v2069_v16 = vperm.slane %v2063_v14, %v3269_v12  ;;  %v2073_v17 = vperm.slane %v2065_v15, %v3269_v12  ;;  %v2074_v19 = vrot.slane %v2057_v11, 4  ;;  %v2076_v20 = vrot.slane %v2061_v13, 4  ;;  %v2220_v14 = vld [vmem:[#allocation11 + $0x18] sm:$0xff]  ;;  %v2219_v15 = vld [vmem:[#allocation11 + $0x10] sm:$0xff] }
 0x8e8   : > { %2240 = vmatpush.msra.mxu1 %v2220_v14 }
 0x8e9   : > { %v2077_v21 = vsel %vm728_vm7, 0.0, %v2076_v20  ;;  %v2080_v34 = vrot.slane %v2073_v17, 4  ;;  %v2082_v58 = vsel %vm728_vm7, %v2076_v20, %v2057_v11  ;;  %v2078_v24 = vrot.slane %v2069_v16, 4 }
 0x8ea   : > { %v2086_v22 = vperm.slane %v2082_v58, %v3258_v60  ;;  %v2087_v23 = vrot.slane %v2077_v21, 4  ;;  %v2075_v25 = vsel %vm728_vm7, 0.0, %v2074_v19  ;;  %2241 = vmatpush.msra.mxu1 %v2219_v15 }
 0x8eb   : > { %v2081_v26 = vsel %vm728_vm7, 0.0, %v2080_v34  ;;  %v2093_v27 = vsel %vm728_vm7, %v2080_v34, %v2069_v16  ;;  %v2079_v10 = vsel %vm728_vm7, 0.0, %v2078_v24  ;;  %v2218_v16 = vld [vmem:[#allocation11 + $0x8] sm:$0xff] }
 0x8ec   : > { %v2088_v28 = vsel %vm728_vm7, %v2087_v23, %v2075_v25  ;;  %v2097_v35 = vperm.slane %v2093_v27, %v3258_v60  ;;  %v2098_v29 = vrot.slane %v2081_v26, 4  ;;  %v2106_v31 = vrot.slane %v2086_v22, 4  ;;  %2242 = vmatpush.msra.mxu1 %v2218_v16  ;;  %v2738_v25 = vld [vmem:[%s3831_s11] ss:$0 sm:$0xff] }
 0x8ed   : > { %v2092_v30 = vperm.slane %v2088_v28, %v3258_v60 }
 0x8ee   : > { %v2099_v32 = vsel %vm728_vm7, %v2098_v29, %v2079_v10  ;;  %v2118_v33 = vrot.slane %v2097_v35, 4  ;;  %v2307_v29 = vld [vmem:[%s3897_s18 + $0x78] sm:$0xff]  ;;  %v2306_v10 = vld [vmem:[%s3897_s18 + $0x70] sm:$0xff] }
 0x8ef   : > { %v2103_v36 = vperm.slane %v2099_v32, %v3258_v60  ;;  %v2107_v37 = vsel %vm728_vm7, %v2092_v30, %v2106_v31  ;;  %v2104_v18 = vrot.slane %v2092_v30, 4  ;;  %2312 = vmatpush.msra.mxu2 %v2307_v29  ;;  %v2305_v30 = vld [vmem:[%s3897_s18 + $0x68] sm:$0xff]  ;;  %v2740_v31 = vld [vmem:[%s3898_s23] ss:$0 sm:$0xff] }
 0x8f0   : > { %v2115_v38 = vperm.slane %v2107_v37, %v3269_v12  ;;  %v2304_v32 = vld [vmem:[%s3897_s18 + $0x60] sm:$0xff] }
 0x8f1   : > { %v2119_v39 = vsel %vm728_vm7, %v2103_v36, %v2118_v33  ;;  %v2105_v40 = vsel %vm728_vm7, %v2104_v18, %v2086_v22  ;;  %v2116_v41 = vrot.slane %v2103_v36, 4  ;;  %2313 = vmatpush.msra.mxu2 %v2306_v10  ;;  %v2303_v33 = vld [vmem:[%s3897_s18 + $0x58] sm:$0xff]  ;;  %v2302_v36 = vld [vmem:[%s3897_s18 + $0x50] sm:$0xff] }
 0x8f2   : > { %v2127_v42 = vperm.slane %v2119_v39, %v3269_v12  ;;  %v2134_v43 = vrot.slane %v2115_v38, 4  ;;  %v2111_v44 = vperm.slane %v2105_v40, %v3269_v12  ;;  %v2300_v40 = vld [vmem:[%s3897_s18 + $0x40] sm:$0xff] }
 0x8f3   : > { %v2117_v45 = vsel %vm728_vm7, %v2116_v41, %v2097_v35  ;;  %2314 = vmatpush.msra.mxu2 %v2305_v30 }
 0x8f4   : > { %v2135_v46 = vsel %vm728_vm7, %v2127_v42, %v2134_v43  ;;  %v2123_v60 = vperm.slane %v2117_v45, %v3269_v12  ;;  %v2130_v47 = vrot.slane %v2111_v44, 4  ;;  %v2132_v53 = vrot.slane %v2127_v42, 4  ;;  %v2156_v12 = vld [vmem:[%s3896_s9 + $0x18] sm:$0xff] }
 0x8f5   : > { %2145 = vrot.lane.b32.xlu0 %v2135_v46, %s2962_s25  ;;  %2176 = vmatpush.msra.mxu0 %v2156_v12  ;;  %v2299_v42 = vld [vmem:[%s3897_s18 + $0x38] sm:$0xff]  ;;  %v2297_v46 = vld [vmem:[%s3897_s18 + $0x28] sm:$0xff]  ;;  %v2294_v12 = vld [vmem:[%s3897_s18 + $0x10] sm:$0xff]  ;;  %s2571_s25 = sshll.u32 %s2366_s16, 3 }
 0x8f6   : > { %v2131_v48 = vsel %vm728_vm7, %v2123_v60, %v2130_v47  ;;  %v2128_v51 = vrot.slane %v2123_v60, 4  ;;  %v2133_v54 = vsel %vm728_vm7, %v2132_v53, %v2115_v38  ;;  %2315 = vmatpush.msra.mxu2 %v2304_v32  ;;  %v2301_v38 = vld [vmem:[%s3897_s18 + $0x48] sm:$0xff]  ;;  %v2295_v53 = vld [vmem:[%s3897_s18 + $0x18] sm:$0xff]  ;;  %s2368_s23 = scalar_lea.hbm %s3900_s2, %s2571_s25 }
 0x8f7   : > { %2137 = vrot.lane.b32.xlu2 %v2131_v48, %s3852_s17  ;;  %2177 = vmatpush.msra.mxu0 %v2155_v49  ;;  %v2296_v48 = vld [vmem:[%s3897_s18 + $0x20] sm:$0xff]  ;;  %s2371_s26 = sshll.u32 %s2368_s23, 4  ;;  %s2372_s26 = int_to_ptr.hbm [resolvable:$true] %s2371_s26 }
 0x8f8   : > { %v2129_v52 = vsel %vm728_vm7, %v2128_v51, %v2111_v44  ;;  %vm2149_vm7 = vcmask 130048   ;;  %2316 = vmatpush.msra.mxu2 %v2303_v33  ;;  %v2298_v44 = vld [vmem:[%s3897_s18 + $0x30] sm:$0xff]  ;;  %s2820_s3 = sshra.s32 %s2372_s26, 4  ;;  %s2821_s3 = int_to_ptr.hbm [resolvable:$true] %s2820_s3 }
 0x8f9   : > { %2178 = vmatpush.msra.mxu0 %v2154_v55  ;;  %s2822_s4 = scalar_lea.hbm %s2821_s3, 32  ;;  %p2827_p11 = scmp.lt.s32.totalorder %s2821_s3, %s3900_s2 }
 0x8fa   : > { %2317 = vmatpush.msra.mxu2 %v2302_v36  ;;  %p2823_p7 = scmp.ne.s32.totalorder %s2821_s3, %s2822_s4  ;;  %p2828_p12 = scmp.lt.s32.totalorder %s2826_s27, %s2822_s4 }
 0x8fb   : > { %2179 = vmatpush.msra.mxu0 %v2153_v56  ;;  %v2293_v56 = vld [vmem:[%s3897_s18 + $0x8] sm:$0xff] }
 0x8fc   : > { %2318 = vmatpush.msra.mxu2 %v2301_v38  ;;  %p2824_p9 = pnand %p2823_p7, %p3114_p3  ;;  %p2829_p13 = por %p2828_p12, %p2827_p11 }
 0x8fe   : > { %2319 = vmatpush.msra.mxu2 %v2300_v40  ;;  %p2825_p10 = pneg %p2824_p9 }
 0x8ff   : > { %2141 = vrot.lane.b32.xlu2 %v2133_v54, %s2964_s1 }
 0x900   : > { %2320 = vmatpush.msra.mxu2 %v2299_v42  ;;  %p2830_p0 = pnand %p2829_p13, %p2825_p10 }
 0x902   : > { %2321 = vmatpush.msra.mxu2 %v2298_v44 }
 0x904   : > { %2322 = vmatpush.msra.mxu2 %v2297_v46 }
 0x906   : > { %2323 = vmatpush.msra.mxu2 %v2296_v48 }
 0x908   : > { %2324 = vmatpush.msra.mxu2 %v2295_v53 }
 0x90a   : > { %2325 = vmatpush.msra.mxu2 %v2294_v12 }
 0x90c   : > { %2326 = vmatpush.msra.mxu2 %v2293_v56 }
 0x951   : > { %v2138_v57 = vpop.permute.xlu2 %2137 }
 0x952   : > { %v2148_v63 = vsel %vm987_vm6, %v2129_v52, %v2138_v57 }
 0x959   : > { %v2142_v62 = vpop.permute.xlu2 %2141 }
 0x95a   : > { %v2150_v1 = vsel %vm2149_vm7, %v2148_v63, %v2142_v62  ;;  %v2292_v62 = vld [vmem:[%s3897_s18] sm:$0xff] }
 0x95b   : > { %2327 = vmatpush.msra.mxu2 %v2292_v62 }
 0x967   : > { %v2146_v2 = vpop.permute.xlu0 %2145 }
 0x968   : > { %v2152_v3 = vsel %vm2151_vm15, %v2150_v1, %v2146_v2 }
 0x969   : > { %2563 = vmatmul.msk.f32.vlgmr.msra.gmra.mxu0 %vm648_vm0, %v2152_v3 }
 0x9e6   : > { %v2181_v5 = vpop.f32.mrf.mxu0 }
 0x9e7   : > { %v2182_v6 = vadd.f32 %v2737_v4, %v2181_v5 }
 0x9e9   : > { %v3685_v7 = vadd.f32 %v2182_v6, %v3170_v0  ;;  %v2217_v0 = vld [vmem:[#allocation11] sm:$0xff] }
 0x9ea   : > { %2243 = vmatpush.msra.mxu1 %v2217_v0 }
 0x9eb   : > { %v2187_v59 = vsel %vm648_vm0, %v3685_v7, 0.0 }
 0x9ec   : > { %2188 = vadd.xlane.f32.xlu1 %v2187_v59 }
 0xa5f   : > { %v2189_v9 = vpop.xlane.xlu1 %2188 }
 0xa60   : > { %v2190_v61 = vmul.f32 %v2189_v9, %v3174_v8 }
 0xa62   : > { %v2191_v50 = vsub.f32 %v3685_v7, %v2190_v61 }
 0xa64   : > { %v2192_v11 = vmul.f32 %v2191_v50, %v2191_v50 }
 0xa66   : > { %v2193_v13 = vsel %vm648_vm0, %v2192_v11, 0.0 }
 0xa67   : > { %2194 = vadd.xlane.f32.xlu2 %v2193_v13 }
 0xada   : > { %v2195_v17 = vpop.xlane.xlu2 %2194 }
 0xadb   : > { %v2196_v19 = vmul.f32 %v2195_v17, %v3174_v8  ;;  %v2739_v8 = vld [vmem:[%s3832_s12] ss:$0 sm:$0xff] }
 0xadd   : > { %v2197_v20 = vadd.f32 1e-05, %v2196_v19 }
 0xadf   : > { %2742 = vrsqrt.f32 %v2197_v20  ;;  %vm2204_vm1 = vweird.f32 %v2197_v20 }
 0xae5   : > { %v2743_v21 = vpop.eup %2742 }
 0xae6   : > { %v2199_v34 = vmul.f32 %v2743_v21, %v2197_v20  ;;  %vm2205_vm6 = vweird.f32 %v2743_v21 }
 0xae7   : > { %vm2206_vm2 = vmor %vm2204_vm1, %vm2205_vm6 }
 0xae8   : > { %v2200_v58 = vmul.f32 %v2743_v21, %v2199_v34 }
 0xaea   : > { %v2201_v22 = vmul.f32 0.5, %v2200_v58 }
 0xaec   : > { %v2202_v23 = vsub.f32 1.5, %v2201_v22 }
 0xaee   : > { %v2203_v24 = vmul.f32 %v2743_v21, %v2202_v23 }
 0xaf0   : > { %v2207_v26 = vsel %vm2206_vm2, %v2743_v21, %v2203_v24 }
 0xaf1   : > { %v2208_v27 = vmul.f32 %v2207_v26, %v2191_v50 }
 0xaf3   : > { %v2212_v28 = vmul.f32 %v2738_v25, %v2208_v27 }
 0xaf5   : > { %v2216_v35 = vadd.f32 %v2739_v8, %v2212_v28 }
 0xaf7   : > { %2564 = vmatmul.msk.f32.vlgmr.msra.gmra.mxu1 %vm648_vm0, %v2216_v35 }
 0xb74   : > { %v2245_v37 = vpop.f32.mrf.mxu1 }
 0xb75   : > { %v2246_v18 = vadd.f32 %v2740_v31, %v2245_v37 }
 0xb77   : > { %v2249_v39 = vmul.f32 0.70710677, %v2246_v18  ;;  %v2248_v23 = vmul.f32 0.5, %v2246_v18 }
 0xb79   : > { %v2250_v41 = vmul.f32 %v2249_v39, %v2249_v39 }
 0xb7b   : > { %v2251_v43 = vmin.f32 %v2250_v41, 16.0 }
 0xb7d   : > { %v2252_v45 = vmul.f32 2.1237322e-06, %v2251_v43  ;;  %v2263_v60 = vmul.f32 3.8918573e-05, %v2251_v43 }
 0xb7f   : > { %v2253_v47 = vadd.f32 0.00028619796, %v2252_v45  ;;  %v2264_v51 = vadd.f32 0.001143296, %v2263_v60 }
 0xb81   : > { %v2254_v52 = vmul.f32 %v2253_v47, %v2251_v43  ;;  %v2265_v54 = vmul.f32 %v2264_v51, %v2251_v43 }
 0xb83   : > { %v2266_v49 = vadd.f32 0.014752088, %v2265_v54  ;;  %v2255_v55 = vadd.f32 0.0036580483, %v2254_v52 }
 0xb85   : > { %v2267_v57 = vmul.f32 %v2266_v49, %v2251_v43  ;;  %v2256_v1 = vmul.f32 %v2255_v55, %v2251_v43 }
 0xb87   : > { %v2268_v63 = vadd.f32 0.112945676, %v2267_v57  ;;  %v2257_v4 = vadd.f32 0.05243302, %v2256_v1 }
 0xb89   : > { %v2269_v2 = vmul.f32 %v2268_v63, %v2251_v43  ;;  %v2258_v59 = vmul.f32 %v2257_v4, %v2251_v43 }
 0xb8b   : > { %v2270_v3 = vadd.f32 0.4994258, %v2269_v2  ;;  %v2259_v9 = vadd.f32 0.18741608, %v2258_v59 }
 0xb8d   : > { %v2271_v5 = vmul.f32 %v2270_v3, %v2251_v43  ;;  %v2260_v50 = vmul.f32 %v2259_v9, %v2251_v43 }
 0xb8f   : > { %v2272_v6 = vadd.f32 1.0, %v2271_v5  ;;  %v2261_v15 = vadd.f32 1.1283791, %v2260_v50 }
 0xb91   : > { %2744 = vrcp.f32 %v2272_v6  ;;  %v2284_v14 = vand.u32 2147483648, %v2272_v6  ;;  %v2282_v0 = vand.u32 2147483647, %v2272_v6  ;;  %vm2278_vm4 = vweird.f32 %v2272_v6 }
 0xb92   : > { %v2262_v20 = vmul.f32 %v2261_v15, %v2249_v39 }
 0xb93   : > { %v2285_v19 = vor.u32 1.1754944e-38, %v2284_v14  ;;  %vm2283_vm8 = vcmp.eq.f32.partialorder %v2282_v0, 8.507059e+37 }
 0xb97   : > { %v2745_v61 = vpop.eup %2744 }
 0xb98   : > { %v2274_v11 = vmul.f32 %v2745_v61, %v2272_v6  ;;  %vm2279_vm3 = vweird.f32 %v2745_v61 }
 0xb99   : > { %vm2280_vm5 = vmor %vm2278_vm4, %vm2279_vm3 }
 0xb9a   : > { %v2275_v13 = vsub.f32 1.0, %v2274_v11 }
 0xb9c   : > { %v2276_v16 = vmul.f32 %v2745_v61, %v2275_v13 }
 0xb9e   : > { %v2277_v17 = vadd.f32 %v2745_v61, %v2276_v16 }
 0xba0   : > { %v2281_v21 = vsel %vm2280_vm5, %v2745_v61, %v2277_v17 }
 0xba1   : > { %v2286_v34 = vsel %vm2283_vm8, %v2285_v19, %v2281_v21 }
 0xba2   : > { %v2287_v58 = vmul.f32 %v2286_v34, %v2262_v20 }
 0xba4   : > { %v2565_v22 = vclamps-f32 %v2287_v58, 1.0 }
 0xba6   : > { %v2290_v24 = vadd.f32 1.0, %v2565_v22 }
 0xba8   : > { %v2291_v25 = vmul.f32 %v2290_v24, %v2248_v23 }
 0xbaa   : > { %2328 = vmatmul.f32.vlgmr.msra.gmra.mxu2 %v2291_v25 }
 0xbab   : > { %2833 = shalt.err (!%p2830_p0)
}
 0xbac   : > { %s2965_s15 = smov 128   ;;  %s2966_s25 = smov 256  }
 0xbad   : > { %s3901_s17 = smov 8   ;;  %s2568_s5 = sshll.u32 %s2928_s0, 1 }
 0xbae   : > { %2583 = dma.vmem_to_hbm [thread:$0]  (%p3114_p3), %s2370_s24, 512, %s2372_s26, %s2340_s22, %s2965_s15, %s2966_s25, %s3901_s17  }
 0xbaf   : > { %s2350_s6 = sadd.s32 %s2924_s30, %s2568_s5  ;;  %s3902_s4 = sld [smem:[#allocation40_spill]] }
 0xbb0   : > { %s2569_s1 = sshll.u32 %s2350_s6, 3  ;;  %s3903_s16 = sld [smem:[#allocation41_spill]] }
 0xbb1   : > { %s2354_s8 = sshll.u32 %s3433_s14, 4  ;;  %s2335_s30 = scalar_lea.sflag [#allocation10], %s3180_s19  ;;  %s2355_s8 = int_to_ptr.vmem [resolvable:$true] %s2354_s8 }
 0xbb5   : > { %v2741_v26 = vld [vmem:[%s3902_s4] ss:$0 sm:$0xff] }
 0xbb6   : > { %s2352_s2 = scalar_lea.hbm %s3903_s16, %s2569_s1  ;;  %s2854_s15 = scalar_lea.hbm %s3903_s16, 32 }
 0xbb7   : > { %s2356_s9 = sshll.u32 %s2352_s2, 4  ;;  %s2357_s9 = int_to_ptr.hbm [resolvable:$true] %s2356_s9 }
 0xbb8   : > { %s2848_s0 = sshra.s32 %s2357_s9, 4  ;;  %s2849_s0 = int_to_ptr.hbm [resolvable:$true] %s2848_s0 }
 0xbb9   : > { %s2850_s24 = scalar_lea.hbm %s2849_s0, 8  ;;  %p2855_p5 = scmp.lt.s32.totalorder %s2849_s0, %s3903_s16 }
 0xbba   : > { %p2851_p1 = scmp.ne.s32.totalorder %s2849_s0, %s2850_s24  ;;  %p2856_p6 = scmp.lt.s32.totalorder %s2854_s15, %s2850_s24 }
 0xbbc   : > { %p2852_p2 = pnand %p2851_p1, %p3114_p3  ;;  %p2857_p7 = por %p2856_p6, %p2855_p5 }
 0xbbe   : > { %p2853_p4 = pneg %p2852_p2 }
 0xbc0   : > { %p2858_p9 = pnand %p2857_p7, %p2853_p4 }
 0xc2d   : > { %v2329_v27 = vpop.f32.mrf.mxu2 }
 0xc2e   : > { %v2330_v8 = vadd.f32 %v2741_v26, %v2329_v27 }
 0xc30   : > { %v2332_v28 = vadd.f32 %v2330_v8, %v3685_v7 }
 0xc32   : > { %2333 = vst.msk [vmem:[%s3433_s14] sm:$0xff] %vm648_vm0, %v2332_v28 }
 0xc33   : > { %2861 = shalt.err (!%p2858_p9)
}
 0xc34   : > { %2582 = dma.vmem_to_hbm [thread:$0]  (%p3114_p3), %s2355_s8, 128, %s2357_s9, %s2335_s30  }
 0xc35 PF: > { %s3904_s19 = sld [smem:[#allocation23_spill]] }
 0xc36   : > { %s3905_s14 = sld [smem:[#allocation20_spill]] }
 0xc3b   : > { %p2604_p10 = scmp.ge.s32.totalorder %s3904_s19, 2 }
 0xc3c   : > { %s2386_s5 = sand.u32 1, %s3905_s14  }
 0xc3d   : > { %p2594_p11 = pnand %p2604_p10, %p3123_p8  ;;  %s2387_s6 = scalar_lea.sflag [#allocation10], %s2386_s5 }
 0xc3f   : > { %p2595_p12 = pneg %p2594_p11 }
 0xc41   : > { %2903 = dma.done.wait (%p2595_p12), %s2387_s6, 128  }
 0xc42   : > { %2905 = vsyncadd (%p2595_p12), %s2387_s6, 4294967168  ;;  %s2397_s1 = scalar_lea.sflag [#allocation15], %s2386_s5 }
 0xc43   : > { %2907 = dma.done.wait (%p2595_p12), %s2397_s1, 512  }
 0xc44   : > { %2909 = vsyncadd (%p2595_p12), %s2397_s1, 4294966784  ;;  %s37_s7 = sadd.s32 1, %s3904_s19   ;;  %s3907_s30 = sld [smem:[#allocation21_spill]] }
 0xc45   : > { %p34_p13 = scmp.ge.s32.totalorder %s37_s7, 6   ;;  %s3908_s0 = sld [smem:[#allocation22_spill]] }
 0xc46   : > { %s3909_s19 = sld [smem:[#allocation24_spill]]  ;;  %s3911_s27 = smov %s2916_s28 }
 0xc47   : > { %s3910_s1 = sld [smem:[#allocation26_spill]]  ;;  %s3912_s28 = smov %s2920_s29 }
 0xc48   : > { %s3913_s29 = smov %s3144_s20  ;;  %s3914_s20 = smov %s37_s7 }
 0xc49   :  { %36 = sbr.rel (!%p34_p13) target bundleno = 25 (0x19), region = 186 }
 0xc4e   :  { %2403 = vsyncpa [#allocation9], 1 }
 0xc4f   :  { %2405 = vsyncpa [#allocation9 + $0x1], 1 }
 0xc50   :  { %2406 = vsyncpa [#allocation12], 1 }
 0xc51   :  { %2407 = vsyncpa [#allocation10], 1 }
 0xc52   :  { %2409 = vsyncpa [#allocation10 + $0x1], 1 }
 0xc53   :  { %2410 = vsyncpa [#allocation15], 1 }
 0xc54   :  { %2412 = vsyncpa [#allocation15 + $0x1], 1 }

// kernel: tpu_custom_call.1
= control target key start
LH: loop header
LB: loop body
LE: loop exit
PB: predicated region body
PF: predicated region fallthrough
CT: control target
= control target key end

     0   :  { %s3820_s0 = inlined_call_operand.vmem [shape: f32[2,16,32], index: 0, kind: input, shape index: {}]   ;;  %s3821_s1 = inlined_call_operand.hbm [shape: f32[1,32], index: 1, kind: input, shape index: {}]   ;;  %s3822_s2 = inlined_call_operand.vmem [shape: f32[1,32], index: 2, kind: input, shape index: {}]   ;;  %s3823_s3 = inlined_call_operand.vmem [shape: f32[32,32], index: 3, kind: input, shape index: {}]   ;;  %s3824_s4 = inlined_call_operand.vmem [shape: f32[1,32], index: 4, kind: input, shape index: {}]   ;;  %s3825_s5 = inlined_call_operand.vmem [shape: f32[32,32], index: 5, kind: input, shape index: {}]   ;;  %s3826_s6 = inlined_call_operand.vmem [shape: f32[1,32], index: 6, kind: input, shape index: {}]   ;;  %s3827_s7 = inlined_call_operand.vmem [shape: f32[32,32], index: 7, kind: input, shape index: {}]   ;;  %s3828_s8 = inlined_call_operand.vmem [shape: f32[1,32], index: 8, kind: input, shape index: {}]   ;;  %s3829_s9 = inlined_call_operand.vmem [shape: f32[32,32], index: 9, kind: input, shape index: {}]   ;;  %s3830_s10 = inlined_call_operand.vmem [shape: f32[1,32], index: 10, kind: input, shape index: {}]   ;;  %s3831_s11 = inlined_call_operand.vmem [shape: f32[1,32], index: 11, kind: input, shape index: {}]   ;;  %s3832_s12 = inlined_call_operand.vmem [shape: f32[1,32], index: 12, kind: input, shape index: {}]   ;;  %s3833_s13 = inlined_call_operand.hbm [shape: f32[32,128], index: 13, kind: input, shape index: {}]   ;;  %s3834_s14 = inlined_call_operand.vmem [shape: f32[1,128], index: 14, kind: input, shape index: {}]   ;;  %s3835_s15 = inlined_call_operand.vmem [shape: f32[128,32], index: 15, kind: input, shape index: {}]   ;;  %s3836_s16 = inlined_call_operand.vmem [shape: f32[1,32], index: 16, kind: input, shape index: {}]   ;;  %s3837_s17 = inlined_call_operand.hbm [shape: f32[2,16,32], index: 17, kind: output, shape index: {0}]   ;;  %s3838_s18 = inlined_call_operand.hbm [shape: f32[2,4,16,16], index: 18, kind: output, shape index: {1}]  }
   0x1   :  { %3854 = sst [smem:[#allocation28_spill]] %s3820_s0 }
   0x2   :  { %3855 = sst [smem:[#allocation29_spill]] %s3821_s1 }
   0x3   :  { %3856 = sst [smem:[#allocation30_spill]] %s3822_s2 }
   0x4   :  { %3857 = sst [smem:[#allocation31_spill]] %s3823_s3 }
   0x5   :  { %3858 = sst [smem:[#allocation32_spill]] %s3824_s4 }
   0x6   :  { %3859 = sst [smem:[#allocation33_spill]] %s3825_s5 }
   0x7   :  { %3860 = sst [smem:[#allocation34_spill]] %s3826_s6 }
   0x8   :  { %3861 = sst [smem:[#allocation35_spill]] %s3827_s7 }
   0x9   :  { %3862 = sst [smem:[#allocation36_spill]] %s3828_s8 }
   0xa   :  { %3863 = sst [smem:[#allocation37_spill]] %s3829_s9 }
   0xb   :  { %3864 = sst [smem:[#allocation38_spill]] %s3834_s14 }
   0xc   :  { %3865 = sst [smem:[#allocation39_spill]] %s3835_s15 }
   0xd   :  { %3866 = sst [smem:[#allocation40_spill]] %s3836_s16 }
   0xe   :  { %3867 = sst [smem:[#allocation41_spill]] %s3837_s17 }
   0xf   :  { %3868 = sst [smem:[#allocation42_spill]] %s3838_s18 }
  0x10   :  { %24 = vsyncpa [#allocation9], 0 }
  0x11   :  { %25 = vsyncpa [#allocation12], 0 }
  0x12   :  { %26 = vsyncpa [#allocation10], 0 }
  0x13   :  { %28 = vsyncpa [#allocation10 + $0x1], 0 }
  0x14   :  { %29 = vsyncpa [#allocation15], 0 }
  0x15   :  { %31 = vsyncpa [#allocation15 + $0x1], 0  ;;  %s3062_s27 = smov 0   ;;  %s3064_s28 = smov 0  }
  0x16   :  { %s3066_s29 = smov 0   ;;  %s3068_s30 = smov 0  }
  0x17   :  { %s3070_s0 = smov 0   ;;  %s3072_s19 = smov 0  }
  0x18   :  { %s3074_s1 = smov 0   ;;  %s3076_s20 = smov 0  }
  0x19 LB: > { %3869 = sst [smem:[#allocation20_spill]] %s2912_s27  ;;  %s2514_s21 = sadd.s32 4294967295, %s2940_s20   ;;  %s2940_s20 = sphi %s3076_s20, %s3914_s20   ;;  %s2936_s1 = sphi %s3074_s1, %s3910_s1   ;;  %s2932_s19 = sphi %s3072_s19, %s3909_s19   ;;  %s2928_s0 = sphi %s3070_s0, %s3908_s0   ;;  %s2924_s30 = sphi %s3068_s30, %s3907_s30   ;;  %s2920_s29 = sphi %s3066_s29, %s3913_s29   ;;  %s2916_s28 = sphi %s3064_s28, %s3912_s28   ;;  %s2912_s27 = sphi %s3062_s27, %s3911_s27  }
  0x1a   : > { %3870 = sst [smem:[#allocation21_spill]] %s2932_s19  ;;  %s2515_s22 = sadd.s32 4294967294, %s2940_s20  }
  0x1b   : > { %3871 = sst [smem:[#allocation22_spill]] %s2936_s1  ;;  %s46_s2 = sadd.s32 1, %s2932_s19 }
  0x1c   : > { %3872 = sst [smem:[#allocation23_spill]] %s2940_s20  ;;  %s49_s23 = sadd.s32 1, %s2936_s1 }
  0x1d   : > { %p47_p0 = scmp.ge.s32.totalorder %s46_s2, 2  ;;  %s422_s24 = sadd.s32 1, %s2920_s29 }
  0x1e   : > { %p432_p1 = scmp.ne.s32.totalorder %s2920_s29, %s2916_s28  ;;  %p433_p2 = scmp.eq.s32.totalorder %s2514_s21, 3 }
  0x1f   : > { %s3916_s2 = smov (%p47_p0, %s46_s2), 0  ;;  %s3918_s23 = smov (!%p47_p0, %s49_s23), %s2936_s1 }
  0x20   : > { %3873 = sst [smem:[#allocation24_spill]] %s3916_s2  ;;  %s418_s25 = ssub.s32 %s2932_s19, %s3916_s2 }
  0x21   : > { %p3114_p3 = por %p433_p2, %p432_p1  ;;  %p51_p4 = scmp.ge.s32.totalorder %s3918_s23, 2 }
  0x22   : > { %p438_p5 = scmp.ne.s32.totalorder %s2916_s28, %s2912_s27  ;;  %p439_p6 = scmp.eq.s32.totalorder %s2515_s22, 3 }
  0x23   : > { %s3874_s26 = scalar_select %p3114_p3, 1, 0 }
  0x24   : > { %p2516_p7 = scmp.ge.s32.totalorder %s2940_s20, 1  ;;  %s3920_s23 = smov (%p51_p4, %s3918_s23), 0 }
  0x25   : > { %3875 = sst [smem:[#allocation25_spill]] %s3874_s26  ;;  %p3123_p8 = por %p439_p6, %p438_p5 }
  0x26   : > { %3876 = sst [smem:[#allocation26_spill]] %s3920_s23  ;;  %p474_p9 = scmp.lt.s32.totalorder %s2940_s20, 5 }
  0x27   : > { %s3877_s17 = scalar_select %p3123_p8, 1, 0 }
  0x28   : > { %s417_s16 = ssub.s32 %s2936_s1, %s3920_s23  ;;  %p3130_p10 = pnand %p2516_p7, %p474_p9 }
  0x29   : > { %3878 = sst [smem:[#allocation27_spill]] %s3877_s17  ;;  %s419_s18 = sor.u32 %s418_s25, %s417_s16 }
  0x2a   : > { %p420_p11 = scmp.eq.s32.totalorder %s419_s18, 0  ;;  %p3134_p12 = scmp.eq.s32.totalorder %s2514_s21, 0 }
  0x2b   : > { %p2586_p13 = pneg %p3130_p10  ;;  %s3881_s26 = sld [smem:[#allocation29_spill]] }
  0x2c   : > { %s3144_s20 = scalar_select %p420_p11, %s2920_s29, %s422_s24  }
  0x2d   : > { %s2942_s16 = smov [#allocation8]   ;;  %p2587_p0 = pnand %p3134_p12, %p2586_p13 }
  0x2e   : > { %s488_s25 = sshll.u32 %s2942_s16, 4  ;;  %s530_s23 = sshll.u32 %s3833_s13, 4  ;;  %s489_s25 = int_to_ptr.vmem [resolvable:$true] %s488_s25  ;;  %s531_s23 = int_to_ptr.hbm [resolvable:$true] %s530_s23 }
  0x2f   : > { %s2943_s1 = smov [#allocation11]   ;;  %s2944_s15 = smov 128  }
  0x30   : > { %s532_s14 = sshll.u32 %s2943_s1, 4  ;;  %s2945_s27 = smov 8   ;;  %s533_s14 = int_to_ptr.vmem [resolvable:$true] %s532_s14 }
  0x31   : > { %s486_s17 = sshll.u32 %s3881_s26, 4  ;;  %568 = sbr.rel (%p3130_p10) target bundleno = 3125 (0xc35), region = 88  ;;  %s487_s17 = int_to_ptr.hbm [resolvable:$true] %s486_s17 }
  0x32   : > { %2589 = dma.hbm_to_vmem [thread:$0]  (!%p2587_p0), %s487_s17, 16, %s489_s25, [#allocation9]  }
  0x33   : > { %2592 = dma.hbm_to_vmem [thread:$0]  (!%p2587_p0), %s531_s23, 512, %s533_s14, [#allocation12], %s2944_s15, %s2944_s15, %s2945_s27  }
  0x36   : > { %2895 = dma.done.wait (%p3134_p12), [#allocation9], 16  }
  0x37   : > { %2897 = vsyncadd (%p3134_p12), [#allocation9], 4294967280 }
  0x38   : > { %2899 = dma.done.wait (%p3134_p12), [#allocation12], 512  }
  0x39   : > { %2901 = vsyncadd (%p3134_p12), [#allocation12], 4294966784  ;;  %p636_p1 = scmp.lt.s32.totalorder %s2928_s0, 1  ;;  %p638_p2 = scmp.lt.s32.totalorder %s2924_s30, 1  ;;  %vm648_vm0 = vcmask 261120   ;;  %v2946_v2 = vmov 32.0  }
  0x3a   : > { %s3882_s26 = sld [smem:[#allocation28_spill]]  ;;  %2699 = vrcp.f32 %v2946_v2  ;;  %s3180_s19 = sand.u32 1, %s2916_s28   ;;  %v2694_v35 = vld [vmem:[#allocation8] ss:$0 sm:$0xff]  ;;  %vm1145_vm5 = vcmask 7168   ;;  %v2950_v50 = vmov -inf  }
  0x3b   : > { %s637_s14 = scalar_select %p636_p1, %s2928_s0, 1  ;;  %1146 = vst.msk [vmem:[#allocation5] sm:$0xff] %vm1145_vm5, %v2950_v50  ;;  %v2951_v51 = vmov 0.0   ;;  %vm987_vm6 = vcmask 64512   ;;  %v2952_v54 = vmov 1983009808  }
  0x3c   : > { %s639_s15 = scalar_select %p638_p2, %s2924_s30, 1  ;;  %1147 = vst.msk [vmem:[#allocation5 + $0x8] sm:$0xff] %vm1145_vm5, %v2950_v50  ;;  %v733_v55 = vunpack.c.l.s4 %v2952_v54  ;;  %vm728_vm7 = vcmask 1047556   ;;  %v2953_v57 = vmov 1934713408  }
  0x3d   : > { %s2525_s17 = sshll.u32 %s637_s14, 1  ;;  %s2523_s16 = sshll.u32 %s3180_s19, 3  ;;  %1148 = vst.msk [vmem:[#allocation5 + $0x10] sm:$0xff] %vm1145_vm5, %v2950_v50  ;;  %v757_v58 = vunpack.c.l.s4 %v2953_v57 }
  0x3e   : > { %s641_s1 = sadd.s32 %s2525_s17, %s639_s15  ;;  %s2524_s25 = sshll.u32 %s3180_s19, 5  ;;  %1149 = vst.msk [vmem:[#allocation5 + $0x18] sm:$0xff] %vm1145_vm5, %v2950_v50  ;;  %v3258_v60 = vunpack.c.0.s8 %v733_v55 }
  0x3f   : > { %s2526_s2 = sshll.u32 %s641_s1, 3  ;;  %s3883_s5 = sld [smem:[#allocation33_spill]]  ;;  %1150 = vst.msk [vmem:[#allocation6] sm:$0xff] %vm1145_vm5, %v2951_v51 }
  0x40   : > { %s643_s22 = scalar_lea.vmem %s3882_s26, %s2526_s2  ;;  %v2700_v3 = vpop.eup %2699  ;;  %s3884_s3 = sld [smem:[#allocation31_spill]]  ;;  %1151 = vst.msk [vmem:[#allocation6 + $0x8] sm:$0xff] %vm1145_vm5, %v2951_v51 }
  0x41   : > { %v3170_v0 = vld [vmem:[%s643_s22] sm:$0xff]  ;;  %v653_v4 = vmul.f32 32.0, %v2700_v3  ;;  %vm657_vm1 = vweird.f32 %v2700_v3  ;;  %s3885_s7 = sld [smem:[#allocation35_spill]]  ;;  %s2947_s2 = smov 104   ;;  %1152 = vst.msk [vmem:[#allocation6 + $0x10] sm:$0xff] %vm1145_vm5, %v2951_v51 }
  0x42   : > { %v649_v1 = vsel %vm648_vm0, %v3170_v0, 0.0  ;;  %s3886_s27 = sld [smem:[#allocation30_spill]]  ;;  %s2948_s23 = smov 112   ;;  %1153 = vst.msk [vmem:[#allocation6 + $0x18] sm:$0xff] %vm1145_vm5, %v2951_v51 }
  0x43   : > { %650 = vadd.xlane.f32.xlu0 %v649_v1  ;;  %v654_v5 = vsub.f32 1.0, %v653_v4  ;;  %s3887_s6 = sld [smem:[#allocation34_spill]]  ;;  %s2949_s22 = smov 120   ;;  %1154 = vst.msk [vmem:[#allocation7] sm:$0xff] %vm987_vm6, %v2951_v51 }
  0x44   : > { %s3888_s4 = sld [smem:[#allocation32_spill]]  ;;  %1155 = vst.msk [vmem:[#allocation7 + $0x8] sm:$0xff] %vm987_vm6, %v2951_v51  ;;  %s3314_s18 = sshll.u32 %s2924_s30, 3 }
  0x45   : > { %v655_v6 = vmul.f32 %v2700_v3, %v654_v5  ;;  %v689_v14 = vld [vmem:[%s3883_s5 + $0x18] sm:$0xff]  ;;  %v688_v17 = vld [vmem:[%s3883_s5 + $0x10] sm:$0xff]  ;;  %v687_v20 = vld [vmem:[%s3883_s5 + $0x8] sm:$0xff]  ;;  %s3889_s8 = sld [smem:[#allocation36_spill]]  ;;  %1156 = vst.msk [vmem:[#allocation7 + $0x10] sm:$0xff] %vm987_vm6, %v2951_v51  ;;  %s986_s21 = scalar_lea.vmem [#allocation2], %s3314_s18 }
  0x46   : > { %v841_v15 = vld [vmem:[%s3884_s3 + $0x18] sm:$0xff]  ;;  %709 = vmatpush.msra.mxu0 %v689_v14  ;;  %v840_v18 = vld [vmem:[%s3884_s3 + $0x10] sm:$0xff]  ;;  %v839_v21 = vld [vmem:[%s3884_s3 + $0x8] sm:$0xff]  ;;  %1157 = vst.msk [vmem:[#allocation7 + $0x18] sm:$0xff] %vm987_vm6, %v2951_v51  ;;  %s3433_s14 = scalar_lea.vmem [#allocation13], %s2523_s16  ;;  %s3437_s15 = scalar_lea.vmem [#allocation14], %s2524_s25 }
  0x47   : > { %v656_v7 = vadd.f32 %v2700_v3, %v655_v6  ;;  %v995_v16 = vld [vmem:[%s3885_s7 + $0x18] sm:$0xff]  ;;  %858 = vmatpush.msra.mxu1 %v841_v15  ;;  %v994_v19 = vld [vmem:[%s3885_s7 + $0x10] sm:$0xff]  ;;  %v993_v22 = vld [vmem:[%s3885_s7 + $0x8] sm:$0xff]  ;;  %p2531_p4 = scmp.lt.s32.totalorder %s2924_s30, 0 }
  0x48   : > { %1012 = vmatpush.msra.mxu2 %v995_v16  ;;  %710 = vmatpush.msra.mxu0 %v688_v17  ;;  %v686_v23 = vld [vmem:[%s3883_s5] sm:$0xff] }
  0x49   : > { %v3174_v8 = vsel %vm657_vm1, %v2700_v3, %v656_v7  ;;  %859 = vmatpush.msra.mxu1 %v840_v18  ;;  %v838_v24 = vld [vmem:[%s3884_s3] sm:$0xff] }
  0x4a   : > { %1013 = vmatpush.msra.mxu2 %v994_v19  ;;  %711 = vmatpush.msra.mxu0 %v687_v20  ;;  %v992_v25 = vld [vmem:[%s3885_s7] sm:$0xff] }
  0x4b   : > { %860 = vmatpush.msra.mxu1 %v839_v21  ;;  %v2695_v38 = vld [vmem:[%s3886_s27] ss:$0 sm:$0xff]  ;;  %s1140_s27 = scalar_lea.vmem [#allocation3], %s3314_s18 }
  0x4c   : > { %1014 = vmatpush.msra.mxu2 %v993_v22  ;;  %712 = vmatpush.msra.mxu0 %v686_v23  ;;  %v2696_v41 = vld [vmem:[%s3887_s6] ss:$0 sm:$0xff] }
  0x4d   : > { %861 = vmatpush.msra.mxu1 %v838_v24  ;;  %v2697_v42 = vld [vmem:[%s3888_s4] ss:$0 sm:$0xff] }
  0x4e   : > { %1015 = vmatpush.msra.mxu2 %v992_v25  ;;  %v2698_v47 = vld [vmem:[%s3889_s8] ss:$0 sm:$0xff] }
  0xb6   : > { %v651_v9 = vpop.xlane.xlu0 %650 }
  0xb7   : > { %v659_v10 = vmul.f32 %v3174_v8, %v651_v9 }
  0xb9   : > { %v660_v11 = vsub.f32 %v3170_v0, %v659_v10 }
  0xbb   : > { %v661_v12 = vmul.f32 %v660_v11, %v660_v11 }
  0xbd   : > { %v662_v13 = vsel %vm648_vm0, %v661_v12, 0.0  ;;  %v3269_v12 = vunpack.c.0.s8 %v757_v58 }
  0xbe   : > { %663 = vadd.xlane.f32.xlu0 %v662_v13 }
 0x131   : > { %v664_v26 = vpop.xlane.xlu0 %663 }
 0x132   : > { %v665_v27 = vmul.f32 %v664_v26, %v3174_v8 }
 0x134   : > { %v666_v28 = vadd.f32 1e-05, %v665_v27 }
 0x136   : > { %2701 = vrsqrt.f32 %v666_v28  ;;  %vm673_vm3 = vweird.f32 %v666_v28 }
 0x13c   : > { %v2702_v29 = vpop.eup %2701 }
 0x13d   : > { %v668_v30 = vmul.f32 %v2702_v29, %v666_v28  ;;  %vm674_vm2 = vweird.f32 %v2702_v29 }
 0x13e   : > { %vm675_vm4 = vmor %vm673_vm3, %vm674_vm2 }
 0x13f   : > { %v669_v31 = vmul.f32 %v2702_v29, %v668_v30 }
 0x141   : > { %v670_v32 = vmul.f32 0.5, %v669_v31 }
 0x143   : > { %v671_v33 = vsub.f32 1.5, %v670_v32 }
 0x145   : > { %v672_v34 = vmul.f32 %v2702_v29, %v671_v33 }
 0x147   : > { %v676_v36 = vsel %vm675_vm4, %v2702_v29, %v672_v34 }
 0x148   : > { %v677_v37 = vmul.f32 %v676_v36, %v660_v11 }
 0x14a   : > { %v681_v39 = vmul.f32 %v2694_v35, %v677_v37 }
 0x14c   : > { %v685_v40 = vadd.f32 %v2695_v38, %v681_v39 }
 0x14e   : > { %2528 = vmatmul.msk.f32.vlgmr.msra.gmra.mxu0 %vm648_vm0, %v685_v40  ;;  %2529 = vmatmul.msk.f32.vlgmr.msra.gmra.mxu1 %vm648_vm0, %v685_v40 }
 0x14f   : > { %2530 = vmatmul.msk.f32.vlgmr.msra.gmra.mxu2 %vm648_vm0, %v685_v40 }
 0x1cb   : > { %v714_v43 = vpop.f32.mrf.mxu0  ;;  %v863_v44 = vpop.f32.mrf.mxu1 }
 0x1cc   : > { %v3233_v45 = vadd.f32 %v2696_v41, %v714_v43  ;;  %v864_v46 = vadd.f32 %v2697_v42, %v863_v44 }
 0x1ce   : > { %873 = vrot.lane.b32.xlu0 %v864_v46, %s2947_s2  ;;  %870 = vrot.lane.b32.xlu1 %v864_v46, %s2948_s23  ;;  %v878_v59 = vrot.slane %v864_v46, 4  ;;  %v730_v61 = vrot.slane %v3233_v45, 4 }
 0x1cf   : > { %721 = vrot.lane.b32.xlu2 %v3233_v45, %s2948_s23 }
 0x1d2   : > { %v1017_v48 = vpop.f32.mrf.mxu2 }
 0x1d3   : > { %v3239_v49 = vadd.f32 %v2698_v47, %v1017_v48 }
 0x1d5   : > { %v1032_v28 = vrot.slane %v3239_v49, 4 }
 0x1d6   : > { %1024 = vrot.lane.b32.xlu1 %v3239_v49, %s2948_s23 }
 0x1d7   : > { %867 = vrot.lane.b32.xlu2 %v864_v46, %s2949_s22 }
 0x1de   : > { %1021 = vrot.lane.b32.xlu1 %v3239_v49, %s2949_s22 }
 0x1df   : > { %1027 = vrot.lane.b32.xlu2 %v3239_v49, %s2947_s2 }
 0x1e6   : > { %718 = vrot.lane.b32.xlu1 %v3233_v45, %s2949_s22 }
 0x1e7   : > { %724 = vrot.lane.b32.xlu2 %v3233_v45, %s2947_s2 }
 0x229   : > { %v722_v52 = vpop.permute.xlu2 %721 }
 0x22a   : > { %v731_v5 = vsel %vm728_vm7, %v722_v52, %v730_v61  ;;  %v727_v9 = vrot.slane %v722_v52, 4 }
 0x22b   : > { %v3275_v18 = vperm.slane %v731_v5, %v3258_v60 }
 0x22c   : > { %v729_v23 = vsel %vm728_vm7, %v727_v9, %v3233_v45 }
 0x22d   : > { %v3289_v34 = vperm.slane %v729_v23, %v3258_v60  ;;  %v766_v35 = vrot.slane %v3275_v18, 4 }
 0x22f   : > { %v754_v58 = vrot.slane %v3289_v34, 4 }
 0x231   : > { %v868_v53 = vpop.permute.xlu2 %867 }
 0x232   : > { %v890_v56 = vrot.slane %v868_v53, 4 }
 0x239   : > { %v3266_v10 = vpop.permute.xlu2 %1027 }
 0x23a   : > { %v1042_v41 = vrot.slane %v3266_v10, 4 }
 0x240   : > { %v874_v62 = vpop.permute.xlu0 %873  ;;  %v871_v63 = vpop.permute.xlu1 %870 }
 0x241   : > { %v888_v1 = vrot.slane %v874_v62, 4  ;;  %v891_v2 = vsel %vm728_vm7, %v874_v62, %v890_v56  ;;  %v876_v3 = vrot.slane %v871_v63, 4  ;;  %v879_v4 = vsel %vm728_vm7, %v871_v63, %v878_v59  ;;  %v3302_v50 = vpop.permute.xlu2 %724 }
 0x242   : > { %v899_v6 = vperm.slane %v891_v2, %v3258_v60  ;;  %v887_v7 = vperm.slane %v879_v4, %v3258_v60  ;;  %v740_v62 = vrot.slane %v3302_v50, 4 }
 0x243   : > { %v889_v11 = vsel %vm728_vm7, %v888_v1, %v868_v53  ;;  %v877_v13 = vsel %vm728_vm7, %v876_v3, %v864_v46 }
 0x244   : > { %v895_v14 = vperm.slane %v889_v11, %v3258_v60  ;;  %v912_v15 = vrot.slane %v899_v6, 4  ;;  %v883_v16 = vperm.slane %v877_v13, %v3258_v60  ;;  %v914_v17 = vrot.slane %v887_v7, 4 }
 0x246   : > { %v900_v19 = vrot.slane %v895_v14, 4  ;;  %v902_v20 = vrot.slane %v883_v16, 4  ;;  %v913_v21 = vsel %vm728_vm7, %v912_v15, %v887_v7  ;;  %v915_v22 = vsel %vm728_vm7, %v899_v6, %v914_v17 }
 0x247   : > { %v919_v24 = vperm.slane %v913_v21, %v3269_v12  ;;  %v923_v25 = vperm.slane %v915_v22, %v3269_v12 }
 0x248   : > { %v901_v26 = vsel %vm728_vm7, %v900_v19, %v883_v16  ;;  %v903_v27 = vsel %vm728_vm7, %v895_v14, %v902_v20  ;;  %v1025_v29 = vpop.permute.xlu1 %1024 }
 0x249   : > { %v907_v30 = vperm.slane %v901_v26, %v3269_v12  ;;  %v911_v31 = vperm.slane %v903_v27, %v3269_v12  ;;  %v928_v32 = vrot.slane %v919_v24, 4  ;;  %v930_v33 = vrot.slane %v923_v25, 4 }
 0x24a   : > { %v1030_v36 = vrot.slane %v1025_v29, 4  ;;  %v1033_v40 = vsel %vm728_vm7, %v1025_v29, %v1032_v28 }
 0x24b   : > { %v924_v37 = vrot.slane %v907_v30, 4  ;;  %v926_v38 = vrot.slane %v911_v31, 4  ;;  %v931_v39 = vsel %vm728_vm7, 0.0, %v930_v33  ;;  %v943_v42 = vsel %vm728_vm7, %v930_v33, %v919_v24 }
 0x24c   : > { %v948_v43 = vrot.slane %v931_v39, 4  ;;  %v1031_v44 = vsel %vm728_vm7, %v1030_v36, %v3239_v49  ;;  %v929_v46 = vsel %vm728_vm7, 0.0, %v928_v32  ;;  %v947_v48 = vperm.slane %v943_v42, %v3258_v60 }
 0x24d   : > { %v927_v45 = vsel %vm728_vm7, 0.0, %v926_v38  ;;  %v932_v47 = vsel %vm728_vm7, %v926_v38, %v907_v30  ;;  %v1041_v54 = vperm.slane %v1033_v40, %v3258_v60  ;;  %v925_v49 = vsel %vm728_vm7, 0.0, %v924_v37 }
 0x24e   : > { %v936_v51 = vperm.slane %v932_v47, %v3258_v60  ;;  %v937_v52 = vrot.slane %v927_v45, 4  ;;  %v949_v53 = vsel %vm728_vm7, %v948_v43, %v929_v46  ;;  %v968_v56 = vrot.slane %v947_v48, 4 }
 0x24f   : > { %v953_v55 = vperm.slane %v949_v53, %v3258_v60  ;;  %v1037_v57 = vperm.slane %v1031_v44, %v3258_v60  ;;  %v1068_v6 = vrot.slane %v1041_v54, 4 }
 0x250   : > { %v938_v59 = vsel %vm728_vm7, %v937_v52, %v925_v49  ;;  %v956_v61 = vrot.slane %v936_v51, 4  ;;  %v1022_v63 = vpop.permute.xlu1 %1021 }
 0x251   : > { %v942_v1 = vperm.slane %v938_v59, %v3258_v60  ;;  %v966_v2 = vrot.slane %v953_v55, 4  ;;  %v969_v3 = vsel %vm728_vm7, %v953_v55, %v968_v56  ;;  %v1043_v4 = vsel %vm728_vm7, %v1042_v41, %v1022_v63 }
 0x252   : > { %v977_v5 = vperm.slane %v969_v3, %v3269_v12  ;;  %v1044_v7 = vrot.slane %v1022_v63, 4  ;;  %v1049_v9 = vperm.slane %v1043_v4, %v3258_v60  ;;  %v1056_v15 = vrot.slane %v1037_v57, 4 }
 0x253   : > { %v954_v11 = vrot.slane %v942_v1, 4  ;;  %v957_v13 = vsel %vm728_vm7, %v942_v1, %v956_v61  ;;  %v967_v14 = vsel %vm728_vm7, %v966_v2, %v947_v48 }
 0x254   : > { %v965_v16 = vperm.slane %v957_v13, %v3269_v12  ;;  %v973_v17 = vperm.slane %v967_v14, %v3269_v12  ;;  %v982_v19 = vrot.slane %v977_v5, 4  ;;  %v1045_v20 = vsel %vm728_vm7, %v3266_v10, %v1044_v7 }
 0x255   : > { %v955_v21 = vsel %vm728_vm7, %v954_v11, %v936_v51  ;;  %v1053_v22 = vperm.slane %v1045_v20, %v3258_v60  ;;  %v1054_v23 = vrot.slane %v1049_v9, 4  ;;  %v1057_v24 = vsel %vm728_vm7, %v1049_v9, %v1056_v15 }
 0x256   : > { %v961_v25 = vperm.slane %v955_v21, %v3269_v12  ;;  %v978_v26 = vrot.slane %v973_v17, 4  ;;  %v983_v27 = vsel %vm728_vm7, %v982_v19, %v965_v16  ;;  %v984_v28 = vrot.slane %v965_v16, 4 }
 0x257   : > { %990 = vst.msk [vmem:[%s986_s21 + $0x20] sm:$0xff] %vm987_vm6, %v983_v27  ;;  %v1055_v29 = vsel %vm728_vm7, %v1054_v23, %v1037_v57  ;;  %v1065_v10 = vperm.slane %v1057_v24, %v3269_v12  ;;  %v1066_v30 = vrot.slane %v1053_v22, 4  ;;  %v1069_v31 = vsel %vm728_vm7, %v1053_v22, %v1068_v6 }
 0x258   : > { %v979_v32 = vsel %vm728_vm7, %v978_v26, %v961_v25  ;;  %v980_v33 = vrot.slane %v961_v25, 4  ;;  %v985_v36 = vsel %vm728_vm7, %v977_v5, %v984_v28  ;;  %v1061_v37 = vperm.slane %v1055_v29, %v3269_v12  ;;  %v719_v38 = vpop.permute.xlu1 %718 }
 0x259   : > { %988 = vst.msk [vmem:[%s986_s21] sm:$0xff] %vm987_vm6, %v979_v32  ;;  %v1067_v39 = vsel %vm728_vm7, %v1066_v30, %v1041_v54  ;;  %v1077_v40 = vperm.slane %v1069_v31, %v3269_v12  ;;  %v1080_v41 = vrot.slane %v1065_v10, 4  ;;  %v741_v42 = vsel %vm728_vm7, %v740_v62, %v719_v38 }
 0x25a   : > { %v981_v43 = vsel %vm728_vm7, %v973_v17, %v980_v33  ;;  %991 = vst.msk [vmem:[%s986_s21 + $0x30] sm:$0xff] %vm987_vm6, %v985_v36  ;;  %v1073_v44 = vperm.slane %v1067_v39, %v3269_v12  ;;  %v1078_v45 = vrot.slane %v1061_v37, 4  ;;  %v742_v46 = vrot.slane %v719_v38, 4 }
 0x25b   : > { %989 = vst.msk [vmem:[%s986_s21 + $0x10] sm:$0xff] %vm987_vm6, %v981_v43  ;;  %v1081_v47 = vsel %vm728_vm7, 0.0, %v1080_v41  ;;  %v1084_v48 = vrot.slane %v1077_v40, 4  ;;  %v1086_v51 = vsel %vm728_vm7, %v1080_v41, %v1061_v37  ;;  %v747_v52 = vperm.slane %v741_v42, %v3258_v60 }
 0x25c   : > { %v1079_v53 = vsel %vm728_vm7, 0.0, %v1078_v45  ;;  %v1082_v54 = vrot.slane %v1073_v44, 4  ;;  %v1090_v49 = vperm.slane %v1086_v51, %v3258_v60  ;;  %v1091_v55 = vrot.slane %v1081_v47, 4 }
 0x25d   : > { %v1085_v56 = vsel %vm728_vm7, 0.0, %v1084_v48  ;;  %v1097_v57 = vsel %vm728_vm7, %v1084_v48, %v1073_v44  ;;  %v743_v59 = vsel %vm728_vm7, %v3302_v50, %v742_v46  ;;  %v752_v61 = vrot.slane %v747_v52, 4 }
 0x25e   : > { %v1083_v62 = vsel %vm728_vm7, 0.0, %v1082_v54  ;;  %v1092_v63 = vsel %vm728_vm7, %v1091_v55, %v1079_v53  ;;  %v1101_v1 = vperm.slane %v1097_v57, %v3258_v60  ;;  %v1102_v2 = vrot.slane %v1085_v56, 4 }
 0x25f   : > { %v1096_v3 = vperm.slane %v1092_v63, %v3258_v60  ;;  %v1110_v4 = vrot.slane %v1090_v49, 4  ;;  %v751_v5 = vperm.slane %v743_v59, %v3258_v60  ;;  %v753_v6 = vsel %vm728_vm7, %v752_v61, %v3289_v34 }
 0x260   : > { %v1103_v7 = vsel %vm728_vm7, %v1102_v2, %v1083_v62  ;;  %v1122_v9 = vrot.slane %v1101_v1, 4  ;;  %v755_v50 = vsel %vm728_vm7, %v747_v52, %v754_v58  ;;  %v759_v11 = vperm.slane %v753_v6, %v3269_v12 }
 0x261   : > { %v1107_v13 = vperm.slane %v1103_v7, %v3258_v60  ;;  %v1108_v14 = vrot.slane %v1096_v3, 4  ;;  %v1111_v15 = vsel %vm728_vm7, %v1096_v3, %v1110_v4  ;;  %v763_v16 = vperm.slane %v755_v50, %v3269_v12 }
 0x262   : > { %v1119_v17 = vperm.slane %v1111_v15, %v3269_v12  ;;  %v764_v19 = vrot.slane %v751_v5, 4  ;;  %v767_v20 = vsel %vm728_vm7, %v751_v5, %v766_v35  ;;  %v776_v21 = vrot.slane %v759_v11, 4 }
 0x263   : > { %v1109_v34 = vsel %vm728_vm7, %v1108_v14, %v1090_v49  ;;  %v1120_v58 = vrot.slane %v1107_v13, 4  ;;  %v1123_v22 = vsel %vm728_vm7, %v1107_v13, %v1122_v9  ;;  %v775_v23 = vperm.slane %v767_v20, %v3269_v12 }
 0x264   : > { %v1115_v24 = vperm.slane %v1109_v34, %v3269_v12  ;;  %v1131_v25 = vperm.slane %v1123_v22, %v3269_v12  ;;  %v1138_v26 = vrot.slane %v1119_v17, 4  ;;  %v765_v27 = vsel %vm728_vm7, %v764_v19, %v3275_v18 }
 0x265   : > { %v1121_v28 = vsel %vm728_vm7, %v1120_v58, %v1101_v1  ;;  %v771_v35 = vperm.slane %v765_v27, %v3269_v12  ;;  %v777_v29 = vsel %vm728_vm7, 0.0, %v776_v21  ;;  %v778_v10 = vrot.slane %v763_v16, 4 }
 0x266   : > { %v1127_v30 = vperm.slane %v1121_v28, %v3269_v12  ;;  %v1134_v31 = vrot.slane %v1115_v24, 4  ;;  %v1136_v32 = vrot.slane %v1131_v25, 4  ;;  %v1139_v33 = vsel %vm728_vm7, %v1131_v25, %v1138_v26 }
 0x267   : > { %1144 = vst.msk [vmem:[%s1140_s27 + $0x30] sm:$0xff] %vm987_vm6, %v1139_v33  ;;  %v779_v36 = vsel %vm728_vm7, 0.0, %v778_v10  ;;  %v780_v37 = vrot.slane %v771_v35, 4  ;;  %v782_v18 = vrot.slane %v775_v23, 4  ;;  %v784_v38 = vsel %vm728_vm7, %v778_v10, %v759_v11 }
 0x268   : > { %v1132_v39 = vrot.slane %v1127_v30, 4  ;;  %v1135_v40 = vsel %vm728_vm7, %v1127_v30, %v1134_v31  ;;  %v1137_v41 = vsel %vm728_vm7, %v1136_v32, %v1119_v17  ;;  %v788_v42 = vperm.slane %v784_v38, %v3258_v60 }
 0x269   : > { %1142 = vst.msk [vmem:[%s1140_s27 + $0x10] sm:$0xff] %vm987_vm6, %v1135_v40  ;;  %v781_v43 = vsel %vm728_vm7, 0.0, %v780_v37  ;;  %v783_v44 = vsel %vm728_vm7, 0.0, %v782_v18  ;;  %v789_v45 = vrot.slane %v779_v36, 4  ;;  %v795_v46 = vsel %vm728_vm7, %v782_v18, %v771_v35 }
 0x26a   : > { %v1133_v47 = vsel %vm728_vm7, %v1132_v39, %v1115_v24  ;;  %1143 = vst.msk [vmem:[%s1140_s27 + $0x20] sm:$0xff] %vm987_vm6, %v1137_v41  ;;  %v799_v48 = vperm.slane %v795_v46, %v3258_v60  ;;  %v800_v51 = vrot.slane %v783_v44, 4  ;;  %v808_v52 = vrot.slane %v788_v42, 4 }
 0x26b   : > { %1141 = vst.msk [vmem:[%s1140_s27] sm:$0xff] %vm987_vm6, %v1133_v47  ;;  %v790_v53 = vsel %vm728_vm7, %v789_v45, %v777_v29  ;;  %v1158_v54 = vlaneseq }
 0x26c   : > { %v794_v49 = vperm.slane %v790_v53, %v3258_v60  ;;  %v801_v55 = vsel %vm728_vm7, %v800_v51, %v781_v43  ;;  %v820_v56 = vrot.slane %v799_v48, 4 }
 0x26d   : > { %v805_v57 = vperm.slane %v801_v55, %v3258_v60  ;;  %v3407_v59 = vshrl.u32 %v1158_v54, 7  ;;  %v3409_v61 = vand.u32 127, %v1158_v54 }
 0x26e   : > { %v806_v62 = vrot.slane %v794_v49, 4  ;;  %v809_v63 = vsel %vm728_vm7, %v794_v49, %v808_v52 }
 0x26f   : > { %v817_v1 = vperm.slane %v809_v63, %v3269_v12  ;;  %v818_v2 = vrot.slane %v805_v57, 4  ;;  %v821_v3 = vsel %vm728_vm7, %v805_v57, %v820_v56 }
 0x270   : > { %v807_v4 = vsel %vm728_vm7, %v806_v62, %v788_v42  ;;  %v829_v5 = vperm.slane %v821_v3, %v3269_v12 }
 0x271   : > { %v813_v6 = vperm.slane %v807_v4, %v3269_v12  ;;  %v819_v7 = vsel %vm728_vm7, %v818_v2, %v799_v48  ;;  %v836_v9 = vrot.slane %v817_v1, 4 }
 0x272   : > { %v825_v50 = vperm.slane %v819_v7, %v3269_v12  ;;  %v834_v11 = vrot.slane %v829_v5, 4  ;;  %1165 = sbr.rel (%p2531_p4) target bundleno = 898 (0x382), region = 100 }
 0x273   : > { %v832_v13 = vrot.slane %v813_v6, 4  ;;  %v3420_v14 = vsel %vm728_vm7, %v829_v5, %v836_v9 }
 0x274   : > { %v830_v15 = vrot.slane %v825_v50, 4  ;;  %v3423_v16 = vsel %vm728_vm7, %v834_v11, %v817_v1 }
 0x275   : > { %v3426_v17 = vsel %vm728_vm7, %v825_v50, %v832_v13 }
 0x276   : > { %v3429_v19 = vsel %vm728_vm7, %v830_v15, %v813_v6 }
 0x277   : > { %v1168_v20 = vld [vmem:[#allocation2 + $0x20] sm:$0xff]  ;;  %v1169_v34 = vld [vmem:[#allocation2 + $0x30] sm:$0xff]  ;;  %v1278_v22 = vstv %s3314_s18  ;;  %v1288_v44 = vld [vmem:[#allocation5 + $0x8] sm:$0xff] }
 0x278   : > { %v1166_v21 = vld [vmem:[#allocation2] sm:$0xff]  ;;  %2536 = vmatpush.xpose.msk.msra.mxu2 %vm987_vm6, %v1168_v20  ;;  %v1167_v58 = vld [vmem:[#allocation2 + $0x10] sm:$0xff]  ;;  %2538 = vmatpush.xpose.msk.msra.mxu3 %vm987_vm6, %v1169_v34  ;;  %v1279_v23 = vadd.s32 %v1278_v22, %v3407_v59  ;;  %v1290_v48 = vld [vmem:[#allocation5 + $0x18] sm:$0xff] }
 0x279   : > { %2532 = vmatpush.xpose.msk.msra.mxu0 %vm987_vm6, %v1166_v21  ;;  %2534 = vmatpush.xpose.msk.msra.mxu1 %vm987_vm6, %v1167_v58  ;;  %v1287_v39 = vld [vmem:[#allocation5] sm:$0xff]  ;;  %v1289_v42 = vld [vmem:[#allocation5 + $0x10] sm:$0xff] }
 0x27a   : > { %vm1280_vm8 = vcmp.ge.s32.totalorder %v1279_v23, %v3409_v61 }
 0x27b   : > { %2537 = vmatmul.msk.f32.vlgmr.msra.gmra.mxu2 %vm987_vm6, %v3423_v16  ;;  %2539 = vmatmul.msk.f32.vlgmr.msra.gmra.mxu3 %vm987_vm6, %v3420_v14 }
 0x27c   : > { %2533 = vmatmul.msk.f32.vlgmr.msra.gmra.mxu0 %vm987_vm6, %v3429_v19  ;;  %2535 = vmatmul.msk.f32.vlgmr.msra.gmra.mxu1 %vm987_vm6, %v3426_v17 }
 0x2f9   : > { %v1193_v24 = vpop.f32.mrf.mxu0  ;;  %v1219_v26 = vpop.f32.mrf.mxu1 }
 0x2fa   : > { %v1274_v25 = vmul.f32 0.35355338, %v1193_v24  ;;  %v1275_v27 = vmul.f32 0.35355338, %v1219_v26 }
 0x2fc   : > { %v1283_v28 = vsel %vm1280_vm8, %v1274_v25, -1e+30  ;;  %v1284_v29 = vsel %vm1280_vm8, %v1275_v27, -1e+30 }
 0x2fd   : > { %v1291_v35 = vsel %vm987_vm6, %v1283_v28, -inf  ;;  %1311 = vst.msk [vmem:[#allocation4] sm:$0xff] %vm987_vm6, %v1283_v28  ;;  %v1294_v18 = vsel %vm987_vm6, %v1284_v29, -inf }
 0x2fe   : > { %1292 = vmax.xlane.f32.xlu0 %v1291_v35  ;;  %1312 = vst.msk [vmem:[#allocation4 + $0x8] sm:$0xff] %vm987_vm6, %v1284_v29  ;;  %v1245_v10 = vpop.f32.mrf.mxu2  ;;  %v1271_v31 = vpop.f32.mrf.mxu3 }
 0x2ff   : > { %v1276_v30 = vmul.f32 0.35355338, %v1245_v10  ;;  %v1277_v32 = vmul.f32 0.35355338, %v1271_v31 }
 0x301   : > { %v1285_v33 = vsel %vm1280_vm8, %v1276_v30, -1e+30  ;;  %v1286_v37 = vsel %vm1280_vm8, %v1277_v32, -1e+30 }
 0x302   : > { %v1297_v36 = vsel %vm987_vm6, %v1285_v33, -inf  ;;  %1313 = vst.msk [vmem:[#allocation4 + $0x10] sm:$0xff] %vm987_vm6, %v1285_v33  ;;  %v1300_v38 = vsel %vm987_vm6, %v1286_v37, -inf }
 0x303   : > { %1298 = vmax.xlane.f32.xlu1 %v1297_v36  ;;  %1314 = vst.msk [vmem:[#allocation4 + $0x18] sm:$0xff] %vm987_vm6, %v1286_v37 }
 0x306   : > { %1295 = vmax.xlane.f32.xlu0 %v1294_v18 }
 0x30b   : > { %1301 = vmax.xlane.f32.xlu1 %v1300_v38 }
 0x371   : > { %v1293_v40 = vpop.xlane.xlu0 %1292 }
 0x372   : > { %v1303_v41 = vmax.f32 %v1287_v39, %v1293_v40 }
 0x374   : > { %1307 = vst.msk [vmem:[#allocation5] sm:$0xff] %vm1145_vm5, %v1303_v41 }
 0x376   : > { %v1299_v43 = vpop.xlane.xlu1 %1298 }
 0x377   : > { %v1305_v45 = vmax.f32 %v1289_v42, %v1299_v43 }
 0x379   : > { %v1296_v46 = vpop.xlane.xlu0 %1295  ;;  %1309 = vst.msk [vmem:[#allocation5 + $0x10] sm:$0xff] %vm1145_vm5, %v1305_v45 }
 0x37a   : > { %v1304_v47 = vmax.f32 %v1288_v44, %v1296_v46 }
 0x37c   : > { %1308 = vst.msk [vmem:[#allocation5 + $0x8] sm:$0xff] %vm1145_vm5, %v1304_v47 }
 0x37e   : > { %v1302_v51 = vpop.xlane.xlu1 %1301 }
 0x37f   : > { %v1306_v52 = vmax.f32 %v1290_v48, %v1302_v51 }
 0x381   : > { %1310 = vst.msk [vmem:[#allocation5 + $0x18] sm:$0xff] %vm1145_vm5, %v1306_v52 }
 0x382 PF: > { %1318 = sbr.rel (%p638_p2) target bundleno = 1170 (0x492), region = 104 }
 0x387   : > { %v1321_v53 = vld [vmem:[#allocation2 + $0x28] sm:$0xff]  ;;  %v1322_v49 = vld [vmem:[#allocation2 + $0x38] sm:$0xff]  ;;  %v1431_v56 = vstv %s3314_s18  ;;  %v1433_v62 = vadd.s32 8, %v3409_v61  ;;  %v1443_v20 = vld [vmem:[#allocation5 + $0x10] sm:$0xff] }
 0x388   : > { %v1319_v54 = vld [vmem:[#allocation2 + $0x8] sm:$0xff]  ;;  %2545 = vmatpush.xpose.msk.msra.mxu2 %vm987_vm6, %v1321_v53  ;;  %v1320_v55 = vld [vmem:[#allocation2 + $0x18] sm:$0xff]  ;;  %2547 = vmatpush.xpose.msk.msra.mxu3 %vm987_vm6, %v1322_v49  ;;  %v1432_v57 = vadd.s32 %v1431_v56, %v3407_v59 }
 0x389   : > { %2541 = vmatpush.xpose.msk.msra.mxu0 %vm987_vm6, %v1319_v54  ;;  %2543 = vmatpush.xpose.msk.msra.mxu1 %vm987_vm6, %v1320_v55  ;;  %v1442_v34 = vld [vmem:[#allocation5 + $0x8] sm:$0xff]  ;;  %v1444_v24 = vld [vmem:[#allocation5 + $0x18] sm:$0xff] }
 0x38a   : > { %vm1434_vm9 = vcmp.ge.s32.totalorder %v1432_v57, %v1433_v62 }
 0x38b   : > { %2546 = vmatmul.msk.f32.vlgmr.msra.gmra.mxu2 %vm987_vm6, %v3423_v16  ;;  %2548 = vmatmul.msk.f32.vlgmr.msra.gmra.mxu3 %vm987_vm6, %v3420_v14  ;;  %v1441_v16 = vld [vmem:[#allocation5] sm:$0xff] }
 0x38c   : > { %2542 = vmatmul.msk.f32.vlgmr.msra.gmra.mxu0 %vm987_vm6, %v3429_v19  ;;  %2544 = vmatmul.msk.f32.vlgmr.msra.gmra.mxu1 %vm987_vm6, %v3426_v17 }
 0x409   : > { %v1346_v63 = vpop.f32.mrf.mxu0  ;;  %v1372_v2 = vpop.f32.mrf.mxu1 }
 0x40a   : > { %v1427_v1 = vmul.f32 0.35355338, %v1346_v63  ;;  %v1428_v3 = vmul.f32 0.35355338, %v1372_v2 }
 0x40c   : > { %v1437_v4 = vsel %vm1434_vm9, %v1427_v1, -1e+30  ;;  %v1438_v6 = vsel %vm1434_vm9, %v1428_v3, -1e+30 }
 0x40d   : > { %v1445_v5 = vsel %vm987_vm6, %v1437_v4, -inf  ;;  %1466 = vst.msk [vmem:[#allocation4 + $0x20] sm:$0xff] %vm987_vm6, %v1437_v4  ;;  %v1448_v14 = vsel %vm987_vm6, %v1438_v6, -inf }
 0x40e   : > { %1446 = vmax.xlane.f32.xlu0 %v1445_v5  ;;  %1467 = vst.msk [vmem:[#allocation4 + $0x28] sm:$0xff] %vm987_vm6, %v1438_v6  ;;  %v1398_v7 = vpop.f32.mrf.mxu2  ;;  %v1424_v9 = vpop.f32.mrf.mxu3 }
 0x40f   : > { %v1429_v59 = vmul.f32 0.35355338, %v1398_v7  ;;  %v1430_v61 = vmul.f32 0.35355338, %v1424_v9 }
 0x411   : > { %v1439_v50 = vsel %vm1434_vm9, %v1429_v59, -1e+30  ;;  %v1440_v13 = vsel %vm1434_vm9, %v1430_v61, -1e+30 }
 0x412   : > { %v1451_v11 = vsel %vm987_vm6, %v1439_v50, -inf  ;;  %1468 = vst.msk [vmem:[#allocation4 + $0x30] sm:$0xff] %vm987_vm6, %v1439_v50  ;;  %v1454_v15 = vsel %vm987_vm6, %v1440_v13, -inf }
 0x413   : > { %1452 = vmax.xlane.f32.xlu1 %v1451_v11  ;;  %1469 = vst.msk [vmem:[#allocation4 + $0x38] sm:$0xff] %vm987_vm6, %v1440_v13 }
 0x416   : > { %1449 = vmax.xlane.f32.xlu0 %v1448_v14 }
 0x41b   : > { %1455 = vmax.xlane.f32.xlu1 %v1454_v15 }
 0x481   : > { %v1447_v17 = vpop.xlane.xlu0 %1446 }
 0x482   : > { %v1457_v19 = vmax.f32 %v1441_v16, %v1447_v17 }
 0x484   : > { %1461 = vst.msk [vmem:[#allocation5] sm:$0xff] %vm1145_vm5, %v1457_v19 }
 0x486   : > { %v1453_v21 = vpop.xlane.xlu1 %1452 }
 0x487   : > { %v1459_v58 = vmax.f32 %v1443_v20, %v1453_v21 }
 0x489   : > { %v1450_v22 = vpop.xlane.xlu0 %1449  ;;  %1463 = vst.msk [vmem:[#allocation5 + $0x10] sm:$0xff] %vm1145_vm5, %v1459_v58 }
 0x48a   : > { %v1458_v23 = vmax.f32 %v1442_v34, %v1450_v22 }
 0x48c   : > { %1462 = vst.msk [vmem:[#allocation5 + $0x8] sm:$0xff] %vm1145_vm5, %v1458_v23 }
 0x48e   : > { %v1456_v25 = vpop.xlane.xlu1 %1455 }
 0x48f   : > { %v1460_v26 = vmax.f32 %v1444_v24, %v1456_v25 }
 0x491   : > { %1464 = vst.msk [vmem:[#allocation5 + $0x18] sm:$0xff] %vm1145_vm5, %v1460_v26 }
 0x492 PF: > { %1472 = sbr.rel (%p2531_p4) target bundleno = 1446 (0x5a6), region = 108 }
 0x497   : > { %v1479_v27 = vld [vmem:[#allocation5 + $0x10] sm:$0xff]  ;;  %v1477_v28 = vld [vmem:[#allocation5] sm:$0xff]  ;;  %v2954_v35 = vmov 0   ;;  %v1478_v10 = vld [vmem:[#allocation5 + $0x8] sm:$0xff] }
 0x498   : > { %2704 = vset.pattern.permute.xlu1 %v2954_v35  ;;  %2703 = vset.pattern.permute.xlu0 %v2954_v35  ;;  %v1480_v29 = vld [vmem:[#allocation5 + $0x18] sm:$0xff]  ;;  %v1539_v30 = vld [vmem:[#allocation3 + $0x20] sm:$0xff]  ;;  %v1538_v32 = vld [vmem:[#allocation3 + $0x10] sm:$0xff] }
 0x499   : > { %1493 = vperm.xlu0 %2703, %v1479_v27   ;;  %1483 = vperm.xlu1 %2704, %v1477_v28   ;;  %v1537_v31 = vld [vmem:[#allocation3] sm:$0xff]  ;;  %v1540_v33 = vld [vmem:[#allocation3 + $0x30] sm:$0xff]  ;;  %v1476_v43 = vld [vmem:[#allocation4 + $0x18] sm:$0xff] }
 0x49a   : > { %1609 = vmatpush.msra.mxu2 %v1539_v30  ;;  %1563 = vmatpush.msra.mxu0 %v1537_v31  ;;  %v1475_v36 = vld [vmem:[#allocation4 + $0x10] sm:$0xff]  ;;  %v1473_v37 = vld [vmem:[#allocation4] sm:$0xff]  ;;  %v1474_v44 = vld [vmem:[#allocation4 + $0x8] sm:$0xff] }
 0x49b   : > { %1586 = vmatpush.msra.mxu1 %v1538_v32  ;;  %1632 = vmatpush.msra.mxu3 %v1540_v33  ;;  %v1515_v1 = vld [vmem:[#allocation6 + $0x10] sm:$0xff]  ;;  %v1513_v2 = vld [vmem:[#allocation6] sm:$0xff]  ;;  %v1516_v7 = vld [vmem:[#allocation6 + $0x18] sm:$0xff] }
 0x49c   : > { %v1514_v59 = vld [vmem:[#allocation6 + $0x8] sm:$0xff]  ;;  %v1541_v61 = vld [vmem:[#allocation7] sm:$0xff]  ;;  %v1543_v16 = vld [vmem:[#allocation7 + $0x10] sm:$0xff] }
 0x49d   : > { %v1542_v20 = vld [vmem:[#allocation7 + $0x8] sm:$0xff]  ;;  %v1544_v58 = vld [vmem:[#allocation7 + $0x18] sm:$0xff] }
 0x4a1   : > { %1498 = vperm.xlu0 %2703, %v1480_v29   ;;  %1488 = vperm.xlu1 %2704, %v1478_v10  }
 0x50b   : > { %v1494_v18 = vpop.permute.xlu0 %1493  ;;  %v1484_v38 = vpop.permute.xlu1 %1483 }
 0x50c   : > { %v1503_v39 = vsub.f32 %v1475_v36, %v1494_v18  ;;  %v1501_v40 = vsub.f32 %v1473_v37, %v1484_v38 }
 0x50e   : > { %v1509_v41 = vmul.f32 1.442695, %v1503_v39  ;;  %v1505_v42 = vmul.f32 1.442695, %v1501_v40 }
 0x510   : > { %2705 = vpow2.f32 %v1509_v41 }
 0x511   : > { %2707 = vpow2.f32 %v1505_v42 }
 0x513   : > { %v1499_v45 = vpop.permute.xlu0 %1498  ;;  %v1489_v46 = vpop.permute.xlu1 %1488 }
 0x514   : > { %v1504_v47 = vsub.f32 %v1476_v43, %v1499_v45  ;;  %v1502_v48 = vsub.f32 %v1474_v44, %v1489_v46 }
 0x516   : > { %v2706_v51 = vpop.eup %2705  ;;  %v1511_v52 = vmul.f32 1.442695, %v1504_v47  ;;  %v1507_v53 = vmul.f32 1.442695, %v1502_v48 }
 0x517   : > { %v2708_v54 = vpop.eup %2707  ;;  %1647 = vst.msk [vmem:[#allocation4 + $0x10] sm:$0xff] %vm987_vm6, %v2706_v51  ;;  %2552 = vmatmul.msk.f32.vlgmr.msra.gmra.mxu2 %vm987_vm6, %v2706_v51  ;;  %v1523_v49 = vsel %vm987_vm6, %v2706_v51, 0.0 }
 0x518   : > { %1645 = vst.msk [vmem:[#allocation4] sm:$0xff] %vm987_vm6, %v2708_v54  ;;  %2709 = vpow2.f32 %v1511_v52  ;;  %1524 = vadd.xlane.f32.xlu0 %v1523_v49  ;;  %v1517_v55 = vsel %vm987_vm6, %v2708_v54, 0.0  ;;  %2550 = vmatmul.msk.f32.vlgmr.msra.gmra.mxu0 %vm987_vm6, %v2708_v54 }
 0x519   : > { %2711 = vpow2.f32 %v1507_v53  ;;  %1518 = vadd.xlane.f32.xlu2 %v1517_v55 }
 0x51e   : > { %v2710_v56 = vpop.eup %2709 }
 0x51f   : > { %v2712_v57 = vpop.eup %2711  ;;  %1648 = vst.msk [vmem:[#allocation4 + $0x18] sm:$0xff] %vm987_vm6, %v2710_v56  ;;  %2553 = vmatmul.msk.f32.vlgmr.msra.gmra.mxu3 %vm987_vm6, %v2710_v56  ;;  %v1526_v62 = vsel %vm987_vm6, %v2710_v56, 0.0 }
 0x520   : > { %1646 = vst.msk [vmem:[#allocation4 + $0x8] sm:$0xff] %vm987_vm6, %v2712_v57  ;;  %2551 = vmatmul.msk.f32.vlgmr.msra.gmra.mxu1 %vm987_vm6, %v2712_v57  ;;  %1527 = vadd.xlane.f32.xlu1 %v1526_v62  ;;  %v1520_v63 = vsel %vm987_vm6, %v2712_v57, 0.0 }
 0x521   : > { %1521 = vadd.xlane.f32.xlu2 %v1520_v63 }
 0x58b   : > { %v1525_v3 = vpop.xlane.xlu0 %1524 }
 0x58c   : > { %v1531_v4 = vadd.f32 %v1525_v3, %v1515_v1  ;;  %v1519_v5 = vpop.xlane.xlu2 %1518 }
 0x58d   : > { %v1529_v6 = vadd.f32 %v1519_v5, %v1513_v2 }
 0x58e   : > { %1535 = vst.msk [vmem:[#allocation6 + $0x10] sm:$0xff] %vm1145_vm5, %v1531_v4 }
 0x58f   : > { %1533 = vst.msk [vmem:[#allocation6] sm:$0xff] %vm1145_vm5, %v1529_v6 }
 0x593   : > { %v1528_v9 = vpop.xlane.xlu1 %1527 }
 0x594   : > { %v1532_v50 = vadd.f32 %v1528_v9, %v1516_v7  ;;  %v1522_v11 = vpop.xlane.xlu2 %1521 }
 0x595   : > { %v1530_v13 = vadd.f32 %v1522_v11, %v1514_v59  ;;  %v1565_v14 = vpop.f32.mrf.mxu0 }
 0x596   : > { %1536 = vst.msk [vmem:[#allocation6 + $0x18] sm:$0xff] %vm1145_vm5, %v1532_v50  ;;  %v1637_v15 = vadd.f32 %v1565_v14, %v1541_v61 }
 0x597   : > { %1534 = vst.msk [vmem:[#allocation6 + $0x8] sm:$0xff] %vm1145_vm5, %v1530_v13 }
 0x598   : > { %1641 = vst.msk [vmem:[#allocation7] sm:$0xff] %vm987_vm6, %v1637_v15 }
 0x59a   : > { %v1611_v17 = vpop.f32.mrf.mxu2 }
 0x59b   : > { %v1639_v19 = vadd.f32 %v1611_v17, %v1543_v16 }
 0x59d   : > { %1643 = vst.msk [vmem:[#allocation7 + $0x10] sm:$0xff] %vm987_vm6, %v1639_v19  ;;  %v1588_v21 = vpop.f32.mrf.mxu1 }
 0x59e   : > { %v1638_v34 = vadd.f32 %v1588_v21, %v1542_v20 }
 0x5a0   : > { %1642 = vst.msk [vmem:[#allocation7 + $0x8] sm:$0xff] %vm987_vm6, %v1638_v34 }
 0x5a2   : > { %v1634_v22 = vpop.f32.mrf.mxu3 }
 0x5a3   : > { %v1640_v23 = vadd.f32 %v1634_v22, %v1544_v58 }
 0x5a5   : > { %1644 = vst.msk [vmem:[#allocation7 + $0x18] sm:$0xff] %vm987_vm6, %v1640_v23 }
 0x5a6 PF: > { %1651 = sbr.rel (%p638_p2) target bundleno = 1722 (0x6ba), region = 112 }
 0x5ab   : > { %v1659_v24 = vld [vmem:[#allocation5 + $0x10] sm:$0xff]  ;;  %v1657_v25 = vld [vmem:[#allocation5] sm:$0xff]  ;;  %v2955_v26 = vmov 0   ;;  %v1660_v27 = vld [vmem:[#allocation5 + $0x18] sm:$0xff] }
 0x5ac   : > { %2714 = vset.pattern.permute.xlu1 %v2955_v26  ;;  %2713 = vset.pattern.permute.xlu0 %v2955_v26  ;;  %v1658_v28 = vld [vmem:[#allocation5 + $0x8] sm:$0xff]  ;;  %v1718_v10 = vld [vmem:[#allocation3 + $0x18] sm:$0xff]  ;;  %v1655_v31 = vld [vmem:[#allocation4 + $0x30] sm:$0xff] }
 0x5ad   : > { %1673 = vperm.xlu0 %2713, %v1659_v24   ;;  %1663 = vperm.xlu1 %2714, %v1657_v25   ;;  %v1719_v35 = vld [vmem:[#allocation3 + $0x28] sm:$0xff]  ;;  %v1720_v30 = vld [vmem:[#allocation3 + $0x38] sm:$0xff]  ;;  %v1653_v32 = vld [vmem:[#allocation4 + $0x20] sm:$0xff] }
 0x5ae   : > { %1789 = vmatpush.msra.mxu2 %v1719_v35  ;;  %v1717_v29 = vld [vmem:[#allocation3 + $0x8] sm:$0xff]  ;;  %1766 = vmatpush.msra.mxu1 %v1718_v10  ;;  %v1656_v40 = vld [vmem:[#allocation4 + $0x38] sm:$0xff]  ;;  %v1695_v57 = vld [vmem:[#allocation6 + $0x10] sm:$0xff] }
 0x5af   : > { %1743 = vmatpush.msra.mxu0 %v1717_v29  ;;  %1812 = vmatpush.msra.mxu3 %v1720_v30  ;;  %v1654_v41 = vld [vmem:[#allocation4 + $0x28] sm:$0xff]  ;;  %v1693_v62 = vld [vmem:[#allocation6] sm:$0xff]  ;;  %v1696_v4 = vld [vmem:[#allocation6 + $0x18] sm:$0xff] }
 0x5b0   : > { %v1694_v5 = vld [vmem:[#allocation6 + $0x8] sm:$0xff]  ;;  %v1721_v7 = vld [vmem:[#allocation7] sm:$0xff]  ;;  %v1723_v13 = vld [vmem:[#allocation7 + $0x10] sm:$0xff] }
 0x5b1   : > { %v1722_v16 = vld [vmem:[#allocation7 + $0x8] sm:$0xff]  ;;  %v1724_v20 = vld [vmem:[#allocation7 + $0x18] sm:$0xff] }
 0x5b5   : > { %1678 = vperm.xlu0 %2713, %v1660_v27   ;;  %1668 = vperm.xlu1 %2714, %v1658_v28  }
 0x61f   : > { %v1674_v33 = vpop.permute.xlu0 %1673  ;;  %v1664_v36 = vpop.permute.xlu1 %1663 }
 0x620   : > { %v1683_v37 = vsub.f32 %v1655_v31, %v1674_v33  ;;  %v1681_v18 = vsub.f32 %v1653_v32, %v1664_v36 }
 0x622   : > { %v1689_v38 = vmul.f32 1.442695, %v1683_v37  ;;  %v1685_v39 = vmul.f32 1.442695, %v1681_v18 }
 0x624   : > { %2715 = vpow2.f32 %v1689_v38 }
 0x625   : > { %2717 = vpow2.f32 %v1685_v39 }
 0x627   : > { %v1679_v42 = vpop.permute.xlu0 %1678  ;;  %v1669_v43 = vpop.permute.xlu1 %1668 }
 0x628   : > { %v1684_v44 = vsub.f32 %v1656_v40, %v1679_v42  ;;  %v1682_v45 = vsub.f32 %v1654_v41, %v1669_v43 }
 0x62a   : > { %v2716_v46 = vpop.eup %2715  ;;  %v1691_v47 = vmul.f32 1.442695, %v1684_v44  ;;  %v1687_v48 = vmul.f32 1.442695, %v1682_v45 }
 0x62b   : > { %v2718_v51 = vpop.eup %2717  ;;  %1827 = vst.msk [vmem:[#allocation4 + $0x30] sm:$0xff] %vm987_vm6, %v2716_v46  ;;  %2557 = vmatmul.msk.f32.vlgmr.msra.gmra.mxu2 %vm987_vm6, %v2716_v46  ;;  %v1703_v52 = vsel %vm987_vm6, %v2716_v46, 0.0 }
 0x62c   : > { %1825 = vst.msk [vmem:[#allocation4 + $0x20] sm:$0xff] %vm987_vm6, %v2718_v51  ;;  %2719 = vpow2.f32 %v1691_v47  ;;  %1704 = vadd.xlane.f32.xlu0 %v1703_v52  ;;  %v1697_v53 = vsel %vm987_vm6, %v2718_v51, 0.0  ;;  %2555 = vmatmul.msk.f32.vlgmr.msra.gmra.mxu0 %vm987_vm6, %v2718_v51 }
 0x62d   : > { %2721 = vpow2.f32 %v1687_v48  ;;  %1698 = vadd.xlane.f32.xlu2 %v1697_v53 }
 0x632   : > { %v2720_v54 = vpop.eup %2719 }
 0x633   : > { %v2722_v49 = vpop.eup %2721  ;;  %1828 = vst.msk [vmem:[#allocation4 + $0x38] sm:$0xff] %vm987_vm6, %v2720_v54  ;;  %2558 = vmatmul.msk.f32.vlgmr.msra.gmra.mxu3 %vm987_vm6, %v2720_v54  ;;  %v1706_v55 = vsel %vm987_vm6, %v2720_v54, 0.0 }
 0x634   : > { %1826 = vst.msk [vmem:[#allocation4 + $0x28] sm:$0xff] %vm987_vm6, %v2722_v49  ;;  %2556 = vmatmul.msk.f32.vlgmr.msra.gmra.mxu1 %vm987_vm6, %v2722_v49  ;;  %1707 = vadd.xlane.f32.xlu1 %v1706_v55  ;;  %v1700_v56 = vsel %vm987_vm6, %v2722_v49, 0.0 }
 0x635   : > { %1701 = vadd.xlane.f32.xlu2 %v1700_v56 }
 0x69f   : > { %v1705_v63 = vpop.xlane.xlu0 %1704 }
 0x6a0   : > { %v1711_v1 = vadd.f32 %v1705_v63, %v1695_v57  ;;  %v1699_v2 = vpop.xlane.xlu2 %1698 }
 0x6a1   : > { %v1709_v3 = vadd.f32 %v1699_v2, %v1693_v62 }
 0x6a2   : > { %1715 = vst.msk [vmem:[#allocation6 + $0x10] sm:$0xff] %vm1145_vm5, %v1711_v1 }
 0x6a3   : > { %1713 = vst.msk [vmem:[#allocation6] sm:$0xff] %vm1145_vm5, %v1709_v3 }
 0x6a7   : > { %v1708_v6 = vpop.xlane.xlu1 %1707 }
 0x6a8   : > { %v1712_v59 = vadd.f32 %v1708_v6, %v1696_v4  ;;  %v1702_v9 = vpop.xlane.xlu2 %1701 }
 0x6a9   : > { %v1710_v61 = vadd.f32 %v1702_v9, %v1694_v5  ;;  %v1745_v50 = vpop.f32.mrf.mxu0 }
 0x6aa   : > { %1716 = vst.msk [vmem:[#allocation6 + $0x18] sm:$0xff] %vm1145_vm5, %v1712_v59  ;;  %v1817_v11 = vadd.f32 %v1745_v50, %v1721_v7 }
 0x6ab   : > { %1714 = vst.msk [vmem:[#allocation6 + $0x8] sm:$0xff] %vm1145_vm5, %v1710_v61 }
 0x6ac   : > { %1821 = vst.msk [vmem:[#allocation7] sm:$0xff] %vm987_vm6, %v1817_v11 }
 0x6ae   : > { %v1791_v14 = vpop.f32.mrf.mxu2 }
 0x6af   : > { %v1819_v15 = vadd.f32 %v1791_v14, %v1723_v13 }
 0x6b1   : > { %1823 = vst.msk [vmem:[#allocation7 + $0x10] sm:$0xff] %vm987_vm6, %v1819_v15  ;;  %v1768_v17 = vpop.f32.mrf.mxu1 }
 0x6b2   : > { %v1818_v19 = vadd.f32 %v1768_v17, %v1722_v16 }
 0x6b4   : > { %1822 = vst.msk [vmem:[#allocation7 + $0x8] sm:$0xff] %vm987_vm6, %v1818_v19 }
 0x6b6   : > { %v1814_v21 = vpop.f32.mrf.mxu3 }
 0x6b7   : > { %v1820_v34 = vadd.f32 %v1814_v21, %v1724_v20 }
 0x6b9   : > { %1824 = vst.msk [vmem:[#allocation7 + $0x18] sm:$0xff] %vm987_vm6, %v1820_v34 }
 0x6ba PF: > { %v1829_v58 = vld [vmem:[#allocation6] sm:$0xff]  ;;  %v1830_v22 = vld [vmem:[#allocation6 + $0x8] sm:$0xff]  ;;  %v1831_v23 = vld [vmem:[#allocation6 + $0x10] sm:$0xff] }
 0x6bb   : > { %2723 = vrcp.f32 %v1829_v58  ;;  %v1832_v24 = vld [vmem:[#allocation6 + $0x18] sm:$0xff]  ;;  %v1842_v25 = vand.u32 2147483647, %v1829_v58  ;;  %v1844_v26 = vand.u32 2147483648, %v1829_v58  ;;  %v1859_v27 = vand.u32 2147483648, %v1830_v22 }
 0x6bc   : > { %2725 = vrcp.f32 %v1830_v22  ;;  %vm1838_vm10 = vweird.f32 %v1829_v58  ;;  %vm1853_vm11 = vweird.f32 %v1830_v22  ;;  %v1857_v10 = vand.u32 2147483647, %v1830_v22 }
 0x6bd   : > { %2727 = vrcp.f32 %v1831_v23  ;;  %vm3554_vm12 = vcmp.eq.f32.partialorder %v1842_v25, 8.507059e+37  ;;  %v1845_v32 = vor.u32 1.1754944e-38, %v1844_v26  ;;  %vm1868_vm13 = vweird.f32 %v1831_v23 }
 0x6be   : > { %2729 = vrcp.f32 %v1832_v24  ;;  %v1860_v37 = vor.u32 1.1754944e-38, %v1859_v27  ;;  %v1872_v40 = vand.u32 2147483647, %v1831_v23  ;;  %v1874_v41 = vand.u32 2147483648, %v1831_v23 }
 0x6bf   : > { %vm1883_vm3 = vweird.f32 %v1832_v24  ;;  %v1887_v47 = vand.u32 2147483647, %v1832_v24  ;;  %v1889_v48 = vand.u32 2147483648, %v1832_v24  ;;  %vm1858_vm8 = vcmp.eq.f32.partialorder %v1857_v10, 8.507059e+37 }
 0x6c0   : > { %v1875_v55 = vor.u32 1.1754944e-38, %v1874_v41 }
 0x6c1   : > { %v2724_v28 = vpop.eup %2723  ;;  %v1890_v2 = vor.u32 1.1754944e-38, %v1889_v48 }
 0x6c2   : > { %v2726_v35 = vpop.eup %2725  ;;  %v1834_v29 = vmul.f32 %v2724_v28, %v1829_v58  ;;  %vm1839_vm14 = vweird.f32 %v2724_v28 }
 0x6c3   : > { %v2728_v30 = vpop.eup %2727  ;;  %v1849_v33 = vmul.f32 %v2726_v35, %v1830_v22  ;;  %vm1854_vm15 = vweird.f32 %v2726_v35  ;;  %vm3559_vm2 = vmor %vm1838_vm10, %vm1839_vm14  ;;  %vm1873_vm10 = vcmp.eq.f32.partialorder %v1872_v40, 8.507059e+37 }
 0x6c4   : > { %v1835_v36 = vsub.f32 1.0, %v1834_v29  ;;  %v1864_v18 = vmul.f32 %v2728_v30, %v1831_v23  ;;  %v2730_v38 = vpop.eup %2729  ;;  %vm1869_vm1 = vweird.f32 %v2728_v30  ;;  %vm3564_vm4 = vmor %vm1853_vm11, %vm1854_vm15 }
 0x6c5   : > { %v1850_v39 = vsub.f32 1.0, %v1849_v33  ;;  %v1879_v44 = vmul.f32 %v2730_v38, %v1832_v24  ;;  %vm1884_vm5 = vweird.f32 %v2730_v38  ;;  %vm1870_vm9 = vmor %vm1868_vm13, %vm1869_vm1  ;;  %vm1888_vm13 = vcmp.eq.f32.partialorder %v1887_v47, 8.507059e+37 }
 0x6c6   : > { %v1836_v42 = vmul.f32 %v2724_v28, %v1835_v36  ;;  %v1865_v43 = vsub.f32 1.0, %v1864_v18  ;;  %vm1885_vm11 = vmor %vm1883_vm3, %vm1884_vm5 }
 0x6c7   : > { %v1851_v46 = vmul.f32 %v2726_v35, %v1850_v39  ;;  %v1880_v54 = vsub.f32 1.0, %v1879_v44 }
 0x6c8   : > { %v1837_v51 = vadd.f32 %v2724_v28, %v1836_v42  ;;  %v1866_v53 = vmul.f32 %v2728_v30, %v1865_v43 }
 0x6c9   : > { %v1852_v49 = vadd.f32 %v2726_v35, %v1851_v46  ;;  %v1881_v62 = vmul.f32 %v2730_v38, %v1880_v54 }
 0x6ca   : > { %v1841_v56 = vsel %vm3559_vm2, %v2724_v28, %v1837_v51  ;;  %v1867_v57 = vadd.f32 %v2728_v30, %v1866_v53  ;;  %1895 = sbr.rel (%p2531_p4) target bundleno = 1872 (0x750), region = 116 }
 0x6cb   : > { %v3573_v63 = vsel %vm3554_vm12, %v1845_v32, %v1841_v56  ;;  %v1856_v1 = vsel %vm3564_vm4, %v2726_v35, %v1852_v49  ;;  %v1882_v5 = vadd.f32 %v2730_v38, %v1881_v62 }
 0x6cc   : > { %v3578_v3 = vsel %vm1858_vm8, %v1860_v37, %v1856_v1  ;;  %v1871_v4 = vsel %vm1870_vm9, %v2728_v30, %v1867_v57 }
 0x6cd   : > { %v3580_v6 = vsel %vm1873_vm10, %v1875_v55, %v1871_v4  ;;  %v1886_v7 = vsel %vm1885_vm11, %v2730_v38, %v1882_v5 }
 0x6ce   : > { %v3582_v59 = vsel %vm1888_vm13, %v1890_v2, %v1886_v7 }
 0x6cf   : > { %v2956_v9 = vmov 0   ;;  %v1898_v61 = vld [vmem:[#allocation4 + $0x10] sm:$0xff]  ;;  %v1896_v50 = vld [vmem:[#allocation4] sm:$0xff]  ;;  %v1899_v16 = vld [vmem:[#allocation4 + $0x18] sm:$0xff] }
 0x6d0   : > { %2732 = vset.pattern.permute.xlu1 %v2956_v9  ;;  %2731 = vset.pattern.permute.xlu0 %v2956_v9  ;;  %v1897_v17 = vld [vmem:[#allocation4 + $0x8] sm:$0xff] }
 0x6d1   : > { %1912 = vperm.xlu1 %2732, %v3580_v6   ;;  %1902 = vperm.xlu0 %2731, %v3573_v63  }
 0x6d9   : > { %1917 = vperm.xlu1 %2732, %v3582_v59   ;;  %1907 = vperm.xlu0 %2731, %v3578_v3  }
 0x743   : > { %v1913_v11 = vpop.permute.xlu1 %1912  ;;  %v1903_v13 = vpop.permute.xlu0 %1902 }
 0x744   : > { %v1922_v14 = vmul.f32 %v1913_v11, %v1898_v61  ;;  %v1920_v15 = vmul.f32 %v1903_v13, %v1896_v50 }
 0x746   : > { %1926 = vst.msk [vmem:[%s3437_s15 + $0x10] sm:$0xff] %vm987_vm6, %v1922_v14 }
 0x747   : > { %1924 = vst.msk [vmem:[%s3437_s15] sm:$0xff] %vm987_vm6, %v1920_v15 }
 0x74b   : > { %v1918_v19 = vpop.permute.xlu1 %1917  ;;  %v1908_v20 = vpop.permute.xlu0 %1907 }
 0x74c   : > { %v1923_v21 = vmul.f32 %v1918_v19, %v1899_v16  ;;  %v1921_v34 = vmul.f32 %v1908_v20, %v1897_v17 }
 0x74e   : > { %1927 = vst.msk [vmem:[%s3437_s15 + $0x18] sm:$0xff] %vm987_vm6, %v1923_v21 }
 0x74f   : > { %1925 = vst.msk [vmem:[%s3437_s15 + $0x8] sm:$0xff] %vm987_vm6, %v1921_v34 }
 0x750 PF: > { %p2560_p5 = scmp.ge.s32.totalorder %s2924_s30, 0 }
 0x752   : > { %1931 = sbr.rel (%p2560_p5) target bundleno = 1884 (0x75c), region = 120 }
 0x757   : > { %v2957_v58 = vmov 0.0  }
 0x758   : > { %1932 = vst.msk [vmem:[%s3437_s15] sm:$0xff] %vm987_vm6, %v2957_v58 }
 0x759   : > { %1933 = vst.msk [vmem:[%s3437_s15 + $0x8] sm:$0xff] %vm987_vm6, %v2957_v58 }
 0x75a   : > { %1934 = vst.msk [vmem:[%s3437_s15 + $0x10] sm:$0xff] %vm987_vm6, %v2957_v58 }
 0x75b   : > { %1935 = vst.msk [vmem:[%s3437_s15 + $0x18] sm:$0xff] %vm987_vm6, %v2957_v58 }
 0x75c PF: > { %1938 = sbr.rel (%p638_p2) target bundleno = 2132 (0x854), region = 124  ;;  %s2959_s16 = smov (!%p638_p2), 8  }
 0x761   : > { %v2958_v22 = vmov 0   ;;  %v1942_v23 = vld [vmem:[#allocation4 + $0x30] sm:$0xff]  ;;  %v1940_v24 = vld [vmem:[#allocation4 + $0x20] sm:$0xff]  ;;  %v1943_v35 = vld [vmem:[#allocation4 + $0x38] sm:$0xff]  ;;  %vm1984_vm12 = vcmask 130112  }
 0x762   : > { %2734 = vset.pattern.permute.xlu1 %v2958_v22  ;;  %2733 = vset.pattern.permute.xlu0 %v2958_v22  ;;  %v1941_v29 = vld [vmem:[#allocation4 + $0x28] sm:$0xff] }
 0x763   : > { %1956 = vperm.xlu1 %2734, %v3580_v6   ;;  %1946 = vperm.xlu0 %2733, %v3573_v63  }
 0x76b   : > { %1961 = vperm.xlu1 %2734, %v3582_v59   ;;  %1951 = vperm.xlu0 %2733, %v3578_v3  }
 0x7d5   : > { %v1957_v25 = vpop.permute.xlu1 %1956  ;;  %v1947_v26 = vpop.permute.xlu0 %1946 }
 0x7d6   : > { %v1966_v27 = vmul.f32 %v1957_v25, %v1942_v23  ;;  %v1964_v28 = vmul.f32 %v1947_v26, %v1940_v24 }
 0x7d8   : > { %1976 = vrot.lane.b32.xlu0 %v1966_v27, %s2959_s16  ;;  %1972 = vrot.lane.b32.xlu2 %v1964_v28, %s2959_s16 }
 0x7dd   : > { %v1962_v10 = vpop.permute.xlu1 %1961  ;;  %v1952_v30 = vpop.permute.xlu0 %1951 }
 0x7de   : > { %v1967_v31 = vmul.f32 %v1962_v10, %v1943_v35  ;;  %v1965_v32 = vmul.f32 %v1952_v30, %v1941_v29 }
 0x7e0   : > { %1978 = vrot.lane.b32.xlu1 %v1967_v31, %s2959_s16  ;;  %1974 = vrot.lane.b32.xlu2 %v1965_v32, %s2959_s16 }
 0x832   : > { %v1973_v33 = vpop.permute.xlu2 %1972 }
 0x833   : > { %1985 = vst.msk [vmem:[%s3437_s15] sm:$0xff] %vm1984_vm12, %v1973_v33 }
 0x83a   : > { %v1975_v36 = vpop.permute.xlu2 %1974 }
 0x83b   : > { %1986 = vst.msk [vmem:[%s3437_s15 + $0x8] sm:$0xff] %vm1984_vm12, %v1975_v36 }
 0x84a   : > { %v1977_v37 = vpop.permute.xlu0 %1976 }
 0x84b   : > { %1987 = vst.msk [vmem:[%s3437_s15 + $0x10] sm:$0xff] %vm1984_vm12, %v1977_v37 }
 0x852   : > { %v1979_v18 = vpop.permute.xlu1 %1978 }
 0x853   : > { %1988 = vst.msk [vmem:[%s3437_s15 + $0x18] sm:$0xff] %vm1984_vm12, %v1979_v18 }
 0x854 PF: > { %p2562_p6 = scmp.ge.s32.totalorder %s2924_s30, 1 }
 0x856   : > { %1992 = sbr.rel (%p2562_p6) target bundleno = 2144 (0x860), region = 128 }
 0x85b   : > { %vm1993_vm14 = vcmask 130112   ;;  %v2960_v38 = vmov 0.0  }
 0x85c   : > { %1994 = vst.msk [vmem:[%s3437_s15] sm:$0xff] %vm1993_vm14, %v2960_v38 }
 0x85d   : > { %1995 = vst.msk [vmem:[%s3437_s15 + $0x8] sm:$0xff] %vm1993_vm14, %v2960_v38 }
 0x85e   : > { %1996 = vst.msk [vmem:[%s3437_s15 + $0x10] sm:$0xff] %vm1993_vm14, %v2960_v38 }
 0x85f   : > { %1997 = vst.msk [vmem:[%s3437_s15 + $0x18] sm:$0xff] %vm1993_vm14, %v2960_v38 }
 0x860 PF: > { %v2961_v39 = vmov 0   ;;  %v2001_v42 = vld [vmem:[#allocation7 + $0x18] sm:$0xff]  ;;  %v2000_v43 = vld [vmem:[#allocation7 + $0x10] sm:$0xff]  ;;  %v1999_v46 = vld [vmem:[#allocation7 + $0x8] sm:$0xff]  ;;  %s2962_s25 = smov 24   ;;  %s3852_s17 = smov 8  }
 0x861   : > { %2736 = vset.pattern.permute.xlu1 %v2961_v39  ;;  %2735 = vset.pattern.permute.xlu0 %v2961_v39  ;;  %v1998_v47 = vld [vmem:[#allocation7] sm:$0xff]  ;;  %s2964_s1 = smov 16   ;;  %s3896_s9 = sld [smem:[#allocation37_spill]]  ;;  %vm2151_vm15 = vcmask 195584  }
 0x862   : > { %2019 = vperm.xlu1 %2736, %v3582_v59   ;;  %2014 = vperm.xlu0 %2735, %v3580_v6   ;;  %s3897_s18 = sld [smem:[#allocation39_spill]]  ;;  %s2570_s27 = sshll.u32 %s2928_s0, 3 }
 0x863   : > { %s3898_s23 = sld [smem:[#allocation38_spill]]  ;;  %s2366_s16 = sadd.s32 %s2924_s30, %s2570_s27 }
 0x864   : > { %s3900_s2 = sld [smem:[#allocation42_spill]]  ;;  %s2369_s24 = sshll.u32 %s3437_s15, 4  ;;  %s2370_s24 = int_to_ptr.vmem [resolvable:$true] %s2369_s24 }
 0x865   : > { %s2340_s22 = scalar_lea.sflag [#allocation15], %s3180_s19 }
 0x86a   : > { %2009 = vperm.xlu1 %2736, %v3578_v3   ;;  %2004 = vperm.xlu0 %2735, %v3573_v63   ;;  %s2826_s27 = scalar_lea.hbm %s3900_s2, 128 }
 0x8d4   : > { %v2020_v40 = vpop.permute.xlu1 %2019  ;;  %v2015_v41 = vpop.permute.xlu0 %2014 }
 0x8d5   : > { %v2025_v44 = vmul.f32 %v2020_v40, %v2001_v42  ;;  %v2024_v45 = vmul.f32 %v2015_v41, %v2000_v43 }
 0x8d7   : > { %v2038_v52 = vrot.slane %v2025_v44, 4  ;;  %v2026_v53 = vrot.slane %v2024_v45, 4 }
 0x8dc   : > { %v2010_v48 = vpop.permute.xlu1 %2009  ;;  %v2005_v51 = vpop.permute.xlu0 %2004 }
 0x8dd   : > { %v2023_v54 = vmul.f32 %v2010_v48, %v1999_v46  ;;  %v2022_v49 = vmul.f32 %v2005_v51, %v1998_v47 }
 0x8df   : > { %v2039_v55 = vsel %vm728_vm7, %v2038_v52, %v2023_v54  ;;  %v2040_v56 = vrot.slane %v2023_v54, 4  ;;  %v2027_v57 = vsel %vm728_vm7, %v2026_v53, %v2022_v49  ;;  %v2028_v62 = vrot.slane %v2022_v49, 4  ;;  %v2155_v49 = vld [vmem:[%s3896_s9 + $0x10] sm:$0xff] }
 0x8e0   : > { %v2045_v63 = vperm.slane %v2039_v55, %v3258_v60  ;;  %v2033_v1 = vperm.slane %v2027_v57, %v3258_v60  ;;  %v2154_v55 = vld [vmem:[%s3896_s9 + $0x8] sm:$0xff] }
 0x8e1   : > { %v2041_v2 = vsel %vm728_vm7, %v2025_v44, %v2040_v56  ;;  %v2029_v3 = vsel %vm728_vm7, %v2024_v45, %v2028_v62  ;;  %v2153_v56 = vld [vmem:[%s3896_s9] sm:$0xff] }
 0x8e2   : > { %v2049_v4 = vperm.slane %v2041_v2, %v3258_v60  ;;  %v2050_v5 = vrot.slane %v2045_v63, 4  ;;  %v2037_v6 = vperm.slane %v2029_v3, %v3258_v60  ;;  %v2052_v7 = vrot.slane %v2033_v1, 4 }
 0x8e4   : > { %v2062_v59 = vrot.slane %v2049_v4, 4  ;;  %v2051_v9 = vsel %vm728_vm7, %v2050_v5, %v2033_v1  ;;  %v2053_v61 = vsel %vm728_vm7, %v2045_v63, %v2052_v7  ;;  %v2064_v50 = vrot.slane %v2037_v6, 4 }
 0x8e5   : > { %v2057_v11 = vperm.slane %v2051_v9, %v3269_v12  ;;  %v2061_v13 = vperm.slane %v2053_v61, %v3269_v12 }
 0x8e6   : > { %v2063_v14 = vsel %vm728_vm7, %v2062_v59, %v2037_v6  ;;  %v2065_v15 = vsel %vm728_vm7, %v2049_v4, %v2064_v50  ;;  %v2737_v4 = vld [vmem:[%s3830_s10] ss:$0 sm:$0xff] }
 0x8e7   : > { %v2069_v16 = vperm.slane %v2063_v14, %v3269_v12  ;;  %v2073_v17 = vperm.slane %v2065_v15, %v3269_v12  ;;  %v2074_v19 = vrot.slane %v2057_v11, 4  ;;  %v2076_v20 = vrot.slane %v2061_v13, 4  ;;  %v2220_v14 = vld [vmem:[#allocation11 + $0x18] sm:$0xff]  ;;  %v2219_v15 = vld [vmem:[#allocation11 + $0x10] sm:$0xff] }
 0x8e8   : > { %2240 = vmatpush.msra.mxu1 %v2220_v14 }
 0x8e9   : > { %v2077_v21 = vsel %vm728_vm7, 0.0, %v2076_v20  ;;  %v2080_v34 = vrot.slane %v2073_v17, 4  ;;  %v2082_v58 = vsel %vm728_vm7, %v2076_v20, %v2057_v11  ;;  %v2078_v24 = vrot.slane %v2069_v16, 4 }
 0x8ea   : > { %v2086_v22 = vperm.slane %v2082_v58, %v3258_v60  ;;  %v2087_v23 = vrot.slane %v2077_v21, 4  ;;  %v2075_v25 = vsel %vm728_vm7, 0.0, %v2074_v19  ;;  %2241 = vmatpush.msra.mxu1 %v2219_v15 }
 0x8eb   : > { %v2081_v26 = vsel %vm728_vm7, 0.0, %v2080_v34  ;;  %v2093_v27 = vsel %vm728_vm7, %v2080_v34, %v2069_v16  ;;  %v2079_v10 = vsel %vm728_vm7, 0.0, %v2078_v24  ;;  %v2218_v16 = vld [vmem:[#allocation11 + $0x8] sm:$0xff] }
 0x8ec   : > { %v2088_v28 = vsel %vm728_vm7, %v2087_v23, %v2075_v25  ;;  %v2097_v35 = vperm.slane %v2093_v27, %v3258_v60  ;;  %v2098_v29 = vrot.slane %v2081_v26, 4  ;;  %v2106_v31 = vrot.slane %v2086_v22, 4  ;;  %2242 = vmatpush.msra.mxu1 %v2218_v16  ;;  %v2738_v25 = vld [vmem:[%s3831_s11] ss:$0 sm:$0xff] }
 0x8ed   : > { %v2092_v30 = vperm.slane %v2088_v28, %v3258_v60 }
 0x8ee   : > { %v2099_v32 = vsel %vm728_vm7, %v2098_v29, %v2079_v10  ;;  %v2118_v33 = vrot.slane %v2097_v35, 4  ;;  %v2307_v29 = vld [vmem:[%s3897_s18 + $0x78] sm:$0xff]  ;;  %v2306_v10 = vld [vmem:[%s3897_s18 + $0x70] sm:$0xff] }
 0x8ef   : > { %v2103_v36 = vperm.slane %v2099_v32, %v3258_v60  ;;  %v2107_v37 = vsel %vm728_vm7, %v2092_v30, %v2106_v31  ;;  %v2104_v18 = vrot.slane %v2092_v30, 4  ;;  %2312 = vmatpush.msra.mxu2 %v2307_v29  ;;  %v2305_v30 = vld [vmem:[%s3897_s18 + $0x68] sm:$0xff]  ;;  %v2740_v31 = vld [vmem:[%s3898_s23] ss:$0 sm:$0xff] }
 0x8f0   : > { %v2115_v38 = vperm.slane %v2107_v37, %v3269_v12  ;;  %v2304_v32 = vld [vmem:[%s3897_s18 + $0x60] sm:$0xff] }
 0x8f1   : > { %v2119_v39 = vsel %vm728_vm7, %v2103_v36, %v2118_v33  ;;  %v2105_v40 = vsel %vm728_vm7, %v2104_v18, %v2086_v22  ;;  %v2116_v41 = vrot.slane %v2103_v36, 4  ;;  %2313 = vmatpush.msra.mxu2 %v2306_v10  ;;  %v2303_v33 = vld [vmem:[%s3897_s18 + $0x58] sm:$0xff]  ;;  %v2302_v36 = vld [vmem:[%s3897_s18 + $0x50] sm:$0xff] }
 0x8f2   : > { %v2127_v42 = vperm.slane %v2119_v39, %v3269_v12  ;;  %v2134_v43 = vrot.slane %v2115_v38, 4  ;;  %v2111_v44 = vperm.slane %v2105_v40, %v3269_v12  ;;  %v2300_v40 = vld [vmem:[%s3897_s18 + $0x40] sm:$0xff] }
 0x8f3   : > { %v2117_v45 = vsel %vm728_vm7, %v2116_v41, %v2097_v35  ;;  %2314 = vmatpush.msra.mxu2 %v2305_v30 }
 0x8f4   : > { %v2135_v46 = vsel %vm728_vm7, %v2127_v42, %v2134_v43  ;;  %v2123_v60 = vperm.slane %v2117_v45, %v3269_v12  ;;  %v2130_v47 = vrot.slane %v2111_v44, 4  ;;  %v2132_v53 = vrot.slane %v2127_v42, 4  ;;  %v2156_v12 = vld [vmem:[%s3896_s9 + $0x18] sm:$0xff] }
 0x8f5   : > { %2145 = vrot.lane.b32.xlu0 %v2135_v46, %s2962_s25  ;;  %2176 = vmatpush.msra.mxu0 %v2156_v12  ;;  %v2299_v42 = vld [vmem:[%s3897_s18 + $0x38] sm:$0xff]  ;;  %v2297_v46 = vld [vmem:[%s3897_s18 + $0x28] sm:$0xff]  ;;  %v2294_v12 = vld [vmem:[%s3897_s18 + $0x10] sm:$0xff]  ;;  %s2571_s25 = sshll.u32 %s2366_s16, 3 }
 0x8f6   : > { %v2131_v48 = vsel %vm728_vm7, %v2123_v60, %v2130_v47  ;;  %v2128_v51 = vrot.slane %v2123_v60, 4  ;;  %v2133_v54 = vsel %vm728_vm7, %v2132_v53, %v2115_v38  ;;  %2315 = vmatpush.msra.mxu2 %v2304_v32  ;;  %v2301_v38 = vld [vmem:[%s3897_s18 + $0x48] sm:$0xff]  ;;  %v2295_v53 = vld [vmem:[%s3897_s18 + $0x18] sm:$0xff]  ;;  %s2368_s23 = scalar_lea.hbm %s3900_s2, %s2571_s25 }
 0x8f7   : > { %2137 = vrot.lane.b32.xlu2 %v2131_v48, %s3852_s17  ;;  %2177 = vmatpush.msra.mxu0 %v2155_v49  ;;  %v2296_v48 = vld [vmem:[%s3897_s18 + $0x20] sm:$0xff]  ;;  %s2371_s26 = sshll.u32 %s2368_s23, 4  ;;  %s2372_s26 = int_to_ptr.hbm [resolvable:$true] %s2371_s26 }
 0x8f8   : > { %v2129_v52 = vsel %vm728_vm7, %v2128_v51, %v2111_v44  ;;  %vm2149_vm7 = vcmask 130048   ;;  %2316 = vmatpush.msra.mxu2 %v2303_v33  ;;  %v2298_v44 = vld [vmem:[%s3897_s18 + $0x30] sm:$0xff]  ;;  %s2820_s3 = sshra.s32 %s2372_s26, 4  ;;  %s2821_s3 = int_to_ptr.hbm [resolvable:$true] %s2820_s3 }
 0x8f9   : > { %2178 = vmatpush.msra.mxu0 %v2154_v55  ;;  %s2822_s4 = scalar_lea.hbm %s2821_s3, 32  ;;  %p2827_p11 = scmp.lt.s32.totalorder %s2821_s3, %s3900_s2 }
 0x8fa   : > { %2317 = vmatpush.msra.mxu2 %v2302_v36  ;;  %p2823_p7 = scmp.ne.s32.totalorder %s2821_s3, %s2822_s4  ;;  %p2828_p12 = scmp.lt.s32.totalorder %s2826_s27, %s2822_s4 }
 0x8fb   : > { %2179 = vmatpush.msra.mxu0 %v2153_v56  ;;  %v2293_v56 = vld [vmem:[%s3897_s18 + $0x8] sm:$0xff] }
 0x8fc   : > { %2318 = vmatpush.msra.mxu2 %v2301_v38  ;;  %p2824_p9 = pnand %p2823_p7, %p3114_p3  ;;  %p2829_p13 = por %p2828_p12, %p2827_p11 }
 0x8fe   : > { %2319 = vmatpush.msra.mxu2 %v2300_v40  ;;  %p2825_p10 = pneg %p2824_p9 }
 0x8ff   : > { %2141 = vrot.lane.b32.xlu2 %v2133_v54, %s2964_s1 }
 0x900   : > { %2320 = vmatpush.msra.mxu2 %v2299_v42  ;;  %p2830_p0 = pnand %p2829_p13, %p2825_p10 }
 0x902   : > { %2321 = vmatpush.msra.mxu2 %v2298_v44 }
 0x904   : > { %2322 = vmatpush.msra.mxu2 %v2297_v46 }
 0x906   : > { %2323 = vmatpush.msra.mxu2 %v2296_v48 }
 0x908   : > { %2324 = vmatpush.msra.mxu2 %v2295_v53 }
 0x90a   : > { %2325 = vmatpush.msra.mxu2 %v2294_v12 }
 0x90c   : > { %2326 = vmatpush.msra.mxu2 %v2293_v56 }
 0x951   : > { %v2138_v57 = vpop.permute.xlu2 %2137 }
 0x952   : > { %v2148_v63 = vsel %vm987_vm6, %v2129_v52, %v2138_v57 }
 0x959   : > { %v2142_v62 = vpop.permute.xlu2 %2141 }
 0x95a   : > { %v2150_v1 = vsel %vm2149_vm7, %v2148_v63, %v2142_v62  ;;  %v2292_v62 = vld [vmem:[%s3897_s18] sm:$0xff] }
 0x95b   : > { %2327 = vmatpush.msra.mxu2 %v2292_v62 }
 0x967   : > { %v2146_v2 = vpop.permute.xlu0 %2145 }
 0x968   : > { %v2152_v3 = vsel %vm2151_vm15, %v2150_v1, %v2146_v2 }
 0x969   : > { %2563 = vmatmul.msk.f32.vlgmr.msra.gmra.mxu0 %vm648_vm0, %v2152_v3 }
 0x9e6   : > { %v2181_v5 = vpop.f32.mrf.mxu0 }
 0x9e7   : > { %v2182_v6 = vadd.f32 %v2737_v4, %v2181_v5 }
 0x9e9   : > { %v3685_v7 = vadd.f32 %v2182_v6, %v3170_v0  ;;  %v2217_v0 = vld [vmem:[#allocation11] sm:$0xff] }
 0x9ea   : > { %2243 = vmatpush.msra.mxu1 %v2217_v0 }
 0x9eb   : > { %v2187_v59 = vsel %vm648_vm0, %v3685_v7, 0.0 }
 0x9ec   : > { %2188 = vadd.xlane.f32.xlu1 %v2187_v59 }
 0xa5f   : > { %v2189_v9 = vpop.xlane.xlu1 %2188 }
 0xa60   : > { %v2190_v61 = vmul.f32 %v2189_v9, %v3174_v8 }
 0xa62   : > { %v2191_v50 = vsub.f32 %v3685_v7, %v2190_v61 }
 0xa64   : > { %v2192_v11 = vmul.f32 %v2191_v50, %v2191_v50 }
 0xa66   : > { %v2193_v13 = vsel %vm648_vm0, %v2192_v11, 0.0 }
 0xa67   : > { %2194 = vadd.xlane.f32.xlu2 %v2193_v13 }
 0xada   : > { %v2195_v17 = vpop.xlane.xlu2 %2194 }
 0xadb   : > { %v2196_v19 = vmul.f32 %v2195_v17, %v3174_v8  ;;  %v2739_v8 = vld [vmem:[%s3832_s12] ss:$0 sm:$0xff] }
 0xadd   : > { %v2197_v20 = vadd.f32 1e-05, %v2196_v19 }
 0xadf   : > { %2742 = vrsqrt.f32 %v2197_v20  ;;  %vm2204_vm1 = vweird.f32 %v2197_v20 }
 0xae5   : > { %v2743_v21 = vpop.eup %2742 }
 0xae6   : > { %v2199_v34 = vmul.f32 %v2743_v21, %v2197_v20  ;;  %vm2205_vm6 = vweird.f32 %v2743_v21 }
 0xae7   : > { %vm2206_vm2 = vmor %vm2204_vm1, %vm2205_vm6 }
 0xae8   : > { %v2200_v58 = vmul.f32 %v2743_v21, %v2199_v34 }
 0xaea   : > { %v2201_v22 = vmul.f32 0.5, %v2200_v58 }
 0xaec   : > { %v2202_v23 = vsub.f32 1.5, %v2201_v22 }
 0xaee   : > { %v2203_v24 = vmul.f32 %v2743_v21, %v2202_v23 }
 0xaf0   : > { %v2207_v26 = vsel %vm2206_vm2, %v2743_v21, %v2203_v24 }
 0xaf1   : > { %v2208_v27 = vmul.f32 %v2207_v26, %v2191_v50 }
 0xaf3   : > { %v2212_v28 = vmul.f32 %v2738_v25, %v2208_v27 }
 0xaf5   : > { %v2216_v35 = vadd.f32 %v2739_v8, %v2212_v28 }
 0xaf7   : > { %2564 = vmatmul.msk.f32.vlgmr.msra.gmra.mxu1 %vm648_vm0, %v2216_v35 }
 0xb74   : > { %v2245_v37 = vpop.f32.mrf.mxu1 }
 0xb75   : > { %v2246_v18 = vadd.f32 %v2740_v31, %v2245_v37 }
 0xb77   : > { %v2249_v39 = vmul.f32 0.70710677, %v2246_v18  ;;  %v2248_v23 = vmul.f32 0.5, %v2246_v18 }
 0xb79   : > { %v2250_v41 = vmul.f32 %v2249_v39, %v2249_v39 }
 0xb7b   : > { %v2251_v43 = vmin.f32 %v2250_v41, 16.0 }
 0xb7d   : > { %v2252_v45 = vmul.f32 2.1237322e-06, %v2251_v43  ;;  %v2263_v60 = vmul.f32 3.8918573e-05, %v2251_v43 }
 0xb7f   : > { %v2253_v47 = vadd.f32 0.00028619796, %v2252_v45  ;;  %v2264_v51 = vadd.f32 0.001143296, %v2263_v60 }
 0xb81   : > { %v2254_v52 = vmul.f32 %v2253_v47, %v2251_v43  ;;  %v2265_v54 = vmul.f32 %v2264_v51, %v2251_v43 }
 0xb83   : > { %v2266_v49 = vadd.f32 0.014752088, %v2265_v54  ;;  %v2255_v55 = vadd.f32 0.0036580483, %v2254_v52 }
 0xb85   : > { %v2267_v57 = vmul.f32 %v2266_v49, %v2251_v43  ;;  %v2256_v1 = vmul.f32 %v2255_v55, %v2251_v43 }
 0xb87   : > { %v2268_v63 = vadd.f32 0.112945676, %v2267_v57  ;;  %v2257_v4 = vadd.f32 0.05243302, %v2256_v1 }
 0xb89   : > { %v2269_v2 = vmul.f32 %v2268_v63, %v2251_v43  ;;  %v2258_v59 = vmul.f32 %v2257_v4, %v2251_v43 }
 0xb8b   : > { %v2270_v3 = vadd.f32 0.4994258, %v2269_v2  ;;  %v2259_v9 = vadd.f32 0.18741608, %v2258_v59 }
 0xb8d   : > { %v2271_v5 = vmul.f32 %v2270_v3, %v2251_v43  ;;  %v2260_v50 = vmul.f32 %v2259_v9, %v2251_v43 }
 0xb8f   : > { %v2272_v6 = vadd.f32 1.0, %v2271_v5  ;;  %v2261_v15 = vadd.f32 1.1283791, %v2260_v50 }
 0xb91   : > { %2744 = vrcp.f32 %v2272_v6  ;;  %v2284_v14 = vand.u32 2147483648, %v2272_v6  ;;  %v2282_v0 = vand.u32 2147483647, %v2272_v6  ;;  %vm2278_vm4 = vweird.f32 %v2272_v6 }
 0xb92   : > { %v2262_v20 = vmul.f32 %v2261_v15, %v2249_v39 }
 0xb93   : > { %v2285_v19 = vor.u32 1.1754944e-38, %v2284_v14  ;;  %vm2283_vm8 = vcmp.eq.f32.partialorder %v2282_v0, 8.507059e+37 }
 0xb97   : > { %v2745_v61 = vpop.eup %2744 }
 0xb98   : > { %v2274_v11 = vmul.f32 %v2745_v61, %v2272_v6  ;;  %vm2279_vm3 = vweird.f32 %v2745_v61 }
 0xb99   : > { %vm2280_vm5 = vmor %vm2278_vm4, %vm2279_vm3 }
 0xb9a   : > { %v2275_v13 = vsub.f32 1.0, %v2274_v11 }
 0xb9c   : > { %v2276_v16 = vmul.f32 %v2745_v61, %v2275_v13 }
 0xb9e   : > { %v2277_v17 = vadd.f32 %v2745_v61, %v2276_v16 }
 0xba0   : > { %v2281_v21 = vsel %vm2280_vm5, %v2745_v61, %v2277_v17 }
 0xba1   : > { %v2286_v34 = vsel %vm2283_vm8, %v2285_v19, %v2281_v21 }
 0xba2   : > { %v2287_v58 = vmul.f32 %v2286_v34, %v2262_v20 }
 0xba4   : > { %v2565_v22 = vclamps-f32 %v2287_v58, 1.0 }
 0xba6   : > { %v2290_v24 = vadd.f32 1.0, %v2565_v22 }
 0xba8   : > { %v2291_v25 = vmul.f32 %v2290_v24, %v2248_v23 }
 0xbaa   : > { %2328 = vmatmul.f32.vlgmr.msra.gmra.mxu2 %v2291_v25 }
 0xbab   : > { %2833 = shalt.err (!%p2830_p0)
}
 0xbac   : > { %s2965_s15 = smov 128   ;;  %s2966_s25 = smov 256  }
 0xbad   : > { %s3901_s17 = smov 8   ;;  %s2568_s5 = sshll.u32 %s2928_s0, 1 }
 0xbae   : > { %2583 = dma.vmem_to_hbm [thread:$0]  (%p3114_p3), %s2370_s24, 512, %s2372_s26, %s2340_s22, %s2965_s15, %s2966_s25, %s3901_s17  }
 0xbaf   : > { %s2350_s6 = sadd.s32 %s2924_s30, %s2568_s5  ;;  %s3902_s4 = sld [smem:[#allocation40_spill]] }
 0xbb0   : > { %s2569_s1 = sshll.u32 %s2350_s6, 3  ;;  %s3903_s16 = sld [smem:[#allocation41_spill]] }
 0xbb1   : > { %s2354_s8 = sshll.u32 %s3433_s14, 4  ;;  %s2335_s30 = scalar_lea.sflag [#allocation10], %s3180_s19  ;;  %s2355_s8 = int_to_ptr.vmem [resolvable:$true] %s2354_s8 }
 0xbb5   : > { %v2741_v26 = vld [vmem:[%s3902_s4] ss:$0 sm:$0xff] }
 0xbb6   : > { %s2352_s2 = scalar_lea.hbm %s3903_s16, %s2569_s1  ;;  %s2854_s15 = scalar_lea.hbm %s3903_s16, 32 }
 0xbb7   : > { %s2356_s9 = sshll.u32 %s2352_s2, 4  ;;  %s2357_s9 = int_to_ptr.hbm [resolvable:$true] %s2356_s9 }
 0xbb8   : > { %s2848_s0 = sshra.s32 %s2357_s9, 4  ;;  %s2849_s0 = int_to_ptr.hbm [resolvable:$true] %s2848_s0 }
 0xbb9   : > { %s2850_s24 = scalar_lea.hbm %s2849_s0, 8  ;;  %p2855_p5 = scmp.lt.s32.totalorder %s2849_s0, %s3903_s16 }
 0xbba   : > { %p2851_p1 = scmp.ne.s32.totalorder %s2849_s0, %s2850_s24  ;;  %p2856_p6 = scmp.lt.s32.totalorder %s2854_s15, %s2850_s24 }
 0xbbc   : > { %p2852_p2 = pnand %p2851_p1, %p3114_p3  ;;  %p2857_p7 = por %p2856_p6, %p2855_p5 }
 0xbbe   : > { %p2853_p4 = pneg %p2852_p2 }
 0xbc0   : > { %p2858_p9 = pnand %p2857_p7, %p2853_p4 }
 0xc2d   : > { %v2329_v27 = vpop.f32.mrf.mxu2 }
 0xc2e   : > { %v2330_v8 = vadd.f32 %v2741_v26, %v2329_v27 }
 0xc30   : > { %v2332_v28 = vadd.f32 %v2330_v8, %v3685_v7 }
 0xc32   : > { %2333 = vst.msk [vmem:[%s3433_s14] sm:$0xff] %vm648_vm0, %v2332_v28 }
 0xc33   : > { %2861 = shalt.err (!%p2858_p9)
}
 0xc34   : > { %2582 = dma.vmem_to_hbm [thread:$0]  (%p3114_p3), %s2355_s8, 128, %s2357_s9, %s2335_s30  }
 0xc35 PF: > { %s3904_s19 = sld [smem:[#allocation23_spill]] }
 0xc36   : > { %s3905_s14 = sld [smem:[#allocation20_spill]] }
 0xc3b   : > { %p2604_p10 = scmp.ge.s32.totalorder %s3904_s19, 2 }
 0xc3c   : > { %s2386_s5 = sand.u32 1, %s3905_s14  }
 0xc3d   : > { %p2594_p11 = pnand %p2604_p10, %p3123_p8  ;;  %s2387_s6 = scalar_lea.sflag [#allocation10], %s2386_s5 }
 0xc3f   : > { %p2595_p12 = pneg %p2594_p11 }
 0xc41   : > { %2903 = dma.done.wait (%p2595_p12), %s2387_s6, 128  }
 0xc42   : > { %2905 = vsyncadd (%p2595_p12), %s2387_s6, 4294967168  ;;  %s2397_s1 = scalar_lea.sflag [#allocation15], %s2386_s5 }
 0xc43   : > { %2907 = dma.done.wait (%p2595_p12), %s2397_s1, 512  }
 0xc44   : > { %2909 = vsyncadd (%p2595_p12), %s2397_s1, 4294966784  ;;  %s37_s7 = sadd.s32 1, %s3904_s19   ;;  %s3907_s30 = sld [smem:[#allocation21_spill]] }
 0xc45   : > { %p34_p13 = scmp.ge.s32.totalorder %s37_s7, 6   ;;  %s3908_s0 = sld [smem:[#allocation22_spill]] }
 0xc46   : > { %s3909_s19 = sld [smem:[#allocation24_spill]]  ;;  %s3911_s27 = smov %s2916_s28 }
 0xc47   : > { %s3910_s1 = sld [smem:[#allocation26_spill]]  ;;  %s3912_s28 = smov %s2920_s29 }
 0xc48   : > { %s3913_s29 = smov %s3144_s20  ;;  %s3914_s20 = smov %s37_s7 }
 0xc49   :  { %36 = sbr.rel (!%p34_p13) target bundleno = 25 (0x19), region = 186 }
 0xc4e   :  { %2403 = vsyncpa [#allocation9], 1 }
 0xc4f   :  { %2405 = vsyncpa [#allocation9 + $0x1], 1 }
 0xc50   :  { %2406 = vsyncpa [#allocation12], 1 }
 0xc51   :  { %2407 = vsyncpa [#allocation10], 1 }
 0xc52   :  { %2409 = vsyncpa [#allocation10 + $0x1], 1 }
 0xc53   :  { %2410 = vsyncpa [#allocation15], 1 }
 0xc54   :  { %2412 = vsyncpa [#allocation15 + $0x1], 1 }

</bundles_post_ra>
